<compile_context>
chip_gen: v7x
topology: tpu7x:2x2x1
jax: 0.10.0
libtpu: 0.0.40
codegen_flags: <defaults>
</compile_context>

<pallas_src>
import jax
import jax.numpy as jnp
import numpy as np
from jax.experimental import pallas as pl
from jax.experimental.pallas import tpu as pltpu


# ---------------------------------------------------------------------------
# Fused LSTMAE kernel (built as a closure over the static config)
# ---------------------------------------------------------------------------
def build_lstmae_kernel(B, T, n_lstm):
    N = B * T

    def run_lstm_layer(seq, wih_ref, whh_ref, b_ref, xw_scr, seq_scr):
        """One PyTorch-semantics LSTM layer on time-major rows (row = t*B + b)."""
        H = whh_ref.shape[0]
        G = 4 * H

        # Hoisted input projection: one big matmul + bias for ALL timesteps.
        xw_scr[:, 0:G] = (
            jnp.dot(seq, wih_ref[...], preferred_element_type=jnp.float32)
            + b_ref[...]
        )

        whh = whh_ref[...]
        h = jnp.zeros((B, H), jnp.float32)
        c = jnp.zeros((B, H), jnp.float32)

        # Static unroll over T: critical path per step is a single tiny matmul
        # (h @ Whh) + gate math; all slices are static.
        for t in range(T):
            gates = xw_scr[t * B:(t + 1) * B, 0:G] + jnp.dot(
                h, whh, preferred_element_type=jnp.float32
            )
            # PyTorch gate order: i, f, g, o
            i_g = jax.nn.sigmoid(gates[:, 0:H])
            f_g = jax.nn.sigmoid(gates[:, H:2 * H])
            g_g = jnp.tanh(gates[:, 2 * H:3 * H])
            o_g = jax.nn.sigmoid(gates[:, 3 * H:4 * H])
            c = f_g * c + i_g * g_g
            h = o_g * jnp.tanh(c)
            seq_scr[t * B:(t + 1) * B, 0:H] = h

        return seq_scr[:, 0:H]

    def kernel(*refs):
        # in_refs: x, enc_w1, enc_b1, enc_w2, enc_b2,
        #          [wih_t, whh_t, b] * n_lstm,
        #          dec_w1, dec_b1, dec_w2, dec_b2
        # out_refs: out
        # scratch: xw_scr, seq_scr
        x_ref = refs[0]
        ew1, eb1, ew2, eb2 = refs[1:5]
        lstm_refs = [refs[5 + 3 * l: 8 + 3 * l] for l in range(n_lstm)]
        base = 5 + 3 * n_lstm
        dw1, db1, dw2, db2 = refs[base:base + 4]
        out_ref = refs[base + 4]
        xw_scr = refs[base + 5]
        seq_scr = refs[base + 6]

        # ---- Encoder MLP: Linear -> ReLU -> Linear ----
        h = jnp.maximum(
            jnp.dot(x_ref[...], ew1[...], preferred_element_type=jnp.float32)
            + eb1[...],
            0.0,
        )
        seq = (
            jnp.dot(h, ew2[...], preferred_element_type=jnp.float32) + eb2[...]
        )  # (N, lin_output)

        # ---- Encoder LSTM stack, then decoder LSTM stack ----
        for (wih_ref, whh_ref, b_ref) in lstm_refs:
            seq = run_lstm_layer(seq, wih_ref, whh_ref, b_ref, xw_scr, seq_scr)

        # ---- Decoder MLP: Linear -> ReLU -> Linear ----
        d = jnp.maximum(
            jnp.dot(seq, dw1[...], preferred_element_type=jnp.float32)
            + db1[...],
            0.0,
        )
        out = jnp.dot(d, dw2[...], preferred_element_type=jnp.float32) + db2[...]
        out_ref[...] = out.astype(out_ref.dtype)

    return kernel


# ---------------------------------------------------------------------------
# Parameter prep (done once) + forward wrapper
# ---------------------------------------------------------------------------
def prepare_params(params):
    """Pre-transpose weights and pre-combine LSTM biases once."""
    prep = {
        "enc_w1": params["enc_w1"].T,
        "enc_b1": params["enc_b1"].reshape(1, -1),
        "enc_w2": params["enc_w2"].T,
        "enc_b2": params["enc_b2"].reshape(1, -1),
        "dec_w1": params["dec_w1"].T,
        "dec_b1": params["dec_b1"].reshape(1, -1),
        "dec_w2": params["dec_w2"].T,
        "dec_b2": params["dec_b2"].reshape(1, -1),
        "lstm": [],
    }
    for (w_ih, w_hh, b_ih, b_hh) in params["enc_lstm"] + params["dec_lstm"]:
        prep["lstm"].append(
            (w_ih.T, w_hh.T, (b_ih + b_hh).reshape(1, -1))
        )
    return prep


@jax.jit
def lstmae_forward(x, prep):
    B, T, F_in = x.shape
    N = B * T
    n_lstm = len(prep["lstm"])
    h_max = max(w_hh.shape[0] for (_, w_hh, _) in prep["lstm"])
    out_dim = prep["dec_w2"].shape[1]

    # Time-major rows (row = t*B + b); a single tiny transpose outside the kernel.
    x_tm = jnp.transpose(x, (1, 0, 2)).reshape(N, F_in)

    args = [x_tm, prep["enc_w1"], prep["enc_b1"], prep["enc_w2"], prep["enc_b2"]]
    for (wih_t, whh_t, b) in prep["lstm"]:
        args += [wih_t, whh_t, b]
    args += [prep["dec_w1"], prep["dec_b1"], prep["dec_w2"], prep["dec_b2"]]

    kernel = build_lstmae_kernel(B, T, n_lstm)

    out_tm = pl.pallas_call(
        kernel,
        out_shape=jax.ShapeDtypeStruct((N, out_dim), jnp.float32),
        scratch_shapes=[
            pltpu.VMEM((N, 4 * h_max), jnp.float32),  # hoisted x @ Wih + b slab
            pltpu.VMEM((N, h_max), jnp.float32),      # per-layer output sequence
        ],
    )(*args)

    return jnp.transpose(out_tm.reshape(T, B, out_dim), (1, 0, 2))


# ---------------------------------------------------------------------------
# Pure-JAX reference (correctness check)
# ---------------------------------------------------------------------------
def ref_lstm_layer(x_tbf, w_ih, w_hh, b_ih, b_hh):
    B = x_tbf.shape[1]
    H = w_hh.shape[1]

    def step(carry, x):
        h, c = carry
        gates = x @ w_ih.T + b_ih + h @ w_hh.T + b_hh
        i, f, g, o = jnp.split(gates, 4, axis=-1)
        i = jax.nn.sigmoid(i)
        f = jax.nn.sigmoid(f)
        g = jnp.tanh(g)
        o = jax.nn.sigmoid(o)
        c = f * c + i * g
        h = o * jnp.tanh(c)
        return (h, c), h

    init = (jnp.zeros((B, H), jnp.float32), jnp.zeros((B, H), jnp.float32))
    _, ys = jax.lax.scan(step, init, x_tbf)
    return ys


def ref_forward(x, params):
    h = jnp.maximum(x @ params["enc_w1"].T + params["enc_b1"], 0.0)
    h = h @ params["enc_w2"].T + params["enc_b2"]
    seq = jnp.transpose(h, (1, 0, 2))
    for (w_ih, w_hh, b_ih, b_hh) in params["enc_lstm"]:
        seq = ref_lstm_layer(seq, w_ih, w_hh, b_ih, b_hh)
    for (w_ih, w_hh, b_ih, b_hh) in params["dec_lstm"]:
        seq = ref_lstm_layer(seq, w_ih, w_hh, b_ih, b_hh)
    dec = jnp.transpose(seq, (1, 0, 2))
    o = jnp.maximum(dec @ params["dec_w1"].T + params["dec_b1"], 0.0)
    return o @ params["dec_w2"].T + params["dec_b2"]


# ---------------------------------------------------------------------------
# Deterministic parameter init (PyTorch-style uniform bounds)
# ---------------------------------------------------------------------------
def init_linear(key, out_f, in_f):
    k1, k2 = jax.random.split(key)
    bound = 1.0 / np.sqrt(in_f)
    w = jax.random.uniform(k1, (out_f, in_f), jnp.float32, -bound, bound)
    b = jax.random.uniform(k2, (out_f,), jnp.float32, -bound, bound)
    return w, b


def init_lstm(key, input_size, hidden_size, num_layers):
    layers = []
    bound = 1.0 / np.sqrt(hidden_size)
    for l in range(num_layers):
        key, k1, k2, k3, k4 = jax.random.split(key, 5)
        in_f = input_size if l == 0 else hidden_size
        w_ih = jax.random.uniform(k1, (4 * hidden_size, in_f), jnp.float32, -bound, bound)
        w_hh = jax.random.uniform(k2, (4 * hidden_size, hidden_size), jnp.float32, -bound, bound)
        b_ih = jax.random.uniform(k3, (4 * hidden_size,), jnp.float32, -bound, bound)
        b_hh = jax.random.uniform(k4, (4 * hidden_size,), jnp.float32, -bound, bound)
        layers.append((w_ih, w_hh, b_ih, b_hh))
    return layers


if __name__ == "__main__":
    # Module hyperparameters (small, consistent with LSTMAE.__init__)
    input_size = 16
    lin_hidden_size = 32
    hidden_size = 32
    lin_output_size = 32
    num_layers = 2
    B, T = 2, 8

    key = jax.random.PRNGKey(0)
    (k_e1, k_e2, k_el, k_dl, k_d1, k_d2, k_x) = jax.random.split(key, 7)

    params = {}
    # Encoder: Linear(input, lin_hidden) -> ReLU -> Linear(lin_hidden, lin_output) -> LSTM(lin_output, hidden)
    params["enc_w1"], params["enc_b1"] = init_linear(k_e1, lin_hidden_size, input_size)
    params["enc_w2"], params["enc_b2"] = init_linear(k_e2, lin_output_size, lin_hidden_size)
    params["enc_lstm"] = init_lstm(k_el, lin_output_size, hidden_size, num_layers)
    # Decoder: LSTM(hidden, lin_output) -> Linear(lin_output, lin_hidden) -> ReLU -> Linear(lin_hidden, input)
    params["dec_lstm"] = init_lstm(k_dl, hidden_size, lin_output_size, num_layers)
    params["dec_w1"], params["dec_b1"] = init_linear(k_d1, lin_hidden_size, lin_output_size)
    params["dec_w2"], params["dec_b2"] = init_linear(k_d2, input_size, lin_hidden_size)

    x = jax.random.normal(k_x, (B, T, input_size), jnp.float32)

    prep = prepare_params(params)
    out = jax.block_until_ready(lstmae_forward(x, prep))
    assert out.shape == (B, T, input_size), out.shape

    ref = jax.block_until_ready(ref_forward(x, params))
    np.testing.assert_allclose(np.asarray(out), np.asarray(ref), rtol=1e-4, atol=1e-4)

    print("KERNEL_OK")
</pallas_src>

<mosaic_0001>
module attributes {stable_mosaic.version = 11 : i64} {
  func.func @kernel(%arg0: memref<16x16xf32, #tpu.memory_space<vmem>>, %arg1: memref<16x32xf32, #tpu.memory_space<vmem>>, %arg2: memref<1x32xf32, #tpu.memory_space<vmem>>, %arg3: memref<32x32xf32, #tpu.memory_space<vmem>>, %arg4: memref<1x32xf32, #tpu.memory_space<vmem>>, %arg5: memref<32x128xf32, #tpu.memory_space<vmem>>, %arg6: memref<32x128xf32, #tpu.memory_space<vmem>>, %arg7: memref<1x128xf32, #tpu.memory_space<vmem>>, %arg8: memref<32x128xf32, #tpu.memory_space<vmem>>, %arg9: memref<32x128xf32, #tpu.memory_space<vmem>>, %arg10: memref<1x128xf32, #tpu.memory_space<vmem>>, %arg11: memref<32x128xf32, #tpu.memory_space<vmem>>, %arg12: memref<32x128xf32, #tpu.memory_space<vmem>>, %arg13: memref<1x128xf32, #tpu.memory_space<vmem>>, %arg14: memref<32x128xf32, #tpu.memory_space<vmem>>, %arg15: memref<32x128xf32, #tpu.memory_space<vmem>>, %arg16: memref<1x128xf32, #tpu.memory_space<vmem>>, %arg17: memref<32x32xf32, #tpu.memory_space<vmem>>, %arg18: memref<1x32xf32, #tpu.memory_space<vmem>>, %arg19: memref<32x16xf32, #tpu.memory_space<vmem>>, %arg20: memref<1x16xf32, #tpu.memory_space<vmem>>, %arg21: memref<16x16xf32, #tpu.memory_space<vmem>>, %arg22: memref<16x128xf32, #tpu.memory_space<vmem>>, %arg23: memref<16x32xf32, #tpu.memory_space<vmem>>) attributes {dimension_semantics = [], scalar_prefetch = 0 : i64, scratch_operands = 2 : i64, tpu.core_type = #tpu.core_type<tc>} {
    %c0 = arith.constant 0 : index
    %c0_0 = arith.constant 0 : index
    %0 = vector.load %arg0[%c0, %c0_0] : memref<16x16xf32, #tpu.memory_space<vmem>>, vector<16x16xf32>
    %c0_1 = arith.constant 0 : index
    %c0_2 = arith.constant 0 : index
    %1 = vector.load %arg1[%c0_1, %c0_2] : memref<16x32xf32, #tpu.memory_space<vmem>>, vector<16x32xf32>
    %cst = arith.constant dense<0.000000e+00> : vector<16x32xf32>
    %2 = tpu.matmul %0, %1, %cst {dimension_numbers = #tpu.dot_dimension_numbers<[1], [0], [0], [1], [0, 0, 1, 1], [], []>} : vector<16x16xf32>, vector<16x32xf32>, vector<16x32xf32> -> vector<16x32xf32>
    %c0_3 = arith.constant 0 : index
    %c0_4 = arith.constant 0 : index
    %3 = vector.load %arg2[%c0_3, %c0_4] : memref<1x32xf32, #tpu.memory_space<vmem>>, vector<1x32xf32>
    %4 = vector.broadcast %3 : vector<1x32xf32> to vector<16x32xf32>
    %5 = arith.addf %2, %4 : vector<16x32xf32>
    %cst_5 = arith.constant 0.000000e+00 : f32
    %6 = vector.broadcast %cst_5 : f32 to vector<16x32xf32>
    %7 = arith.maximumf %5, %6 : vector<16x32xf32>
    %c0_6 = arith.constant 0 : index
    %c0_7 = arith.constant 0 : index
    %8 = vector.load %arg3[%c0_6, %c0_7] : memref<32x32xf32, #tpu.memory_space<vmem>>, vector<32x32xf32>
    %cst_8 = arith.constant dense<0.000000e+00> : vector<16x32xf32>
    %9 = tpu.matmul %7, %8, %cst_8 {dimension_numbers = #tpu.dot_dimension_numbers<[1], [0], [0], [1], [0, 0, 1, 1], [], []>} : vector<16x32xf32>, vector<32x32xf32>, vector<16x32xf32> -> vector<16x32xf32>
    %c0_9 = arith.constant 0 : index
    %c0_10 = arith.constant 0 : index
    %10 = vector.load %arg4[%c0_9, %c0_10] : memref<1x32xf32, #tpu.memory_space<vmem>>, vector<1x32xf32>
    %11 = vector.broadcast %10 : vector<1x32xf32> to vector<16x32xf32>
    %12 = arith.addf %9, %11 : vector<16x32xf32>
    %c0_11 = arith.constant 0 : index
    %c0_12 = arith.constant 0 : index
    %13 = vector.load %arg5[%c0_11, %c0_12] : memref<32x128xf32, #tpu.memory_space<vmem>>, vector<32x128xf32>
    %cst_13 = arith.constant dense<0.000000e+00> : vector<16x128xf32>
    %14 = tpu.matmul %12, %13, %cst_13 {dimension_numbers = #tpu.dot_dimension_numbers<[1], [0], [0], [1], [0, 0, 1, 1], [], []>} : vector<16x32xf32>, vector<32x128xf32>, vector<16x128xf32> -> vector<16x128xf32>
    %c0_14 = arith.constant 0 : index
    %c0_15 = arith.constant 0 : index
    %15 = vector.load %arg7[%c0_14, %c0_15] : memref<1x128xf32, #tpu.memory_space<vmem>>, vector<1x128xf32>
    %16 = vector.broadcast %15 : vector<1x128xf32> to vector<16x128xf32>
    %17 = arith.addf %14, %16 : vector<16x128xf32>
    %c0_16 = arith.constant 0 : index
    %c0_17 = arith.constant 0 : index
    %18 = vector.load %arg22[%c0_16, %c0_17] : memref<16x128xf32, #tpu.memory_space<vmem>>, vector<16x128xf32>
    tpu.vector_store %arg22[%c0_16, %c0_17], %17 {strides = array<i32>} : memref<16x128xf32, #tpu.memory_space<vmem>>, vector<16x128xf32>,
    %c0_18 = arith.constant 0 : index
    %c0_19 = arith.constant 0 : index
    %19 = vector.load %arg6[%c0_18, %c0_19] : memref<32x128xf32, #tpu.memory_space<vmem>>, vector<32x128xf32>
    %cst_20 = arith.constant 0.000000e+00 : f32
    %20 = vector.broadcast %cst_20 : f32 to vector<2x32xf32>
    %cst_21 = arith.constant 0.000000e+00 : f32
    %21 = vector.broadcast %cst_21 : f32 to vector<2x32xf32>
    %c0_22 = arith.constant 0 : index
    %c0_23 = arith.constant 0 : index
    %22 = vector.load %arg22[%c0_22, %c0_23] : memref<16x128xf32, #tpu.memory_space<vmem>>, vector<2x128xf32>
    %cst_24 = arith.constant dense<0.000000e+00> : vector<2x128xf32>
    %23 = tpu.matmul %20, %19, %cst_24 {dimension_numbers = #tpu.dot_dimension_numbers<[1], [0], [0], [1], [0, 0, 1, 1], [], []>} : vector<2x32xf32>, vector<32x128xf32>, vector<2x128xf32> -> vector<2x128xf32>
    %24 = arith.addf %22, %23 : vector<2x128xf32>
    %25 = vector.extract_strided_slice %24 {offsets = [0, 0], sizes = [2, 32], strides = [1, 1]} : vector<2x128xf32> to vector<2x32xf32>
    %26 = arith.negf %25 : vector<2x32xf32>
    %27 = math.exp %26 : vector<2x32xf32>
    %cst_25 = arith.constant 1.000000e+00 : f32
    %28 = vector.broadcast %cst_25 : f32 to vector<2x32xf32>
    %29 = arith.addf %28, %27 : vector<2x32xf32>
    %30 = arith.divf %28, %29 : vector<2x32xf32>
    %31 = vector.extract_strided_slice %24 {offsets = [0, 32], sizes = [2, 32], strides = [1, 1]} : vector<2x128xf32> to vector<2x32xf32>
    %32 = arith.negf %31 : vector<2x32xf32>
    %33 = math.exp %32 : vector<2x32xf32>
    %cst_26 = arith.constant 1.000000e+00 : f32
    %34 = vector.broadcast %cst_26 : f32 to vector<2x32xf32>
    %35 = arith.addf %34, %33 : vector<2x32xf32>
    %36 = arith.divf %34, %35 : vector<2x32xf32>
    %37 = vector.extract_strided_slice %24 {offsets = [0, 64], sizes = [2, 32], strides = [1, 1]} : vector<2x128xf32> to vector<2x32xf32>
    %38 = math.tanh %37 : vector<2x32xf32>
    %39 = vector.extract_strided_slice %24 {offsets = [0, 96], sizes = [2, 32], strides = [1, 1]} : vector<2x128xf32> to vector<2x32xf32>
    %40 = arith.negf %39 : vector<2x32xf32>
    %41 = math.exp %40 : vector<2x32xf32>
    %cst_27 = arith.constant 1.000000e+00 : f32
    %42 = vector.broadcast %cst_27 : f32 to vector<2x32xf32>
    %43 = arith.addf %42, %41 : vector<2x32xf32>
    %44 = arith.divf %42, %43 : vector<2x32xf32>
    %45 = arith.mulf %36, %21 : vector<2x32xf32>
    %46 = arith.mulf %30, %38 : vector<2x32xf32>
    %47 = arith.addf %45, %46 : vector<2x32xf32>
    %48 = math.tanh %47 : vector<2x32xf32>
    %49 = arith.mulf %44, %48 : vector<2x32xf32>
    %c0_28 = arith.constant 0 : index
    %c0_29 = arith.constant 0 : index
    %50 = vector.load %arg23[%c0_28, %c0_29] : memref<16x32xf32, #tpu.memory_space<vmem>>, vector<2x32xf32>
    tpu.vector_store %arg23[%c0_28, %c0_29], %49 {strides = array<i32>} : memref<16x32xf32, #tpu.memory_space<vmem>>, vector<2x32xf32>,
    %c2 = arith.constant 2 : index
    %c0_30 = arith.constant 0 : index
    %51 = vector.load %arg22[%c2, %c0_30] : memref<16x128xf32, #tpu.memory_space<vmem>>, vector<2x128xf32>
    %cst_31 = arith.constant dense<0.000000e+00> : vector<2x128xf32>
    %52 = tpu.matmul %49, %19, %cst_31 {dimension_numbers = #tpu.dot_dimension_numbers<[1], [0], [0], [1], [0, 0, 1, 1], [], []>} : vector<2x32xf32>, vector<32x128xf32>, vector<2x128xf32> -> vector<2x128xf32>
    %53 = arith.addf %51, %52 : vector<2x128xf32>
    %54 = vector.extract_strided_slice %53 {offsets = [0, 0], sizes = [2, 32], strides = [1, 1]} : vector<2x128xf32> to vector<2x32xf32>
    %55 = arith.negf %54 : vector<2x32xf32>
    %56 = math.exp %55 : vector<2x32xf32>
    %cst_32 = arith.constant 1.000000e+00 : f32
    %57 = vector.broadcast %cst_32 : f32 to vector<2x32xf32>
    %58 = arith.addf %57, %56 : vector<2x32xf32>
    %59 = arith.divf %57, %58 : vector<2x32xf32>
    %60 = vector.extract_strided_slice %53 {offsets = [0, 32], sizes = [2, 32], strides = [1, 1]} : vector<2x128xf32> to vector<2x32xf32>
    %61 = arith.negf %60 : vector<2x32xf32>
    %62 = math.exp %61 : vector<2x32xf32>
    %cst_33 = arith.constant 1.000000e+00 : f32
    %63 = vector.broadcast %cst_33 : f32 to vector<2x32xf32>
    %64 = arith.addf %63, %62 : vector<2x32xf32>
    %65 = arith.divf %63, %64 : vector<2x32xf32>
    %66 = vector.extract_strided_slice %53 {offsets = [0, 64], sizes = [2, 32], strides = [1, 1]} : vector<2x128xf32> to vector<2x32xf32>
    %67 = math.tanh %66 : vector<2x32xf32>
    %68 = vector.extract_strided_slice %53 {offsets = [0, 96], sizes = [2, 32], strides = [1, 1]} : vector<2x128xf32> to vector<2x32xf32>
    %69 = arith.negf %68 : vector<2x32xf32>
    %70 = math.exp %69 : vector<2x32xf32>
    %cst_34 = arith.constant 1.000000e+00 : f32
    %71 = vector.broadcast %cst_34 : f32 to vector<2x32xf32>
    %72 = arith.addf %71, %70 : vector<2x32xf32>
    %73 = arith.divf %71, %72 : vector<2x32xf32>
    %74 = arith.mulf %65, %47 : vector<2x32xf32>
    %75 = arith.mulf %59, %67 : vector<2x32xf32>
    %76 = arith.addf %74, %75 : vector<2x32xf32>
    %77 = math.tanh %76 : vector<2x32xf32>
    %78 = arith.mulf %73, %77 : vector<2x32xf32>
    %c2_35 = arith.constant 2 : index
    %c0_36 = arith.constant 0 : index
    %79 = vector.load %arg23[%c2_35, %c0_36] : memref<16x32xf32, #tpu.memory_space<vmem>>, vector<2x32xf32>
    tpu.vector_store %arg23[%c2_35, %c0_36], %78 {strides = array<i32>} : memref<16x32xf32, #tpu.memory_space<vmem>>, vector<2x32xf32>,
    %c4 = arith.constant 4 : index
    %c0_37 = arith.constant 0 : index
    %80 = vector.load %arg22[%c4, %c0_37] : memref<16x128xf32, #tpu.memory_space<vmem>>, vector<2x128xf32>
    %cst_38 = arith.constant dense<0.000000e+00> : vector<2x128xf32>
    %81 = tpu.matmul %78, %19, %cst_38 {dimension_numbers = #tpu.dot_dimension_numbers<[1], [0], [0], [1], [0, 0, 1, 1], [], []>} : vector<2x32xf32>, vector<32x128xf32>, vector<2x128xf32> -> vector<2x128xf32>
    %82 = arith.addf %80, %81 : vector<2x128xf32>
    %83 = vector.extract_strided_slice %82 {offsets = [0, 0], sizes = [2, 32], strides = [1, 1]} : vector<2x128xf32> to vector<2x32xf32>
    %84 = arith.negf %83 : vector<2x32xf32>
    %85 = math.exp %84 : vector<2x32xf32>
    %cst_39 = arith.constant 1.000000e+00 : f32
    %86 = vector.broadcast %cst_39 : f32 to vector<2x32xf32>
    %87 = arith.addf %86, %85 : vector<2x32xf32>
    %88 = arith.divf %86, %87 : vector<2x32xf32>
    %89 = vector.extract_strided_slice %82 {offsets = [0, 32], sizes = [2, 32], strides = [1, 1]} : vector<2x128xf32> to vector<2x32xf32>
    %90 = arith.negf %89 : vector<2x32xf32>
    %91 = math.exp %90 : vector<2x32xf32>
    %cst_40 = arith.constant 1.000000e+00 : f32
    %92 = vector.broadcast %cst_40 : f32 to vector<2x32xf32>
    %93 = arith.addf %92, %91 : vector<2x32xf32>
    %94 = arith.divf %92, %93 : vector<2x32xf32>
    %95 = vector.extract_strided_slice %82 {offsets = [0, 64], sizes = [2, 32], strides = [1, 1]} : vector<2x128xf32> to vector<2x32xf32>
    %96 = math.tanh %95 : vector<2x32xf32>
    %97 = vector.extract_strided_slice %82 {offsets = [0, 96], sizes = [2, 32], strides = [1, 1]} : vector<2x128xf32> to vector<2x32xf32>
    %98 = arith.negf %97 : vector<2x32xf32>
    %99 = math.exp %98 : vector<2x32xf32>
    %cst_41 = arith.constant 1.000000e+00 : f32
    %100 = vector.broadcast %cst_41 : f32 to vector<2x32xf32>
    %101 = arith.addf %100, %99 : vector<2x32xf32>
    %102 = arith.divf %100, %101 : vector<2x32xf32>
    %103 = arith.mulf %94, %76 : vector<2x32xf32>
    %104 = arith.mulf %88, %96 : vector<2x32xf32>
    %105 = arith.addf %103, %104 : vector<2x32xf32>
    %106 = math.tanh %105 : vector<2x32xf32>
    %107 = arith.mulf %102, %106 : vector<2x32xf32>
    %c4_42 = arith.constant 4 : index
    %c0_43 = arith.constant 0 : index
    %108 = vector.load %arg23[%c4_42, %c0_43] : memref<16x32xf32, #tpu.memory_space<vmem>>, vector<2x32xf32>
    tpu.vector_store %arg23[%c4_42, %c0_43], %107 {strides = array<i32>} : memref<16x32xf32, #tpu.memory_space<vmem>>, vector<2x32xf32>,
    %c6 = arith.constant 6 : index
    %c0_44 = arith.constant 0 : index
    %109 = vector.load %arg22[%c6, %c0_44] : memref<16x128xf32, #tpu.memory_space<vmem>>, vector<2x128xf32>
    %cst_45 = arith.constant dense<0.000000e+00> : vector<2x128xf32>
    %110 = tpu.matmul %107, %19, %cst_45 {dimension_numbers = #tpu.dot_dimension_numbers<[1], [0], [0], [1], [0, 0, 1, 1], [], []>} : vector<2x32xf32>, vector<32x128xf32>, vector<2x128xf32> -> vector<2x128xf32>
    %111 = arith.addf %109, %110 : vector<2x128xf32>
    %112 = vector.extract_strided_slice %111 {offsets = [0, 0], sizes = [2, 32], strides = [1, 1]} : vector<2x128xf32> to vector<2x32xf32>
    %113 = arith.negf %112 : vector<2x32xf32>
    %114 = math.exp %113 : vector<2x32xf32>
    %cst_46 = arith.constant 1.000000e+00 : f32
    %115 = vector.broadcast %cst_46 : f32 to vector<2x32xf32>
    %116 = arith.addf %115, %114 : vector<2x32xf32>
    %117 = arith.divf %115, %116 : vector<2x32xf32>
    %118 = vector.extract_strided_slice %111 {offsets = [0, 32], sizes = [2, 32], strides = [1, 1]} : vector<2x128xf32> to vector<2x32xf32>
    %119 = arith.negf %118 : vector<2x32xf32>
    %120 = math.exp %119 : vector<2x32xf32>
    %cst_47 = arith.constant 1.000000e+00 : f32
    %121 = vector.broadcast %cst_47 : f32 to vector<2x32xf32>
    %122 = arith.addf %121, %120 : vector<2x32xf32>
    %123 = arith.divf %121, %122 : vector<2x32xf32>
    %124 = vector.extract_strided_slice %111 {offsets = [0, 64], sizes = [2, 32], strides = [1, 1]} : vector<2x128xf32> to vector<2x32xf32>
    %125 = math.tanh %124 : vector<2x32xf32>
    %126 = vector.extract_strided_slice %111 {offsets = [0, 96], sizes = [2, 32], strides = [1, 1]} : vector<2x128xf32> to vector<2x32xf32>
    %127 = arith.negf %126 : vector<2x32xf32>
    %128 = math.exp %127 : vector<2x32xf32>
    %cst_48 = arith.constant 1.000000e+00 : f32
    %129 = vector.broadcast %cst_48 : f32 to vector<2x32xf32>
    %130 = arith.addf %129, %128 : vector<2x32xf32>
    %131 = arith.divf %129, %130 : vector<2x32xf32>
    %132 = arith.mulf %123, %105 : vector<2x32xf32>
    %133 = arith.mulf %117, %125 : vector<2x32xf32>
    %134 = arith.addf %132, %133 : vector<2x32xf32>
    %135 = math.tanh %134 : vector<2x32xf32>
    %136 = arith.mulf %131, %135 : vector<2x32xf32>
    %c6_49 = arith.constant 6 : index
    %c0_50 = arith.constant 0 : index
    %137 = vector.load %arg23[%c6_49, %c0_50] : memref<16x32xf32, #tpu.memory_space<vmem>>, vector<2x32xf32>
    tpu.vector_store %arg23[%c6_49, %c0_50], %136 {strides = array<i32>} : memref<16x32xf32, #tpu.memory_space<vmem>>, vector<2x32xf32>,
    %c8 = arith.constant 8 : index
    %c0_51 = arith.constant 0 : index
    %138 = vector.load %arg22[%c8, %c0_51] : memref<16x128xf32, #tpu.memory_space<vmem>>, vector<2x128xf32>
    %cst_52 = arith.constant dense<0.000000e+00> : vector<2x128xf32>
    %139 = tpu.matmul %136, %19, %cst_52 {dimension_numbers = #tpu.dot_dimension_numbers<[1], [0], [0], [1], [0, 0, 1, 1], [], []>} : vector<2x32xf32>, vector<32x128xf32>, vector<2x128xf32> -> vector<2x128xf32>
    %140 = arith.addf %138, %139 : vector<2x128xf32>
    %141 = vector.extract_strided_slice %140 {offsets = [0, 0], sizes = [2, 32], strides = [1, 1]} : vector<2x128xf32> to vector<2x32xf32>
    %142 = arith.negf %141 : vector<2x32xf32>
    %143 = math.exp %142 : vector<2x32xf32>
    %cst_53 = arith.constant 1.000000e+00 : f32
    %144 = vector.broadcast %cst_53 : f32 to vector<2x32xf32>
    %145 = arith.addf %144, %143 : vector<2x32xf32>
    %146 = arith.divf %144, %145 : vector<2x32xf32>
    %147 = vector.extract_strided_slice %140 {offsets = [0, 32], sizes = [2, 32], strides = [1, 1]} : vector<2x128xf32> to vector<2x32xf32>
    %148 = arith.negf %147 : vector<2x32xf32>
    %149 = math.exp %148 : vector<2x32xf32>
    %cst_54 = arith.constant 1.000000e+00 : f32
    %150 = vector.broadcast %cst_54 : f32 to vector<2x32xf32>
    %151 = arith.addf %150, %149 : vector<2x32xf32>
    %152 = arith.divf %150, %151 : vector<2x32xf32>
    %153 = vector.extract_strided_slice %140 {offsets = [0, 64], sizes = [2, 32], strides = [1, 1]} : vector<2x128xf32> to vector<2x32xf32>
    %154 = math.tanh %153 : vector<2x32xf32>
    %155 = vector.extract_strided_slice %140 {offsets = [0, 96], sizes = [2, 32], strides = [1, 1]} : vector<2x128xf32> to vector<2x32xf32>
    %156 = arith.negf %155 : vector<2x32xf32>
    %157 = math.exp %156 : vector<2x32xf32>
    %cst_55 = arith.constant 1.000000e+00 : f32
    %158 = vector.broadcast %cst_55 : f32 to vector<2x32xf32>
    %159 = arith.addf %158, %157 : vector<2x32xf32>
    %160 = arith.divf %158, %159 : vector<2x32xf32>
    %161 = arith.mulf %152, %134 : vector<2x32xf32>
    %162 = arith.mulf %146, %154 : vector<2x32xf32>
    %163 = arith.addf %161, %162 : vector<2x32xf32>
    %164 = math.tanh %163 : vector<2x32xf32>
    %165 = arith.mulf %160, %164 : vector<2x32xf32>
    %c8_56 = arith.constant 8 : index
    %c0_57 = arith.constant 0 : index
    %166 = vector.load %arg23[%c8_56, %c0_57] : memref<16x32xf32, #tpu.memory_space<vmem>>, vector<2x32xf32>
    tpu.vector_store %arg23[%c8_56, %c0_57], %165 {strides = array<i32>} : memref<16x32xf32, #tpu.memory_space<vmem>>, vector<2x32xf32>,
    %c10 = arith.constant 10 : index
    %c0_58 = arith.constant 0 : index
    %167 = vector.load %arg22[%c10, %c0_58] : memref<16x128xf32, #tpu.memory_space<vmem>>, vector<2x128xf32>
    %cst_59 = arith.constant dense<0.000000e+00> : vector<2x128xf32>
    %168 = tpu.matmul %165, %19, %cst_59 {dimension_numbers = #tpu.dot_dimension_numbers<[1], [0], [0], [1], [0, 0, 1, 1], [], []>} : vector<2x32xf32>, vector<32x128xf32>, vector<2x128xf32> -> vector<2x128xf32>
    %169 = arith.addf %167, %168 : vector<2x128xf32>
    %170 = vector.extract_strided_slice %169 {offsets = [0, 0], sizes = [2, 32], strides = [1, 1]} : vector<2x128xf32> to vector<2x32xf32>
    %171 = arith.negf %170 : vector<2x32xf32>
    %172 = math.exp %171 : vector<2x32xf32>
    %cst_60 = arith.constant 1.000000e+00 : f32
    %173 = vector.broadcast %cst_60 : f32 to vector<2x32xf32>
    %174 = arith.addf %173, %172 : vector<2x32xf32>
    %175 = arith.divf %173, %174 : vector<2x32xf32>
    %176 = vector.extract_strided_slice %169 {offsets = [0, 32], sizes = [2, 32], strides = [1, 1]} : vector<2x128xf32> to vector<2x32xf32>
    %177 = arith.negf %176 : vector<2x32xf32>
    %178 = math.exp %177 : vector<2x32xf32>
    %cst_61 = arith.constant 1.000000e+00 : f32
    %179 = vector.broadcast %cst_61 : f32 to vector<2x32xf32>
    %180 = arith.addf %179, %178 : vector<2x32xf32>
    %181 = arith.divf %179, %180 : vector<2x32xf32>
    %182 = vector.extract_strided_slice %169 {offsets = [0, 64], sizes = [2, 32], strides = [1, 1]} : vector<2x128xf32> to vector<2x32xf32>
    %183 = math.tanh %182 : vector<2x32xf32>
    %184 = vector.extract_strided_slice %169 {offsets = [0, 96], sizes = [2, 32], strides = [1, 1]} : vector<2x128xf32> to vector<2x32xf32>
    %185 = arith.negf %184 : vector<2x32xf32>
    %186 = math.exp %185 : vector<2x32xf32>
    %cst_62 = arith.constant 1.000000e+00 : f32
    %187 = vector.broadcast %cst_62 : f32 to vector<2x32xf32>
    %188 = arith.addf %187, %186 : vector<2x32xf32>
    %189 = arith.divf %187, %188 : vector<2x32xf32>
    %190 = arith.mulf %181, %163 : vector<2x32xf32>
    %191 = arith.mulf %175, %183 : vector<2x32xf32>
    %192 = arith.addf %190, %191 : vector<2x32xf32>
    %193 = math.tanh %192 : vector<2x32xf32>
    %194 = arith.mulf %189, %193 : vector<2x32xf32>
    %c10_63 = arith.constant 10 : index
    %c0_64 = arith.constant 0 : index
    %195 = vector.load %arg23[%c10_63, %c0_64] : memref<16x32xf32, #tpu.memory_space<vmem>>, vector<2x32xf32>
    tpu.vector_store %arg23[%c10_63, %c0_64], %194 {strides = array<i32>} : memref<16x32xf32, #tpu.memory_space<vmem>>, vector<2x32xf32>,
    %c12 = arith.constant 12 : index
    %c0_65 = arith.constant 0 : index
    %196 = vector.load %arg22[%c12, %c0_65] : memref<16x128xf32, #tpu.memory_space<vmem>>, vector<2x128xf32>
    %cst_66 = arith.constant dense<0.000000e+00> : vector<2x128xf32>
    %197 = tpu.matmul %194, %19, %cst_66 {dimension_numbers = #tpu.dot_dimension_numbers<[1], [0], [0], [1], [0, 0, 1, 1], [], []>} : vector<2x32xf32>, vector<32x128xf32>, vector<2x128xf32> -> vector<2x128xf32>
    %198 = arith.addf %196, %197 : vector<2x128xf32>
    %199 = vector.extract_strided_slice %198 {offsets = [0, 0], sizes = [2, 32], strides = [1, 1]} : vector<2x128xf32> to vector<2x32xf32>
    %200 = arith.negf %199 : vector<2x32xf32>
    %201 = math.exp %200 : vector<2x32xf32>
    %cst_67 = arith.constant 1.000000e+00 : f32
    %202 = vector.broadcast %cst_67 : f32 to vector<2x32xf32>
    %203 = arith.addf %202, %201 : vector<2x32xf32>
    %204 = arith.divf %202, %203 : vector<2x32xf32>
    %205 = vector.extract_strided_slice %198 {offsets = [0, 32], sizes = [2, 32], strides = [1, 1]} : vector<2x128xf32> to vector<2x32xf32>
    %206 = arith.negf %205 : vector<2x32xf32>
    %207 = math.exp %206 : vector<2x32xf32>
    %cst_68 = arith.constant 1.000000e+00 : f32
    %208 = vector.broadcast %cst_68 : f32 to vector<2x32xf32>
    %209 = arith.addf %208, %207 : vector<2x32xf32>
    %210 = arith.divf %208, %209 : vector<2x32xf32>
    %211 = vector.extract_strided_slice %198 {offsets = [0, 64], sizes = [2, 32], strides = [1, 1]} : vector<2x128xf32> to vector<2x32xf32>
    %212 = math.tanh %211 : vector<2x32xf32>
    %213 = vector.extract_strided_slice %198 {offsets = [0, 96], sizes = [2, 32], strides = [1, 1]} : vector<2x128xf32> to vector<2x32xf32>
    %214 = arith.negf %213 : vector<2x32xf32>
    %215 = math.exp %214 : vector<2x32xf32>
    %cst_69 = arith.constant 1.000000e+00 : f32
    %216 = vector.broadcast %cst_69 : f32 to vector<2x32xf32>
    %217 = arith.addf %216, %215 : vector<2x32xf32>
    %218 = arith.divf %216, %217 : vector<2x32xf32>
    %219 = arith.mulf %210, %192 : vector<2x32xf32>
    %220 = arith.mulf %204, %212 : vector<2x32xf32>
    %221 = arith.addf %219, %220 : vector<2x32xf32>
    %222 = math.tanh %221 : vector<2x32xf32>
    %223 = arith.mulf %218, %222 : vector<2x32xf32>
    %c12_70 = arith.constant 12 : index
    %c0_71 = arith.constant 0 : index
    %224 = vector.load %arg23[%c12_70, %c0_71] : memref<16x32xf32, #tpu.memory_space<vmem>>, vector<2x32xf32>
    tpu.vector_store %arg23[%c12_70, %c0_71], %223 {strides = array<i32>} : memref<16x32xf32, #tpu.memory_space<vmem>>, vector<2x32xf32>,
    %c14 = arith.constant 14 : index
    %c0_72 = arith.constant 0 : index
    %225 = vector.load %arg22[%c14, %c0_72] : memref<16x128xf32, #tpu.memory_space<vmem>>, vector<2x128xf32>
    %cst_73 = arith.constant dense<0.000000e+00> : vector<2x128xf32>
    %226 = tpu.matmul %223, %19, %cst_73 {dimension_numbers = #tpu.dot_dimension_numbers<[1], [0], [0], [1], [0, 0, 1, 1], [], []>} : vector<2x32xf32>, vector<32x128xf32>, vector<2x128xf32> -> vector<2x128xf32>
    %227 = arith.addf %225, %226 : vector<2x128xf32>
    %228 = vector.extract_strided_slice %227 {offsets = [0, 0], sizes = [2, 32], strides = [1, 1]} : vector<2x128xf32> to vector<2x32xf32>
    %229 = arith.negf %228 : vector<2x32xf32>
    %230 = math.exp %229 : vector<2x32xf32>
    %cst_74 = arith.constant 1.000000e+00 : f32
    %231 = vector.broadcast %cst_74 : f32 to vector<2x32xf32>
    %232 = arith.addf %231, %230 : vector<2x32xf32>
    %233 = arith.divf %231, %232 : vector<2x32xf32>
    %234 = vector.extract_strided_slice %227 {offsets = [0, 32], sizes = [2, 32], strides = [1, 1]} : vector<2x128xf32> to vector<2x32xf32>
    %235 = arith.negf %234 : vector<2x32xf32>
    %236 = math.exp %235 : vector<2x32xf32>
    %cst_75 = arith.constant 1.000000e+00 : f32
    %237 = vector.broadcast %cst_75 : f32 to vector<2x32xf32>
    %238 = arith.addf %237, %236 : vector<2x32xf32>
    %239 = arith.divf %237, %238 : vector<2x32xf32>
    %240 = vector.extract_strided_slice %227 {offsets = [0, 64], sizes = [2, 32], strides = [1, 1]} : vector<2x128xf32> to vector<2x32xf32>
    %241 = math.tanh %240 : vector<2x32xf32>
    %242 = vector.extract_strided_slice %227 {offsets = [0, 96], sizes = [2, 32], strides = [1, 1]} : vector<2x128xf32> to vector<2x32xf32>
    %243 = arith.negf %242 : vector<2x32xf32>
    %244 = math.exp %243 : vector<2x32xf32>
    %cst_76 = arith.constant 1.000000e+00 : f32
    %245 = vector.broadcast %cst_76 : f32 to vector<2x32xf32>
    %246 = arith.addf %245, %244 : vector<2x32xf32>
    %247 = arith.divf %245, %246 : vector<2x32xf32>
    %248 = arith.mulf %239, %221 : vector<2x32xf32>
    %249 = arith.mulf %233, %241 : vector<2x32xf32>
    %250 = arith.addf %248, %249 : vector<2x32xf32>
    %251 = math.tanh %250 : vector<2x32xf32>
    %252 = arith.mulf %247, %251 : vector<2x32xf32>
    %c14_77 = arith.constant 14 : index
    %c0_78 = arith.constant 0 : index
    %253 = vector.load %arg23[%c14_77, %c0_78] : memref<16x32xf32, #tpu.memory_space<vmem>>, vector<2x32xf32>
    tpu.vector_store %arg23[%c14_77, %c0_78], %252 {strides = array<i32>} : memref<16x32xf32, #tpu.memory_space<vmem>>, vector<2x32xf32>,
    %c0_79 = arith.constant 0 : index
    %c0_80 = arith.constant 0 : index
    %254 = vector.load %arg23[%c0_79, %c0_80] : memref<16x32xf32, #tpu.memory_space<vmem>>, vector<16x32xf32>
    %c0_81 = arith.constant 0 : index
    %c0_82 = arith.constant 0 : index
    %255 = vector.load %arg8[%c0_81, %c0_82] : memref<32x128xf32, #tpu.memory_space<vmem>>, vector<32x128xf32>
    %cst_83 = arith.constant dense<0.000000e+00> : vector<16x128xf32>
    %256 = tpu.matmul %254, %255, %cst_83 {dimension_numbers = #tpu.dot_dimension_numbers<[1], [0], [0], [1], [0, 0, 1, 1], [], []>} : vector<16x32xf32>, vector<32x128xf32>, vector<16x128xf32> -> vector<16x128xf32>
    %c0_84 = arith.constant 0 : index
    %c0_85 = arith.constant 0 : index
    %257 = vector.load %arg10[%c0_84, %c0_85] : memref<1x128xf32, #tpu.memory_space<vmem>>, vector<1x128xf32>
    %258 = vector.broadcast %257 : vector<1x128xf32> to vector<16x128xf32>
    %259 = arith.addf %256, %258 : vector<16x128xf32>
    %c0_86 = arith.constant 0 : index
    %c0_87 = arith.constant 0 : index
    %260 = vector.load %arg22[%c0_86, %c0_87] : memref<16x128xf32, #tpu.memory_space<vmem>>, vector<16x128xf32>
    tpu.vector_store %arg22[%c0_86, %c0_87], %259 {strides = array<i32>} : memref<16x128xf32, #tpu.memory_space<vmem>>, vector<16x128xf32>,
    %c0_88 = arith.constant 0 : index
    %c0_89 = arith.constant 0 : index
    %261 = vector.load %arg9[%c0_88, %c0_89] : memref<32x128xf32, #tpu.memory_space<vmem>>, vector<32x128xf32>
    %cst_90 = arith.constant 0.000000e+00 : f32
    %262 = vector.broadcast %cst_90 : f32 to vector<2x32xf32>
    %cst_91 = arith.constant 0.000000e+00 : f32
    %263 = vector.broadcast %cst_91 : f32 to vector<2x32xf32>
    %c0_92 = arith.constant 0 : index
    %c0_93 = arith.constant 0 : index
    %264 = vector.load %arg22[%c0_92, %c0_93] : memref<16x128xf32, #tpu.memory_space<vmem>>, vector<2x128xf32>
    %cst_94 = arith.constant dense<0.000000e+00> : vector<2x128xf32>
    %265 = tpu.matmul %262, %261, %cst_94 {dimension_numbers = #tpu.dot_dimension_numbers<[1], [0], [0], [1], [0, 0, 1, 1], [], []>} : vector<2x32xf32>, vector<32x128xf32>, vector<2x128xf32> -> vector<2x128xf32>
    %266 = arith.addf %264, %265 : vector<2x128xf32>
    %267 = vector.extract_strided_slice %266 {offsets = [0, 0], sizes = [2, 32], strides = [1, 1]} : vector<2x128xf32> to vector<2x32xf32>
    %268 = arith.negf %267 : vector<2x32xf32>
    %269 = math.exp %268 : vector<2x32xf32>
    %cst_95 = arith.constant 1.000000e+00 : f32
    %270 = vector.broadcast %cst_95 : f32 to vector<2x32xf32>
    %271 = arith.addf %270, %269 : vector<2x32xf32>
    %272 = arith.divf %270, %271 : vector<2x32xf32>
    %273 = vector.extract_strided_slice %266 {offsets = [0, 32], sizes = [2, 32], strides = [1, 1]} : vector<2x128xf32> to vector<2x32xf32>
    %274 = arith.negf %273 : vector<2x32xf32>
    %275 = math.exp %274 : vector<2x32xf32>
    %cst_96 = arith.constant 1.000000e+00 : f32
    %276 = vector.broadcast %cst_96 : f32 to vector<2x32xf32>
    %277 = arith.addf %276, %275 : vector<2x32xf32>
    %278 = arith.divf %276, %277 : vector<2x32xf32>
    %279 = vector.extract_strided_slice %266 {offsets = [0, 64], sizes = [2, 32], strides = [1, 1]} : vector<2x128xf32> to vector<2x32xf32>
    %280 = math.tanh %279 : vector<2x32xf32>
    %281 = vector.extract_strided_slice %266 {offsets = [0, 96], sizes = [2, 32], strides = [1, 1]} : vector<2x128xf32> to vector<2x32xf32>
    %282 = arith.negf %281 : vector<2x32xf32>
    %283 = math.exp %282 : vector<2x32xf32>
    %cst_97 = arith.constant 1.000000e+00 : f32
    %284 = vector.broadcast %cst_97 : f32 to vector<2x32xf32>
    %285 = arith.addf %284, %283 : vector<2x32xf32>
    %286 = arith.divf %284, %285 : vector<2x32xf32>
    %287 = arith.mulf %278, %263 : vector<2x32xf32>
    %288 = arith.mulf %272, %280 : vector<2x32xf32>
    %289 = arith.addf %287, %288 : vector<2x32xf32>
    %290 = math.tanh %289 : vector<2x32xf32>
    %291 = arith.mulf %286, %290 : vector<2x32xf32>
    %c0_98 = arith.constant 0 : index
    %c0_99 = arith.constant 0 : index
    %292 = vector.load %arg23[%c0_98, %c0_99] : memref<16x32xf32, #tpu.memory_space<vmem>>, vector<2x32xf32>
    tpu.vector_store %arg23[%c0_98, %c0_99], %291 {strides = array<i32>} : memref<16x32xf32, #tpu.memory_space<vmem>>, vector<2x32xf32>,
    %c2_100 = arith.constant 2 : index
    %c0_101 = arith.constant 0 : index
    %293 = vector.load %arg22[%c2_100, %c0_101] : memref<16x128xf32, #tpu.memory_space<vmem>>, vector<2x128xf32>
    %cst_102 = arith.constant dense<0.000000e+00> : vector<2x128xf32>
    %294 = tpu.matmul %291, %261, %cst_102 {dimension_numbers = #tpu.dot_dimension_numbers<[1], [0], [0], [1], [0, 0, 1, 1], [], []>} : vector<2x32xf32>, vector<32x128xf32>, vector<2x128xf32> -> vector<2x128xf32>
    %295 = arith.addf %293, %294 : vector<2x128xf32>
    %296 = vector.extract_strided_slice %295 {offsets = [0, 0], sizes = [2, 32], strides = [1, 1]} : vector<2x128xf32> to vector<2x32xf32>
    %297 = arith.negf %296 : vector<2x32xf32>
    %298 = math.exp %297 : vector<2x32xf32>
    %cst_103 = arith.constant 1.000000e+00 : f32
    %299 = vector.broadcast %cst_103 : f32 to vector<2x32xf32>
    %300 = arith.addf %299, %298 : vector<2x32xf32>
    %301 = arith.divf %299, %300 : vector<2x32xf32>
    %302 = vector.extract_strided_slice %295 {offsets = [0, 32], sizes = [2, 32], strides = [1, 1]} : vector<2x128xf32> to vector<2x32xf32>
    %303 = arith.negf %302 : vector<2x32xf32>
    %304 = math.exp %303 : vector<2x32xf32>
    %cst_104 = arith.constant 1.000000e+00 : f32
    %305 = vector.broadcast %cst_104 : f32 to vector<2x32xf32>
    %306 = arith.addf %305, %304 : vector<2x32xf32>
    %307 = arith.divf %305, %306 : vector<2x32xf32>
    %308 = vector.extract_strided_slice %295 {offsets = [0, 64], sizes = [2, 32], strides = [1, 1]} : vector<2x128xf32> to vector<2x32xf32>
    %309 = math.tanh %308 : vector<2x32xf32>
    %310 = vector.extract_strided_slice %295 {offsets = [0, 96], sizes = [2, 32], strides = [1, 1]} : vector<2x128xf32> to vector<2x32xf32>
    %311 = arith.negf %310 : vector<2x32xf32>
    %312 = math.exp %311 : vector<2x32xf32>
    %cst_105 = arith.constant 1.000000e+00 : f32
    %313 = vector.broadcast %cst_105 : f32 to vector<2x32xf32>
    %314 = arith.addf %313, %312 : vector<2x32xf32>
    %315 = arith.divf %313, %314 : vector<2x32xf32>
    %316 = arith.mulf %307, %289 : vector<2x32xf32>
    %317 = arith.mulf %301, %309 : vector<2x32xf32>
    %318 = arith.addf %316, %317 : vector<2x32xf32>
    %319 = math.tanh %318 : vector<2x32xf32>
    %320 = arith.mulf %315, %319 : vector<2x32xf32>
    %c2_106 = arith.constant 2 : index
    %c0_107 = arith.constant 0 : index
    %321 = vector.load %arg23[%c2_106, %c0_107] : memref<16x32xf32, #tpu.memory_space<vmem>>, vector<2x32xf32>
    tpu.vector_store %arg23[%c2_106, %c0_107], %320 {strides = array<i32>} : memref<16x32xf32, #tpu.memory_space<vmem>>, vector<2x32xf32>,
    %c4_108 = arith.constant 4 : index
    %c0_109 = arith.constant 0 : index
    %322 = vector.load %arg22[%c4_108, %c0_109] : memref<16x128xf32, #tpu.memory_space<vmem>>, vector<2x128xf32>
    %cst_110 = arith.constant dense<0.000000e+00> : vector<2x128xf32>
    %323 = tpu.matmul %320, %261, %cst_110 {dimension_numbers = #tpu.dot_dimension_numbers<[1], [0], [0], [1], [0, 0, 1, 1], [], []>} : vector<2x32xf32>, vector<32x128xf32>, vector<2x128xf32> -> vector<2x128xf32>
    %324 = arith.addf %322, %323 : vector<2x128xf32>
    %325 = vector.extract_strided_slice %324 {offsets = [0, 0], sizes = [2, 32], strides = [1, 1]} : vector<2x128xf32> to vector<2x32xf32>
    %326 = arith.negf %325 : vector<2x32xf32>
    %327 = math.exp %326 : vector<2x32xf32>
    %cst_111 = arith.constant 1.000000e+00 : f32
    %328 = vector.broadcast %cst_111 : f32 to vector<2x32xf32>
    %329 = arith.addf %328, %327 : vector<2x32xf32>
    %330 = arith.divf %328, %329 : vector<2x32xf32>
    %331 = vector.extract_strided_slice %324 {offsets = [0, 32], sizes = [2, 32], strides = [1, 1]} : vector<2x128xf32> to vector<2x32xf32>
    %332 = arith.negf %331 : vector<2x32xf32>
    %333 = math.exp %332 : vector<2x32xf32>
    %cst_112 = arith.constant 1.000000e+00 : f32
    %334 = vector.broadcast %cst_112 : f32 to vector<2x32xf32>
    %335 = arith.addf %334, %333 : vector<2x32xf32>
    %336 = arith.divf %334, %335 : vector<2x32xf32>
    %337 = vector.extract_strided_slice %324 {offsets = [0, 64], sizes = [2, 32], strides = [1, 1]} : vector<2x128xf32> to vector<2x32xf32>
    %338 = math.tanh %337 : vector<2x32xf32>
    %339 = vector.extract_strided_slice %324 {offsets = [0, 96], sizes = [2, 32], strides = [1, 1]} : vector<2x128xf32> to vector<2x32xf32>
    %340 = arith.negf %339 : vector<2x32xf32>
    %341 = math.exp %340 : vector<2x32xf32>
    %cst_113 = arith.constant 1.000000e+00 : f32
    %342 = vector.broadcast %cst_113 : f32 to vector<2x32xf32>
    %343 = arith.addf %342, %341 : vector<2x32xf32>
    %344 = arith.divf %342, %343 : vector<2x32xf32>
    %345 = arith.mulf %336, %318 : vector<2x32xf32>
    %346 = arith.mulf %330, %338 : vector<2x32xf32>
    %347 = arith.addf %345, %346 : vector<2x32xf32>
    %348 = math.tanh %347 : vector<2x32xf32>
    %349 = arith.mulf %344, %348 : vector<2x32xf32>
    %c4_114 = arith.constant 4 : index
    %c0_115 = arith.constant 0 : index
    %350 = vector.load %arg23[%c4_114, %c0_115] : memref<16x32xf32, #tpu.memory_space<vmem>>, vector<2x32xf32>
    tpu.vector_store %arg23[%c4_114, %c0_115], %349 {strides = array<i32>} : memref<16x32xf32, #tpu.memory_space<vmem>>, vector<2x32xf32>,
    %c6_116 = arith.constant 6 : index
    %c0_117 = arith.constant 0 : index
    %351 = vector.load %arg22[%c6_116, %c0_117] : memref<16x128xf32, #tpu.memory_space<vmem>>, vector<2x128xf32>
    %cst_118 = arith.constant dense<0.000000e+00> : vector<2x128xf32>
    %352 = tpu.matmul %349, %261, %cst_118 {dimension_numbers = #tpu.dot_dimension_numbers<[1], [0], [0], [1], [0, 0, 1, 1], [], []>} : vector<2x32xf32>, vector<32x128xf32>, vector<2x128xf32> -> vector<2x128xf32>
    %353 = arith.addf %351, %352 : vector<2x128xf32>
    %354 = vector.extract_strided_slice %353 {offsets = [0, 0], sizes = [2, 32], strides = [1, 1]} : vector<2x128xf32> to vector<2x32xf32>
    %355 = arith.negf %354 : vector<2x32xf32>
    %356 = math.exp %355 : vector<2x32xf32>
    %cst_119 = arith.constant 1.000000e+00 : f32
    %357 = vector.broadcast %cst_119 : f32 to vector<2x32xf32>
    %358 = arith.addf %357, %356 : vector<2x32xf32>
    %359 = arith.divf %357, %358 : vector<2x32xf32>
    %360 = vector.extract_strided_slice %353 {offsets = [0, 32], sizes = [2, 32], strides = [1, 1]} : vector<2x128xf32> to vector<2x32xf32>
    %361 = arith.negf %360 : vector<2x32xf32>
    %362 = math.exp %361 : vector<2x32xf32>
    %cst_120 = arith.constant 1.000000e+00 : f32
    %363 = vector.broadcast %cst_120 : f32 to vector<2x32xf32>
    %364 = arith.addf %363, %362 : vector<2x32xf32>
    %365 = arith.divf %363, %364 : vector<2x32xf32>
    %366 = vector.extract_strided_slice %353 {offsets = [0, 64], sizes = [2, 32], strides = [1, 1]} : vector<2x128xf32> to vector<2x32xf32>
    %367 = math.tanh %366 : vector<2x32xf32>
    %368 = vector.extract_strided_slice %353 {offsets = [0, 96], sizes = [2, 32], strides = [1, 1]} : vector<2x128xf32> to vector<2x32xf32>
    %369 = arith.negf %368 : vector<2x32xf32>
    %370 = math.exp %369 : vector<2x32xf32>
    %cst_121 = arith.constant 1.000000e+00 : f32
    %371 = vector.broadcast %cst_121 : f32 to vector<2x32xf32>
    %372 = arith.addf %371, %370 : vector<2x32xf32>
    %373 = arith.divf %371, %372 : vector<2x32xf32>
    %374 = arith.mulf %365, %347 : vector<2x32xf32>
    %375 = arith.mulf %359, %367 : vector<2x32xf32>
    %376 = arith.addf %374, %375 : vector<2x32xf32>
    %377 = math.tanh %376 : vector<2x32xf32>
    %378 = arith.mulf %373, %377 : vector<2x32xf32>
    %c6_122 = arith.constant 6 : index
    %c0_123 = arith.constant 0 : index
    %379 = vector.load %arg23[%c6_122, %c0_123] : memref<16x32xf32, #tpu.memory_space<vmem>>, vector<2x32xf32>
    tpu.vector_store %arg23[%c6_122, %c0_123], %378 {strides = array<i32>} : memref<16x32xf32, #tpu.memory_space<vmem>>, vector<2x32xf32>,
    %c8_124 = arith.constant 8 : index
    %c0_125 = arith.constant 0 : index
    %380 = vector.load %arg22[%c8_124, %c0_125] : memref<16x128xf32, #tpu.memory_space<vmem>>, vector<2x128xf32>
    %cst_126 = arith.constant dense<0.000000e+00> : vector<2x128xf32>
    %381 = tpu.matmul %378, %261, %cst_126 {dimension_numbers = #tpu.dot_dimension_numbers<[1], [0], [0], [1], [0, 0, 1, 1], [], []>} : vector<2x32xf32>, vector<32x128xf32>, vector<2x128xf32> -> vector<2x128xf32>
    %382 = arith.addf %380, %381 : vector<2x128xf32>
    %383 = vector.extract_strided_slice %382 {offsets = [0, 0], sizes = [2, 32], strides = [1, 1]} : vector<2x128xf32> to vector<2x32xf32>
    %384 = arith.negf %383 : vector<2x32xf32>
    %385 = math.exp %384 : vector<2x32xf32>
    %cst_127 = arith.constant 1.000000e+00 : f32
    %386 = vector.broadcast %cst_127 : f32 to vector<2x32xf32>
    %387 = arith.addf %386, %385 : vector<2x32xf32>
    %388 = arith.divf %386, %387 : vector<2x32xf32>
    %389 = vector.extract_strided_slice %382 {offsets = [0, 32], sizes = [2, 32], strides = [1, 1]} : vector<2x128xf32> to vector<2x32xf32>
    %390 = arith.negf %389 : vector<2x32xf32>
    %391 = math.exp %390 : vector<2x32xf32>
    %cst_128 = arith.constant 1.000000e+00 : f32
    %392 = vector.broadcast %cst_128 : f32 to vector<2x32xf32>
    %393 = arith.addf %392, %391 : vector<2x32xf32>
    %394 = arith.divf %392, %393 : vector<2x32xf32>
    %395 = vector.extract_strided_slice %382 {offsets = [0, 64], sizes = [2, 32], strides = [1, 1]} : vector<2x128xf32> to vector<2x32xf32>
    %396 = math.tanh %395 : vector<2x32xf32>
    %397 = vector.extract_strided_slice %382 {offsets = [0, 96], sizes = [2, 32], strides = [1, 1]} : vector<2x128xf32> to vector<2x32xf32>
    %398 = arith.negf %397 : vector<2x32xf32>
    %399 = math.exp %398 : vector<2x32xf32>
    %cst_129 = arith.constant 1.000000e+00 : f32
    %400 = vector.broadcast %cst_129 : f32 to vector<2x32xf32>
    %401 = arith.addf %400, %399 : vector<2x32xf32>
    %402 = arith.divf %400, %401 : vector<2x32xf32>
    %403 = arith.mulf %394, %376 : vector<2x32xf32>
    %404 = arith.mulf %388, %396 : vector<2x32xf32>
    %405 = arith.addf %403, %404 : vector<2x32xf32>
    %406 = math.tanh %405 : vector<2x32xf32>
    %407 = arith.mulf %402, %406 : vector<2x32xf32>
    %c8_130 = arith.constant 8 : index
    %c0_131 = arith.constant 0 : index
    %408 = vector.load %arg23[%c8_130, %c0_131] : memref<16x32xf32, #tpu.memory_space<vmem>>, vector<2x32xf32>
    tpu.vector_store %arg23[%c8_130, %c0_131], %407 {strides = array<i32>} : memref<16x32xf32, #tpu.memory_space<vmem>>, vector<2x32xf32>,
    %c10_132 = arith.constant 10 : index
    %c0_133 = arith.constant 0 : index
    %409 = vector.load %arg22[%c10_132, %c0_133] : memref<16x128xf32, #tpu.memory_space<vmem>>, vector<2x128xf32>
    %cst_134 = arith.constant dense<0.000000e+00> : vector<2x128xf32>
    %410 = tpu.matmul %407, %261, %cst_134 {dimension_numbers = #tpu.dot_dimension_numbers<[1], [0], [0], [1], [0, 0, 1, 1], [], []>} : vector<2x32xf32>, vector<32x128xf32>, vector<2x128xf32> -> vector<2x128xf32>
    %411 = arith.addf %409, %410 : vector<2x128xf32>
    %412 = vector.extract_strided_slice %411 {offsets = [0, 0], sizes = [2, 32], strides = [1, 1]} : vector<2x128xf32> to vector<2x32xf32>
    %413 = arith.negf %412 : vector<2x32xf32>
    %414 = math.exp %413 : vector<2x32xf32>
    %cst_135 = arith.constant 1.000000e+00 : f32
    %415 = vector.broadcast %cst_135 : f32 to vector<2x32xf32>
    %416 = arith.addf %415, %414 : vector<2x32xf32>
    %417 = arith.divf %415, %416 : vector<2x32xf32>
    %418 = vector.extract_strided_slice %411 {offsets = [0, 32], sizes = [2, 32], strides = [1, 1]} : vector<2x128xf32> to vector<2x32xf32>
    %419 = arith.negf %418 : vector<2x32xf32>
    %420 = math.exp %419 : vector<2x32xf32>
    %cst_136 = arith.constant 1.000000e+00 : f32
    %421 = vector.broadcast %cst_136 : f32 to vector<2x32xf32>
    %422 = arith.addf %421, %420 : vector<2x32xf32>
    %423 = arith.divf %421, %422 : vector<2x32xf32>
    %424 = vector.extract_strided_slice %411 {offsets = [0, 64], sizes = [2, 32], strides = [1, 1]} : vector<2x128xf32> to vector<2x32xf32>
    %425 = math.tanh %424 : vector<2x32xf32>
    %426 = vector.extract_strided_slice %411 {offsets = [0, 96], sizes = [2, 32], strides = [1, 1]} : vector<2x128xf32> to vector<2x32xf32>
    %427 = arith.negf %426 : vector<2x32xf32>
    %428 = math.exp %427 : vector<2x32xf32>
    %cst_137 = arith.constant 1.000000e+00 : f32
    %429 = vector.broadcast %cst_137 : f32 to vector<2x32xf32>
    %430 = arith.addf %429, %428 : vector<2x32xf32>
    %431 = arith.divf %429, %430 : vector<2x32xf32>
    %432 = arith.mulf %423, %405 : vector<2x32xf32>
    %433 = arith.mulf %417, %425 : vector<2x32xf32>
    %434 = arith.addf %432, %433 : vector<2x32xf32>
    %435 = math.tanh %434 : vector<2x32xf32>
    %436 = arith.mulf %431, %435 : vector<2x32xf32>
    %c10_138 = arith.constant 10 : index
    %c0_139 = arith.constant 0 : index
    %437 = vector.load %arg23[%c10_138, %c0_139] : memref<16x32xf32, #tpu.memory_space<vmem>>, vector<2x32xf32>
    tpu.vector_store %arg23[%c10_138, %c0_139], %436 {strides = array<i32>} : memref<16x32xf32, #tpu.memory_space<vmem>>, vector<2x32xf32>,
    %c12_140 = arith.constant 12 : index
    %c0_141 = arith.constant 0 : index
    %438 = vector.load %arg22[%c12_140, %c0_141] : memref<16x128xf32, #tpu.memory_space<vmem>>, vector<2x128xf32>
    %cst_142 = arith.constant dense<0.000000e+00> : vector<2x128xf32>
    %439 = tpu.matmul %436, %261, %cst_142 {dimension_numbers = #tpu.dot_dimension_numbers<[1], [0], [0], [1], [0, 0, 1, 1], [], []>} : vector<2x32xf32>, vector<32x128xf32>, vector<2x128xf32> -> vector<2x128xf32>
    %440 = arith.addf %438, %439 : vector<2x128xf32>
    %441 = vector.extract_strided_slice %440 {offsets = [0, 0], sizes = [2, 32], strides = [1, 1]} : vector<2x128xf32> to vector<2x32xf32>
    %442 = arith.negf %441 : vector<2x32xf32>
    %443 = math.exp %442 : vector<2x32xf32>
    %cst_143 = arith.constant 1.000000e+00 : f32
    %444 = vector.broadcast %cst_143 : f32 to vector<2x32xf32>
    %445 = arith.addf %444, %443 : vector<2x32xf32>
    %446 = arith.divf %444, %445 : vector<2x32xf32>
    %447 = vector.extract_strided_slice %440 {offsets = [0, 32], sizes = [2, 32], strides = [1, 1]} : vector<2x128xf32> to vector<2x32xf32>
    %448 = arith.negf %447 : vector<2x32xf32>
    %449 = math.exp %448 : vector<2x32xf32>
    %cst_144 = arith.constant 1.000000e+00 : f32
    %450 = vector.broadcast %cst_144 : f32 to vector<2x32xf32>
    %451 = arith.addf %450, %449 : vector<2x32xf32>
    %452 = arith.divf %450, %451 : vector<2x32xf32>
    %453 = vector.extract_strided_slice %440 {offsets = [0, 64], sizes = [2, 32], strides = [1, 1]} : vector<2x128xf32> to vector<2x32xf32>
    %454 = math.tanh %453 : vector<2x32xf32>
    %455 = vector.extract_strided_slice %440 {offsets = [0, 96], sizes = [2, 32], strides = [1, 1]} : vector<2x128xf32> to vector<2x32xf32>
    %456 = arith.negf %455 : vector<2x32xf32>
    %457 = math.exp %456 : vector<2x32xf32>
    %cst_145 = arith.constant 1.000000e+00 : f32
    %458 = vector.broadcast %cst_145 : f32 to vector<2x32xf32>
    %459 = arith.addf %458, %457 : vector<2x32xf32>
    %460 = arith.divf %458, %459 : vector<2x32xf32>
    %461 = arith.mulf %452, %434 : vector<2x32xf32>
    %462 = arith.mulf %446, %454 : vector<2x32xf32>
    %463 = arith.addf %461, %462 : vector<2x32xf32>
    %464 = math.tanh %463 : vector<2x32xf32>
    %465 = arith.mulf %460, %464 : vector<2x32xf32>
    %c12_146 = arith.constant 12 : index
    %c0_147 = arith.constant 0 : index
    %466 = vector.load %arg23[%c12_146, %c0_147] : memref<16x32xf32, #tpu.memory_space<vmem>>, vector<2x32xf32>
    tpu.vector_store %arg23[%c12_146, %c0_147], %465 {strides = array<i32>} : memref<16x32xf32, #tpu.memory_space<vmem>>, vector<2x32xf32>,
    %c14_148 = arith.constant 14 : index
    %c0_149 = arith.constant 0 : index
    %467 = vector.load %arg22[%c14_148, %c0_149] : memref<16x128xf32, #tpu.memory_space<vmem>>, vector<2x128xf32>
    %cst_150 = arith.constant dense<0.000000e+00> : vector<2x128xf32>
    %468 = tpu.matmul %465, %261, %cst_150 {dimension_numbers = #tpu.dot_dimension_numbers<[1], [0], [0], [1], [0, 0, 1, 1], [], []>} : vector<2x32xf32>, vector<32x128xf32>, vector<2x128xf32> -> vector<2x128xf32>
    %469 = arith.addf %467, %468 : vector<2x128xf32>
    %470 = vector.extract_strided_slice %469 {offsets = [0, 0], sizes = [2, 32], strides = [1, 1]} : vector<2x128xf32> to vector<2x32xf32>
    %471 = arith.negf %470 : vector<2x32xf32>
    %472 = math.exp %471 : vector<2x32xf32>
    %cst_151 = arith.constant 1.000000e+00 : f32
    %473 = vector.broadcast %cst_151 : f32 to vector<2x32xf32>
    %474 = arith.addf %473, %472 : vector<2x32xf32>
    %475 = arith.divf %473, %474 : vector<2x32xf32>
    %476 = vector.extract_strided_slice %469 {offsets = [0, 32], sizes = [2, 32], strides = [1, 1]} : vector<2x128xf32> to vector<2x32xf32>
    %477 = arith.negf %476 : vector<2x32xf32>
    %478 = math.exp %477 : vector<2x32xf32>
    %cst_152 = arith.constant 1.000000e+00 : f32
    %479 = vector.broadcast %cst_152 : f32 to vector<2x32xf32>
    %480 = arith.addf %479, %478 : vector<2x32xf32>
    %481 = arith.divf %479, %480 : vector<2x32xf32>
    %482 = vector.extract_strided_slice %469 {offsets = [0, 64], sizes = [2, 32], strides = [1, 1]} : vector<2x128xf32> to vector<2x32xf32>
    %483 = math.tanh %482 : vector<2x32xf32>
    %484 = vector.extract_strided_slice %469 {offsets = [0, 96], sizes = [2, 32], strides = [1, 1]} : vector<2x128xf32> to vector<2x32xf32>
    %485 = arith.negf %484 : vector<2x32xf32>
    %486 = math.exp %485 : vector<2x32xf32>
    %cst_153 = arith.constant 1.000000e+00 : f32
    %487 = vector.broadcast %cst_153 : f32 to vector<2x32xf32>
    %488 = arith.addf %487, %486 : vector<2x32xf32>
    %489 = arith.divf %487, %488 : vector<2x32xf32>
    %490 = arith.mulf %481, %463 : vector<2x32xf32>
    %491 = arith.mulf %475, %483 : vector<2x32xf32>
    %492 = arith.addf %490, %491 : vector<2x32xf32>
    %493 = math.tanh %492 : vector<2x32xf32>
    %494 = arith.mulf %489, %493 : vector<2x32xf32>
    %c14_154 = arith.constant 14 : index
    %c0_155 = arith.constant 0 : index
    %495 = vector.load %arg23[%c14_154, %c0_155] : memref<16x32xf32, #tpu.memory_space<vmem>>, vector<2x32xf32>
    tpu.vector_store %arg23[%c14_154, %c0_155], %494 {strides = array<i32>} : memref<16x32xf32, #tpu.memory_space<vmem>>, vector<2x32xf32>,
    %c0_156 = arith.constant 0 : index
    %c0_157 = arith.constant 0 : index
    %496 = vector.load %arg23[%c0_156, %c0_157] : memref<16x32xf32, #tpu.memory_space<vmem>>, vector<16x32xf32>
    %c0_158 = arith.constant 0 : index
    %c0_159 = arith.constant 0 : index
    %497 = vector.load %arg11[%c0_158, %c0_159] : memref<32x128xf32, #tpu.memory_space<vmem>>, vector<32x128xf32>
    %cst_160 = arith.constant dense<0.000000e+00> : vector<16x128xf32>
    %498 = tpu.matmul %496, %497, %cst_160 {dimension_numbers = #tpu.dot_dimension_numbers<[1], [0], [0], [1], [0, 0, 1, 1], [], []>} : vector<16x32xf32>, vector<32x128xf32>, vector<16x128xf32> -> vector<16x128xf32>
    %c0_161 = arith.constant 0 : index
    %c0_162 = arith.constant 0 : index
    %499 = vector.load %arg13[%c0_161, %c0_162] : memref<1x128xf32, #tpu.memory_space<vmem>>, vector<1x128xf32>
    %500 = vector.broadcast %499 : vector<1x128xf32> to vector<16x128xf32>
    %501 = arith.addf %498, %500 : vector<16x128xf32>
    %c0_163 = arith.constant 0 : index
    %c0_164 = arith.constant 0 : index
    %502 = vector.load %arg22[%c0_163, %c0_164] : memref<16x128xf32, #tpu.memory_space<vmem>>, vector<16x128xf32>
    tpu.vector_store %arg22[%c0_163, %c0_164], %501 {strides = array<i32>} : memref<16x128xf32, #tpu.memory_space<vmem>>, vector<16x128xf32>,
    %c0_165 = arith.constant 0 : index
    %c0_166 = arith.constant 0 : index
    %503 = vector.load %arg12[%c0_165, %c0_166] : memref<32x128xf32, #tpu.memory_space<vmem>>, vector<32x128xf32>
    %cst_167 = arith.constant 0.000000e+00 : f32
    %504 = vector.broadcast %cst_167 : f32 to vector<2x32xf32>
    %cst_168 = arith.constant 0.000000e+00 : f32
    %505 = vector.broadcast %cst_168 : f32 to vector<2x32xf32>
    %c0_169 = arith.constant 0 : index
    %c0_170 = arith.constant 0 : index
    %506 = vector.load %arg22[%c0_169, %c0_170] : memref<16x128xf32, #tpu.memory_space<vmem>>, vector<2x128xf32>
    %cst_171 = arith.constant dense<0.000000e+00> : vector<2x128xf32>
    %507 = tpu.matmul %504, %503, %cst_171 {dimension_numbers = #tpu.dot_dimension_numbers<[1], [0], [0], [1], [0, 0, 1, 1], [], []>} : vector<2x32xf32>, vector<32x128xf32>, vector<2x128xf32> -> vector<2x128xf32>
    %508 = arith.addf %506, %507 : vector<2x128xf32>
    %509 = vector.extract_strided_slice %508 {offsets = [0, 0], sizes = [2, 32], strides = [1, 1]} : vector<2x128xf32> to vector<2x32xf32>
    %510 = arith.negf %509 : vector<2x32xf32>
    %511 = math.exp %510 : vector<2x32xf32>
    %cst_172 = arith.constant 1.000000e+00 : f32
    %512 = vector.broadcast %cst_172 : f32 to vector<2x32xf32>
    %513 = arith.addf %512, %511 : vector<2x32xf32>
    %514 = arith.divf %512, %513 : vector<2x32xf32>
    %515 = vector.extract_strided_slice %508 {offsets = [0, 32], sizes = [2, 32], strides = [1, 1]} : vector<2x128xf32> to vector<2x32xf32>
    %516 = arith.negf %515 : vector<2x32xf32>
    %517 = math.exp %516 : vector<2x32xf32>
    %cst_173 = arith.constant 1.000000e+00 : f32
    %518 = vector.broadcast %cst_173 : f32 to vector<2x32xf32>
    %519 = arith.addf %518, %517 : vector<2x32xf32>
    %520 = arith.divf %518, %519 : vector<2x32xf32>
    %521 = vector.extract_strided_slice %508 {offsets = [0, 64], sizes = [2, 32], strides = [1, 1]} : vector<2x128xf32> to vector<2x32xf32>
    %522 = math.tanh %521 : vector<2x32xf32>
    %523 = vector.extract_strided_slice %508 {offsets = [0, 96], sizes = [2, 32], strides = [1, 1]} : vector<2x128xf32> to vector<2x32xf32>
    %524 = arith.negf %523 : vector<2x32xf32>
    %525 = math.exp %524 : vector<2x32xf32>
    %cst_174 = arith.constant 1.000000e+00 : f32
    %526 = vector.broadcast %cst_174 : f32 to vector<2x32xf32>
    %527 = arith.addf %526, %525 : vector<2x32xf32>
    %528 = arith.divf %526, %527 : vector<2x32xf32>
    %529 = arith.mulf %520, %505 : vector<2x32xf32>
    %530 = arith.mulf %514, %522 : vector<2x32xf32>
    %531 = arith.addf %529, %530 : vector<2x32xf32>
    %532 = math.tanh %531 : vector<2x32xf32>
    %533 = arith.mulf %528, %532 : vector<2x32xf32>
    %c0_175 = arith.constant 0 : index
    %c0_176 = arith.constant 0 : index
    %534 = vector.load %arg23[%c0_175, %c0_176] : memref<16x32xf32, #tpu.memory_space<vmem>>, vector<2x32xf32>
    tpu.vector_store %arg23[%c0_175, %c0_176], %533 {strides = array<i32>} : memref<16x32xf32, #tpu.memory_space<vmem>>, vector<2x32xf32>,
    %c2_177 = arith.constant 2 : index
    %c0_178 = arith.constant 0 : index
    %535 = vector.load %arg22[%c2_177, %c0_178] : memref<16x128xf32, #tpu.memory_space<vmem>>, vector<2x128xf32>
    %cst_179 = arith.constant dense<0.000000e+00> : vector<2x128xf32>
    %536 = tpu.matmul %533, %503, %cst_179 {dimension_numbers = #tpu.dot_dimension_numbers<[1], [0], [0], [1], [0, 0, 1, 1], [], []>} : vector<2x32xf32>, vector<32x128xf32>, vector<2x128xf32> -> vector<2x128xf32>
    %537 = arith.addf %535, %536 : vector<2x128xf32>
    %538 = vector.extract_strided_slice %537 {offsets = [0, 0], sizes = [2, 32], strides = [1, 1]} : vector<2x128xf32> to vector<2x32xf32>
    %539 = arith.negf %538 : vector<2x32xf32>
    %540 = math.exp %539 : vector<2x32xf32>
    %cst_180 = arith.constant 1.000000e+00 : f32
    %541 = vector.broadcast %cst_180 : f32 to vector<2x32xf32>
    %542 = arith.addf %541, %540 : vector<2x32xf32>
    %543 = arith.divf %541, %542 : vector<2x32xf32>
    %544 = vector.extract_strided_slice %537 {offsets = [0, 32], sizes = [2, 32], strides = [1, 1]} : vector<2x128xf32> to vector<2x32xf32>
    %545 = arith.negf %544 : vector<2x32xf32>
    %546 = math.exp %545 : vector<2x32xf32>
    %cst_181 = arith.constant 1.000000e+00 : f32
    %547 = vector.broadcast %cst_181 : f32 to vector<2x32xf32>
    %548 = arith.addf %547, %546 : vector<2x32xf32>
    %549 = arith.divf %547, %548 : vector<2x32xf32>
    %550 = vector.extract_strided_slice %537 {offsets = [0, 64], sizes = [2, 32], strides = [1, 1]} : vector<2x128xf32> to vector<2x32xf32>
    %551 = math.tanh %550 : vector<2x32xf32>
    %552 = vector.extract_strided_slice %537 {offsets = [0, 96], sizes = [2, 32], strides = [1, 1]} : vector<2x128xf32> to vector<2x32xf32>
    %553 = arith.negf %552 : vector<2x32xf32>
    %554 = math.exp %553 : vector<2x32xf32>
    %cst_182 = arith.constant 1.000000e+00 : f32
    %555 = vector.broadcast %cst_182 : f32 to vector<2x32xf32>
    %556 = arith.addf %555, %554 : vector<2x32xf32>
    %557 = arith.divf %555, %556 : vector<2x32xf32>
    %558 = arith.mulf %549, %531 : vector<2x32xf32>
    %559 = arith.mulf %543, %551 : vector<2x32xf32>
    %560 = arith.addf %558, %559 : vector<2x32xf32>
    %561 = math.tanh %560 : vector<2x32xf32>
    %562 = arith.mulf %557, %561 : vector<2x32xf32>
    %c2_183 = arith.constant 2 : index
    %c0_184 = arith.constant 0 : index
    %563 = vector.load %arg23[%c2_183, %c0_184] : memref<16x32xf32, #tpu.memory_space<vmem>>, vector<2x32xf32>
    tpu.vector_store %arg23[%c2_183, %c0_184], %562 {strides = array<i32>} : memref<16x32xf32, #tpu.memory_space<vmem>>, vector<2x32xf32>,
    %c4_185 = arith.constant 4 : index
    %c0_186 = arith.constant 0 : index
    %564 = vector.load %arg22[%c4_185, %c0_186] : memref<16x128xf32, #tpu.memory_space<vmem>>, vector<2x128xf32>
    %cst_187 = arith.constant dense<0.000000e+00> : vector<2x128xf32>
    %565 = tpu.matmul %562, %503, %cst_187 {dimension_numbers = #tpu.dot_dimension_numbers<[1], [0], [0], [1], [0, 0, 1, 1], [], []>} : vector<2x32xf32>, vector<32x128xf32>, vector<2x128xf32> -> vector<2x128xf32>
    %566 = arith.addf %564, %565 : vector<2x128xf32>
    %567 = vector.extract_strided_slice %566 {offsets = [0, 0], sizes = [2, 32], strides = [1, 1]} : vector<2x128xf32> to vector<2x32xf32>
    %568 = arith.negf %567 : vector<2x32xf32>
    %569 = math.exp %568 : vector<2x32xf32>
    %cst_188 = arith.constant 1.000000e+00 : f32
    %570 = vector.broadcast %cst_188 : f32 to vector<2x32xf32>
    %571 = arith.addf %570, %569 : vector<2x32xf32>
    %572 = arith.divf %570, %571 : vector<2x32xf32>
    %573 = vector.extract_strided_slice %566 {offsets = [0, 32], sizes = [2, 32], strides = [1, 1]} : vector<2x128xf32> to vector<2x32xf32>
    %574 = arith.negf %573 : vector<2x32xf32>
    %575 = math.exp %574 : vector<2x32xf32>
    %cst_189 = arith.constant 1.000000e+00 : f32
    %576 = vector.broadcast %cst_189 : f32 to vector<2x32xf32>
    %577 = arith.addf %576, %575 : vector<2x32xf32>
    %578 = arith.divf %576, %577 : vector<2x32xf32>
    %579 = vector.extract_strided_slice %566 {offsets = [0, 64], sizes = [2, 32], strides = [1, 1]} : vector<2x128xf32> to vector<2x32xf32>
    %580 = math.tanh %579 : vector<2x32xf32>
    %581 = vector.extract_strided_slice %566 {offsets = [0, 96], sizes = [2, 32], strides = [1, 1]} : vector<2x128xf32> to vector<2x32xf32>
    %582 = arith.negf %581 : vector<2x32xf32>
    %583 = math.exp %582 : vector<2x32xf32>
    %cst_190 = arith.constant 1.000000e+00 : f32
    %584 = vector.broadcast %cst_190 : f32 to vector<2x32xf32>
    %585 = arith.addf %584, %583 : vector<2x32xf32>
    %586 = arith.divf %584, %585 : vector<2x32xf32>
    %587 = arith.mulf %578, %560 : vector<2x32xf32>
    %588 = arith.mulf %572, %580 : vector<2x32xf32>
    %589 = arith.addf %587, %588 : vector<2x32xf32>
    %590 = math.tanh %589 : vector<2x32xf32>
    %591 = arith.mulf %586, %590 : vector<2x32xf32>
    %c4_191 = arith.constant 4 : index
    %c0_192 = arith.constant 0 : index
    %592 = vector.load %arg23[%c4_191, %c0_192] : memref<16x32xf32, #tpu.memory_space<vmem>>, vector<2x32xf32>
    tpu.vector_store %arg23[%c4_191, %c0_192], %591 {strides = array<i32>} : memref<16x32xf32, #tpu.memory_space<vmem>>, vector<2x32xf32>,
    %c6_193 = arith.constant 6 : index
    %c0_194 = arith.constant 0 : index
    %593 = vector.load %arg22[%c6_193, %c0_194] : memref<16x128xf32, #tpu.memory_space<vmem>>, vector<2x128xf32>
    %cst_195 = arith.constant dense<0.000000e+00> : vector<2x128xf32>
    %594 = tpu.matmul %591, %503, %cst_195 {dimension_numbers = #tpu.dot_dimension_numbers<[1], [0], [0], [1], [0, 0, 1, 1], [], []>} : vector<2x32xf32>, vector<32x128xf32>, vector<2x128xf32> -> vector<2x128xf32>
    %595 = arith.addf %593, %594 : vector<2x128xf32>
    %596 = vector.extract_strided_slice %595 {offsets = [0, 0], sizes = [2, 32], strides = [1, 1]} : vector<2x128xf32> to vector<2x32xf32>
    %597 = arith.negf %596 : vector<2x32xf32>
    %598 = math.exp %597 : vector<2x32xf32>
    %cst_196 = arith.constant 1.000000e+00 : f32
    %599 = vector.broadcast %cst_196 : f32 to vector<2x32xf32>
    %600 = arith.addf %599, %598 : vector<2x32xf32>
    %601 = arith.divf %599, %600 : vector<2x32xf32>
    %602 = vector.extract_strided_slice %595 {offsets = [0, 32], sizes = [2, 32], strides = [1, 1]} : vector<2x128xf32> to vector<2x32xf32>
    %603 = arith.negf %602 : vector<2x32xf32>
    %604 = math.exp %603 : vector<2x32xf32>
    %cst_197 = arith.constant 1.000000e+00 : f32
    %605 = vector.broadcast %cst_197 : f32 to vector<2x32xf32>
    %606 = arith.addf %605, %604 : vector<2x32xf32>
    %607 = arith.divf %605, %606 : vector<2x32xf32>
    %608 = vector.extract_strided_slice %595 {offsets = [0, 64], sizes = [2, 32], strides = [1, 1]} : vector<2x128xf32> to vector<2x32xf32>
    %609 = math.tanh %608 : vector<2x32xf32>
    %610 = vector.extract_strided_slice %595 {offsets = [0, 96], sizes = [2, 32], strides = [1, 1]} : vector<2x128xf32> to vector<2x32xf32>
    %611 = arith.negf %610 : vector<2x32xf32>
    %612 = math.exp %611 : vector<2x32xf32>
    %cst_198 = arith.constant 1.000000e+00 : f32
    %613 = vector.broadcast %cst_198 : f32 to vector<2x32xf32>
    %614 = arith.addf %613, %612 : vector<2x32xf32>
    %615 = arith.divf %613, %614 : vector<2x32xf32>
    %616 = arith.mulf %607, %589 : vector<2x32xf32>
    %617 = arith.mulf %601, %609 : vector<2x32xf32>
    %618 = arith.addf %616, %617 : vector<2x32xf32>
    %619 = math.tanh %618 : vector<2x32xf32>
    %620 = arith.mulf %615, %619 : vector<2x32xf32>
    %c6_199 = arith.constant 6 : index
    %c0_200 = arith.constant 0 : index
    %621 = vector.load %arg23[%c6_199, %c0_200] : memref<16x32xf32, #tpu.memory_space<vmem>>, vector<2x32xf32>
    tpu.vector_store %arg23[%c6_199, %c0_200], %620 {strides = array<i32>} : memref<16x32xf32, #tpu.memory_space<vmem>>, vector<2x32xf32>,
    %c8_201 = arith.constant 8 : index
    %c0_202 = arith.constant 0 : index
    %622 = vector.load %arg22[%c8_201, %c0_202] : memref<16x128xf32, #tpu.memory_space<vmem>>, vector<2x128xf32>
    %cst_203 = arith.constant dense<0.000000e+00> : vector<2x128xf32>
    %623 = tpu.matmul %620, %503, %cst_203 {dimension_numbers = #tpu.dot_dimension_numbers<[1], [0], [0], [1], [0, 0, 1, 1], [], []>} : vector<2x32xf32>, vector<32x128xf32>, vector<2x128xf32> -> vector<2x128xf32>
    %624 = arith.addf %622, %623 : vector<2x128xf32>
    %625 = vector.extract_strided_slice %624 {offsets = [0, 0], sizes = [2, 32], strides = [1, 1]} : vector<2x128xf32> to vector<2x32xf32>
    %626 = arith.negf %625 : vector<2x32xf32>
    %627 = math.exp %626 : vector<2x32xf32>
    %cst_204 = arith.constant 1.000000e+00 : f32
    %628 = vector.broadcast %cst_204 : f32 to vector<2x32xf32>
    %629 = arith.addf %628, %627 : vector<2x32xf32>
    %630 = arith.divf %628, %629 : vector<2x32xf32>
    %631 = vector.extract_strided_slice %624 {offsets = [0, 32], sizes = [2, 32], strides = [1, 1]} : vector<2x128xf32> to vector<2x32xf32>
    %632 = arith.negf %631 : vector<2x32xf32>
    %633 = math.exp %632 : vector<2x32xf32>
    %cst_205 = arith.constant 1.000000e+00 : f32
    %634 = vector.broadcast %cst_205 : f32 to vector<2x32xf32>
    %635 = arith.addf %634, %633 : vector<2x32xf32>
    %636 = arith.divf %634, %635 : vector<2x32xf32>
    %637 = vector.extract_strided_slice %624 {offsets = [0, 64], sizes = [2, 32], strides = [1, 1]} : vector<2x128xf32> to vector<2x32xf32>
    %638 = math.tanh %637 : vector<2x32xf32>
    %639 = vector.extract_strided_slice %624 {offsets = [0, 96], sizes = [2, 32], strides = [1, 1]} : vector<2x128xf32> to vector<2x32xf32>
    %640 = arith.negf %639 : vector<2x32xf32>
    %641 = math.exp %640 : vector<2x32xf32>
    %cst_206 = arith.constant 1.000000e+00 : f32
    %642 = vector.broadcast %cst_206 : f32 to vector<2x32xf32>
    %643 = arith.addf %642, %641 : vector<2x32xf32>
    %644 = arith.divf %642, %643 : vector<2x32xf32>
    %645 = arith.mulf %636, %618 : vector<2x32xf32>
    %646 = arith.mulf %630, %638 : vector<2x32xf32>
    %647 = arith.addf %645, %646 : vector<2x32xf32>
    %648 = math.tanh %647 : vector<2x32xf32>
    %649 = arith.mulf %644, %648 : vector<2x32xf32>
    %c8_207 = arith.constant 8 : index
    %c0_208 = arith.constant 0 : index
    %650 = vector.load %arg23[%c8_207, %c0_208] : memref<16x32xf32, #tpu.memory_space<vmem>>, vector<2x32xf32>
    tpu.vector_store %arg23[%c8_207, %c0_208], %649 {strides = array<i32>} : memref<16x32xf32, #tpu.memory_space<vmem>>, vector<2x32xf32>,
    %c10_209 = arith.constant 10 : index
    %c0_210 = arith.constant 0 : index
    %651 = vector.load %arg22[%c10_209, %c0_210] : memref<16x128xf32, #tpu.memory_space<vmem>>, vector<2x128xf32>
    %cst_211 = arith.constant dense<0.000000e+00> : vector<2x128xf32>
    %652 = tpu.matmul %649, %503, %cst_211 {dimension_numbers = #tpu.dot_dimension_numbers<[1], [0], [0], [1], [0, 0, 1, 1], [], []>} : vector<2x32xf32>, vector<32x128xf32>, vector<2x128xf32> -> vector<2x128xf32>
    %653 = arith.addf %651, %652 : vector<2x128xf32>
    %654 = vector.extract_strided_slice %653 {offsets = [0, 0], sizes = [2, 32], strides = [1, 1]} : vector<2x128xf32> to vector<2x32xf32>
    %655 = arith.negf %654 : vector<2x32xf32>
    %656 = math.exp %655 : vector<2x32xf32>
    %cst_212 = arith.constant 1.000000e+00 : f32
    %657 = vector.broadcast %cst_212 : f32 to vector<2x32xf32>
    %658 = arith.addf %657, %656 : vector<2x32xf32>
    %659 = arith.divf %657, %658 : vector<2x32xf32>
    %660 = vector.extract_strided_slice %653 {offsets = [0, 32], sizes = [2, 32], strides = [1, 1]} : vector<2x128xf32> to vector<2x32xf32>
    %661 = arith.negf %660 : vector<2x32xf32>
    %662 = math.exp %661 : vector<2x32xf32>
    %cst_213 = arith.constant 1.000000e+00 : f32
    %663 = vector.broadcast %cst_213 : f32 to vector<2x32xf32>
    %664 = arith.addf %663, %662 : vector<2x32xf32>
    %665 = arith.divf %663, %664 : vector<2x32xf32>
    %666 = vector.extract_strided_slice %653 {offsets = [0, 64], sizes = [2, 32], strides = [1, 1]} : vector<2x128xf32> to vector<2x32xf32>
    %667 = math.tanh %666 : vector<2x32xf32>
    %668 = vector.extract_strided_slice %653 {offsets = [0, 96], sizes = [2, 32], strides = [1, 1]} : vector<2x128xf32> to vector<2x32xf32>
    %669 = arith.negf %668 : vector<2x32xf32>
    %670 = math.exp %669 : vector<2x32xf32>
    %cst_214 = arith.constant 1.000000e+00 : f32
    %671 = vector.broadcast %cst_214 : f32 to vector<2x32xf32>
    %672 = arith.addf %671, %670 : vector<2x32xf32>
    %673 = arith.divf %671, %672 : vector<2x32xf32>
    %674 = arith.mulf %665, %647 : vector<2x32xf32>
    %675 = arith.mulf %659, %667 : vector<2x32xf32>
    %676 = arith.addf %674, %675 : vector<2x32xf32>
    %677 = math.tanh %676 : vector<2x32xf32>
    %678 = arith.mulf %673, %677 : vector<2x32xf32>
    %c10_215 = arith.constant 10 : index
    %c0_216 = arith.constant 0 : index
    %679 = vector.load %arg23[%c10_215, %c0_216] : memref<16x32xf32, #tpu.memory_space<vmem>>, vector<2x32xf32>
    tpu.vector_store %arg23[%c10_215, %c0_216], %678 {strides = array<i32>} : memref<16x32xf32, #tpu.memory_space<vmem>>, vector<2x32xf32>,
    %c12_217 = arith.constant 12 : index
    %c0_218 = arith.constant 0 : index
    %680 = vector.load %arg22[%c12_217, %c0_218] : memref<16x128xf32, #tpu.memory_space<vmem>>, vector<2x128xf32>
    %cst_219 = arith.constant dense<0.000000e+00> : vector<2x128xf32>
    %681 = tpu.matmul %678, %503, %cst_219 {dimension_numbers = #tpu.dot_dimension_numbers<[1], [0], [0], [1], [0, 0, 1, 1], [], []>} : vector<2x32xf32>, vector<32x128xf32>, vector<2x128xf32> -> vector<2x128xf32>
    %682 = arith.addf %680, %681 : vector<2x128xf32>
    %683 = vector.extract_strided_slice %682 {offsets = [0, 0], sizes = [2, 32], strides = [1, 1]} : vector<2x128xf32> to vector<2x32xf32>
    %684 = arith.negf %683 : vector<2x32xf32>
    %685 = math.exp %684 : vector<2x32xf32>
    %cst_220 = arith.constant 1.000000e+00 : f32
    %686 = vector.broadcast %cst_220 : f32 to vector<2x32xf32>
    %687 = arith.addf %686, %685 : vector<2x32xf32>
    %688 = arith.divf %686, %687 : vector<2x32xf32>
    %689 = vector.extract_strided_slice %682 {offsets = [0, 32], sizes = [2, 32], strides = [1, 1]} : vector<2x128xf32> to vector<2x32xf32>
    %690 = arith.negf %689 : vector<2x32xf32>
    %691 = math.exp %690 : vector<2x32xf32>
    %cst_221 = arith.constant 1.000000e+00 : f32
    %692 = vector.broadcast %cst_221 : f32 to vector<2x32xf32>
    %693 = arith.addf %692, %691 : vector<2x32xf32>
    %694 = arith.divf %692, %693 : vector<2x32xf32>
    %695 = vector.extract_strided_slice %682 {offsets = [0, 64], sizes = [2, 32], strides = [1, 1]} : vector<2x128xf32> to vector<2x32xf32>
    %696 = math.tanh %695 : vector<2x32xf32>
    %697 = vector.extract_strided_slice %682 {offsets = [0, 96], sizes = [2, 32], strides = [1, 1]} : vector<2x128xf32> to vector<2x32xf32>
    %698 = arith.negf %697 : vector<2x32xf32>
    %699 = math.exp %698 : vector<2x32xf32>
    %cst_222 = arith.constant 1.000000e+00 : f32
    %700 = vector.broadcast %cst_222 : f32 to vector<2x32xf32>
    %701 = arith.addf %700, %699 : vector<2x32xf32>
    %702 = arith.divf %700, %701 : vector<2x32xf32>
    %703 = arith.mulf %694, %676 : vector<2x32xf32>
    %704 = arith.mulf %688, %696 : vector<2x32xf32>
    %705 = arith.addf %703, %704 : vector<2x32xf32>
    %706 = math.tanh %705 : vector<2x32xf32>
    %707 = arith.mulf %702, %706 : vector<2x32xf32>
    %c12_223 = arith.constant 12 : index
    %c0_224 = arith.constant 0 : index
    %708 = vector.load %arg23[%c12_223, %c0_224] : memref<16x32xf32, #tpu.memory_space<vmem>>, vector<2x32xf32>
    tpu.vector_store %arg23[%c12_223, %c0_224], %707 {strides = array<i32>} : memref<16x32xf32, #tpu.memory_space<vmem>>, vector<2x32xf32>,
    %c14_225 = arith.constant 14 : index
    %c0_226 = arith.constant 0 : index
    %709 = vector.load %arg22[%c14_225, %c0_226] : memref<16x128xf32, #tpu.memory_space<vmem>>, vector<2x128xf32>
    %cst_227 = arith.constant dense<0.000000e+00> : vector<2x128xf32>
    %710 = tpu.matmul %707, %503, %cst_227 {dimension_numbers = #tpu.dot_dimension_numbers<[1], [0], [0], [1], [0, 0, 1, 1], [], []>} : vector<2x32xf32>, vector<32x128xf32>, vector<2x128xf32> -> vector<2x128xf32>
    %711 = arith.addf %709, %710 : vector<2x128xf32>
    %712 = vector.extract_strided_slice %711 {offsets = [0, 0], sizes = [2, 32], strides = [1, 1]} : vector<2x128xf32> to vector<2x32xf32>
    %713 = arith.negf %712 : vector<2x32xf32>
    %714 = math.exp %713 : vector<2x32xf32>
    %cst_228 = arith.constant 1.000000e+00 : f32
    %715 = vector.broadcast %cst_228 : f32 to vector<2x32xf32>
    %716 = arith.addf %715, %714 : vector<2x32xf32>
    %717 = arith.divf %715, %716 : vector<2x32xf32>
    %718 = vector.extract_strided_slice %711 {offsets = [0, 32], sizes = [2, 32], strides = [1, 1]} : vector<2x128xf32> to vector<2x32xf32>
    %719 = arith.negf %718 : vector<2x32xf32>
    %720 = math.exp %719 : vector<2x32xf32>
    %cst_229 = arith.constant 1.000000e+00 : f32
    %721 = vector.broadcast %cst_229 : f32 to vector<2x32xf32>
    %722 = arith.addf %721, %720 : vector<2x32xf32>
    %723 = arith.divf %721, %722 : vector<2x32xf32>
    %724 = vector.extract_strided_slice %711 {offsets = [0, 64], sizes = [2, 32], strides = [1, 1]} : vector<2x128xf32> to vector<2x32xf32>
    %725 = math.tanh %724 : vector<2x32xf32>
    %726 = vector.extract_strided_slice %711 {offsets = [0, 96], sizes = [2, 32], strides = [1, 1]} : vector<2x128xf32> to vector<2x32xf32>
    %727 = arith.negf %726 : vector<2x32xf32>
    %728 = math.exp %727 : vector<2x32xf32>
    %cst_230 = arith.constant 1.000000e+00 : f32
    %729 = vector.broadcast %cst_230 : f32 to vector<2x32xf32>
    %730 = arith.addf %729, %728 : vector<2x32xf32>
    %731 = arith.divf %729, %730 : vector<2x32xf32>
    %732 = arith.mulf %723, %705 : vector<2x32xf32>
    %733 = arith.mulf %717, %725 : vector<2x32xf32>
    %734 = arith.addf %732, %733 : vector<2x32xf32>
    %735 = math.tanh %734 : vector<2x32xf32>
    %736 = arith.mulf %731, %735 : vector<2x32xf32>
    %c14_231 = arith.constant 14 : index
    %c0_232 = arith.constant 0 : index
    %737 = vector.load %arg23[%c14_231, %c0_232] : memref<16x32xf32, #tpu.memory_space<vmem>>, vector<2x32xf32>
    tpu.vector_store %arg23[%c14_231, %c0_232], %736 {strides = array<i32>} : memref<16x32xf32, #tpu.memory_space<vmem>>, vector<2x32xf32>,
    %c0_233 = arith.constant 0 : index
    %c0_234 = arith.constant 0 : index
    %738 = vector.load %arg23[%c0_233, %c0_234] : memref<16x32xf32, #tpu.memory_space<vmem>>, vector<16x32xf32>
    %c0_235 = arith.constant 0 : index
    %c0_236 = arith.constant 0 : index
    %739 = vector.load %arg14[%c0_235, %c0_236] : memref<32x128xf32, #tpu.memory_space<vmem>>, vector<32x128xf32>
    %cst_237 = arith.constant dense<0.000000e+00> : vector<16x128xf32>
    %740 = tpu.matmul %738, %739, %cst_237 {dimension_numbers = #tpu.dot_dimension_numbers<[1], [0], [0], [1], [0, 0, 1, 1], [], []>} : vector<16x32xf32>, vector<32x128xf32>, vector<16x128xf32> -> vector<16x128xf32>
    %c0_238 = arith.constant 0 : index
    %c0_239 = arith.constant 0 : index
    %741 = vector.load %arg16[%c0_238, %c0_239] : memref<1x128xf32, #tpu.memory_space<vmem>>, vector<1x128xf32>
    %742 = vector.broadcast %741 : vector<1x128xf32> to vector<16x128xf32>
    %743 = arith.addf %740, %742 : vector<16x128xf32>
    %c0_240 = arith.constant 0 : index
    %c0_241 = arith.constant 0 : index
    %744 = vector.load %arg22[%c0_240, %c0_241] : memref<16x128xf32, #tpu.memory_space<vmem>>, vector<16x128xf32>
    tpu.vector_store %arg22[%c0_240, %c0_241], %743 {strides = array<i32>} : memref<16x128xf32, #tpu.memory_space<vmem>>, vector<16x128xf32>,
    %c0_242 = arith.constant 0 : index
    %c0_243 = arith.constant 0 : index
    %745 = vector.load %arg15[%c0_242, %c0_243] : memref<32x128xf32, #tpu.memory_space<vmem>>, vector<32x128xf32>
    %cst_244 = arith.constant 0.000000e+00 : f32
    %746 = vector.broadcast %cst_244 : f32 to vector<2x32xf32>
    %cst_245 = arith.constant 0.000000e+00 : f32
    %747 = vector.broadcast %cst_245 : f32 to vector<2x32xf32>
    %c0_246 = arith.constant 0 : index
    %c0_247 = arith.constant 0 : index
    %748 = vector.load %arg22[%c0_246, %c0_247] : memref<16x128xf32, #tpu.memory_space<vmem>>, vector<2x128xf32>
    %cst_248 = arith.constant dense<0.000000e+00> : vector<2x128xf32>
    %749 = tpu.matmul %746, %745, %cst_248 {dimension_numbers = #tpu.dot_dimension_numbers<[1], [0], [0], [1], [0, 0, 1, 1], [], []>} : vector<2x32xf32>, vector<32x128xf32>, vector<2x128xf32> -> vector<2x128xf32>
    %750 = arith.addf %748, %749 : vector<2x128xf32>
    %751 = vector.extract_strided_slice %750 {offsets = [0, 0], sizes = [2, 32], strides = [1, 1]} : vector<2x128xf32> to vector<2x32xf32>
    %752 = arith.negf %751 : vector<2x32xf32>
    %753 = math.exp %752 : vector<2x32xf32>
    %cst_249 = arith.constant 1.000000e+00 : f32
    %754 = vector.broadcast %cst_249 : f32 to vector<2x32xf32>
    %755 = arith.addf %754, %753 : vector<2x32xf32>
    %756 = arith.divf %754, %755 : vector<2x32xf32>
    %757 = vector.extract_strided_slice %750 {offsets = [0, 32], sizes = [2, 32], strides = [1, 1]} : vector<2x128xf32> to vector<2x32xf32>
    %758 = arith.negf %757 : vector<2x32xf32>
    %759 = math.exp %758 : vector<2x32xf32>
    %cst_250 = arith.constant 1.000000e+00 : f32
    %760 = vector.broadcast %cst_250 : f32 to vector<2x32xf32>
    %761 = arith.addf %760, %759 : vector<2x32xf32>
    %762 = arith.divf %760, %761 : vector<2x32xf32>
    %763 = vector.extract_strided_slice %750 {offsets = [0, 64], sizes = [2, 32], strides = [1, 1]} : vector<2x128xf32> to vector<2x32xf32>
    %764 = math.tanh %763 : vector<2x32xf32>
    %765 = vector.extract_strided_slice %750 {offsets = [0, 96], sizes = [2, 32], strides = [1, 1]} : vector<2x128xf32> to vector<2x32xf32>
    %766 = arith.negf %765 : vector<2x32xf32>
    %767 = math.exp %766 : vector<2x32xf32>
    %cst_251 = arith.constant 1.000000e+00 : f32
    %768 = vector.broadcast %cst_251 : f32 to vector<2x32xf32>
    %769 = arith.addf %768, %767 : vector<2x32xf32>
    %770 = arith.divf %768, %769 : vector<2x32xf32>
    %771 = arith.mulf %762, %747 : vector<2x32xf32>
    %772 = arith.mulf %756, %764 : vector<2x32xf32>
    %773 = arith.addf %771, %772 : vector<2x32xf32>
    %774 = math.tanh %773 : vector<2x32xf32>
    %775 = arith.mulf %770, %774 : vector<2x32xf32>
    %c0_252 = arith.constant 0 : index
    %c0_253 = arith.constant 0 : index
    %776 = vector.load %arg23[%c0_252, %c0_253] : memref<16x32xf32, #tpu.memory_space<vmem>>, vector<2x32xf32>
    tpu.vector_store %arg23[%c0_252, %c0_253], %775 {strides = array<i32>} : memref<16x32xf32, #tpu.memory_space<vmem>>, vector<2x32xf32>,
    %c2_254 = arith.constant 2 : index
    %c0_255 = arith.constant 0 : index
    %777 = vector.load %arg22[%c2_254, %c0_255] : memref<16x128xf32, #tpu.memory_space<vmem>>, vector<2x128xf32>
    %cst_256 = arith.constant dense<0.000000e+00> : vector<2x128xf32>
    %778 = tpu.matmul %775, %745, %cst_256 {dimension_numbers = #tpu.dot_dimension_numbers<[1], [0], [0], [1], [0, 0, 1, 1], [], []>} : vector<2x32xf32>, vector<32x128xf32>, vector<2x128xf32> -> vector<2x128xf32>
    %779 = arith.addf %777, %778 : vector<2x128xf32>
    %780 = vector.extract_strided_slice %779 {offsets = [0, 0], sizes = [2, 32], strides = [1, 1]} : vector<2x128xf32> to vector<2x32xf32>
    %781 = arith.negf %780 : vector<2x32xf32>
    %782 = math.exp %781 : vector<2x32xf32>
    %cst_257 = arith.constant 1.000000e+00 : f32
    %783 = vector.broadcast %cst_257 : f32 to vector<2x32xf32>
    %784 = arith.addf %783, %782 : vector<2x32xf32>
    %785 = arith.divf %783, %784 : vector<2x32xf32>
    %786 = vector.extract_strided_slice %779 {offsets = [0, 32], sizes = [2, 32], strides = [1, 1]} : vector<2x128xf32> to vector<2x32xf32>
    %787 = arith.negf %786 : vector<2x32xf32>
    %788 = math.exp %787 : vector<2x32xf32>
    %cst_258 = arith.constant 1.000000e+00 : f32
    %789 = vector.broadcast %cst_258 : f32 to vector<2x32xf32>
    %790 = arith.addf %789, %788 : vector<2x32xf32>
    %791 = arith.divf %789, %790 : vector<2x32xf32>
    %792 = vector.extract_strided_slice %779 {offsets = [0, 64], sizes = [2, 32], strides = [1, 1]} : vector<2x128xf32> to vector<2x32xf32>
    %793 = math.tanh %792 : vector<2x32xf32>
    %794 = vector.extract_strided_slice %779 {offsets = [0, 96], sizes = [2, 32], strides = [1, 1]} : vector<2x128xf32> to vector<2x32xf32>
    %795 = arith.negf %794 : vector<2x32xf32>
    %796 = math.exp %795 : vector<2x32xf32>
    %cst_259 = arith.constant 1.000000e+00 : f32
    %797 = vector.broadcast %cst_259 : f32 to vector<2x32xf32>
    %798 = arith.addf %797, %796 : vector<2x32xf32>
    %799 = arith.divf %797, %798 : vector<2x32xf32>
    %800 = arith.mulf %791, %773 : vector<2x32xf32>
    %801 = arith.mulf %785, %793 : vector<2x32xf32>
    %802 = arith.addf %800, %801 : vector<2x32xf32>
    %803 = math.tanh %802 : vector<2x32xf32>
    %804 = arith.mulf %799, %803 : vector<2x32xf32>
    %c2_260 = arith.constant 2 : index
    %c0_261 = arith.constant 0 : index
    %805 = vector.load %arg23[%c2_260, %c0_261] : memref<16x32xf32, #tpu.memory_space<vmem>>, vector<2x32xf32>
    tpu.vector_store %arg23[%c2_260, %c0_261], %804 {strides = array<i32>} : memref<16x32xf32, #tpu.memory_space<vmem>>, vector<2x32xf32>,
    %c4_262 = arith.constant 4 : index
    %c0_263 = arith.constant 0 : index
    %806 = vector.load %arg22[%c4_262, %c0_263] : memref<16x128xf32, #tpu.memory_space<vmem>>, vector<2x128xf32>
    %cst_264 = arith.constant dense<0.000000e+00> : vector<2x128xf32>
    %807 = tpu.matmul %804, %745, %cst_264 {dimension_numbers = #tpu.dot_dimension_numbers<[1], [0], [0], [1], [0, 0, 1, 1], [], []>} : vector<2x32xf32>, vector<32x128xf32>, vector<2x128xf32> -> vector<2x128xf32>
    %808 = arith.addf %806, %807 : vector<2x128xf32>
    %809 = vector.extract_strided_slice %808 {offsets = [0, 0], sizes = [2, 32], strides = [1, 1]} : vector<2x128xf32> to vector<2x32xf32>
    %810 = arith.negf %809 : vector<2x32xf32>
    %811 = math.exp %810 : vector<2x32xf32>
    %cst_265 = arith.constant 1.000000e+00 : f32
    %812 = vector.broadcast %cst_265 : f32 to vector<2x32xf32>
    %813 = arith.addf %812, %811 : vector<2x32xf32>
    %814 = arith.divf %812, %813 : vector<2x32xf32>
    %815 = vector.extract_strided_slice %808 {offsets = [0, 32], sizes = [2, 32], strides = [1, 1]} : vector<2x128xf32> to vector<2x32xf32>
    %816 = arith.negf %815 : vector<2x32xf32>
    %817 = math.exp %816 : vector<2x32xf32>
    %cst_266 = arith.constant 1.000000e+00 : f32
    %818 = vector.broadcast %cst_266 : f32 to vector<2x32xf32>
    %819 = arith.addf %818, %817 : vector<2x32xf32>
    %820 = arith.divf %818, %819 : vector<2x32xf32>
    %821 = vector.extract_strided_slice %808 {offsets = [0, 64], sizes = [2, 32], strides = [1, 1]} : vector<2x128xf32> to vector<2x32xf32>
    %822 = math.tanh %821 : vector<2x32xf32>
    %823 = vector.extract_strided_slice %808 {offsets = [0, 96], sizes = [2, 32], strides = [1, 1]} : vector<2x128xf32> to vector<2x32xf32>
    %824 = arith.negf %823 : vector<2x32xf32>
    %825 = math.exp %824 : vector<2x32xf32>
    %cst_267 = arith.constant 1.000000e+00 : f32
    %826 = vector.broadcast %cst_267 : f32 to vector<2x32xf32>
    %827 = arith.addf %826, %825 : vector<2x32xf32>
    %828 = arith.divf %826, %827 : vector<2x32xf32>
    %829 = arith.mulf %820, %802 : vector<2x32xf32>
    %830 = arith.mulf %814, %822 : vector<2x32xf32>
    %831 = arith.addf %829, %830 : vector<2x32xf32>
    %832 = math.tanh %831 : vector<2x32xf32>
    %833 = arith.mulf %828, %832 : vector<2x32xf32>
    %c4_268 = arith.constant 4 : index
    %c0_269 = arith.constant 0 : index
    %834 = vector.load %arg23[%c4_268, %c0_269] : memref<16x32xf32, #tpu.memory_space<vmem>>, vector<2x32xf32>
    tpu.vector_store %arg23[%c4_268, %c0_269], %833 {strides = array<i32>} : memref<16x32xf32, #tpu.memory_space<vmem>>, vector<2x32xf32>,
    %c6_270 = arith.constant 6 : index
    %c0_271 = arith.constant 0 : index
    %835 = vector.load %arg22[%c6_270, %c0_271] : memref<16x128xf32, #tpu.memory_space<vmem>>, vector<2x128xf32>
    %cst_272 = arith.constant dense<0.000000e+00> : vector<2x128xf32>
    %836 = tpu.matmul %833, %745, %cst_272 {dimension_numbers = #tpu.dot_dimension_numbers<[1], [0], [0], [1], [0, 0, 1, 1], [], []>} : vector<2x32xf32>, vector<32x128xf32>, vector<2x128xf32> -> vector<2x128xf32>
    %837 = arith.addf %835, %836 : vector<2x128xf32>
    %838 = vector.extract_strided_slice %837 {offsets = [0, 0], sizes = [2, 32], strides = [1, 1]} : vector<2x128xf32> to vector<2x32xf32>
    %839 = arith.negf %838 : vector<2x32xf32>
    %840 = math.exp %839 : vector<2x32xf32>
    %cst_273 = arith.constant 1.000000e+00 : f32
    %841 = vector.broadcast %cst_273 : f32 to vector<2x32xf32>
    %842 = arith.addf %841, %840 : vector<2x32xf32>
    %843 = arith.divf %841, %842 : vector<2x32xf32>
    %844 = vector.extract_strided_slice %837 {offsets = [0, 32], sizes = [2, 32], strides = [1, 1]} : vector<2x128xf32> to vector<2x32xf32>
    %845 = arith.negf %844 : vector<2x32xf32>
    %846 = math.exp %845 : vector<2x32xf32>
    %cst_274 = arith.constant 1.000000e+00 : f32
    %847 = vector.broadcast %cst_274 : f32 to vector<2x32xf32>
    %848 = arith.addf %847, %846 : vector<2x32xf32>
    %849 = arith.divf %847, %848 : vector<2x32xf32>
    %850 = vector.extract_strided_slice %837 {offsets = [0, 64], sizes = [2, 32], strides = [1, 1]} : vector<2x128xf32> to vector<2x32xf32>
    %851 = math.tanh %850 : vector<2x32xf32>
    %852 = vector.extract_strided_slice %837 {offsets = [0, 96], sizes = [2, 32], strides = [1, 1]} : vector<2x128xf32> to vector<2x32xf32>
    %853 = arith.negf %852 : vector<2x32xf32>
    %854 = math.exp %853 : vector<2x32xf32>
    %cst_275 = arith.constant 1.000000e+00 : f32
    %855 = vector.broadcast %cst_275 : f32 to vector<2x32xf32>
    %856 = arith.addf %855, %854 : vector<2x32xf32>
    %857 = arith.divf %855, %856 : vector<2x32xf32>
    %858 = arith.mulf %849, %831 : vector<2x32xf32>
    %859 = arith.mulf %843, %851 : vector<2x32xf32>
    %860 = arith.addf %858, %859 : vector<2x32xf32>
    %861 = math.tanh %860 : vector<2x32xf32>
    %862 = arith.mulf %857, %861 : vector<2x32xf32>
    %c6_276 = arith.constant 6 : index
    %c0_277 = arith.constant 0 : index
    %863 = vector.load %arg23[%c6_276, %c0_277] : memref<16x32xf32, #tpu.memory_space<vmem>>, vector<2x32xf32>
    tpu.vector_store %arg23[%c6_276, %c0_277], %862 {strides = array<i32>} : memref<16x32xf32, #tpu.memory_space<vmem>>, vector<2x32xf32>,
    %c8_278 = arith.constant 8 : index
    %c0_279 = arith.constant 0 : index
    %864 = vector.load %arg22[%c8_278, %c0_279] : memref<16x128xf32, #tpu.memory_space<vmem>>, vector<2x128xf32>
    %cst_280 = arith.constant dense<0.000000e+00> : vector<2x128xf32>
    %865 = tpu.matmul %862, %745, %cst_280 {dimension_numbers = #tpu.dot_dimension_numbers<[1], [0], [0], [1], [0, 0, 1, 1], [], []>} : vector<2x32xf32>, vector<32x128xf32>, vector<2x128xf32> -> vector<2x128xf32>
    %866 = arith.addf %864, %865 : vector<2x128xf32>
    %867 = vector.extract_strided_slice %866 {offsets = [0, 0], sizes = [2, 32], strides = [1, 1]} : vector<2x128xf32> to vector<2x32xf32>
    %868 = arith.negf %867 : vector<2x32xf32>
    %869 = math.exp %868 : vector<2x32xf32>
    %cst_281 = arith.constant 1.000000e+00 : f32
    %870 = vector.broadcast %cst_281 : f32 to vector<2x32xf32>
    %871 = arith.addf %870, %869 : vector<2x32xf32>
    %872 = arith.divf %870, %871 : vector<2x32xf32>
    %873 = vector.extract_strided_slice %866 {offsets = [0, 32], sizes = [2, 32], strides = [1, 1]} : vector<2x128xf32> to vector<2x32xf32>
    %874 = arith.negf %873 : vector<2x32xf32>
    %875 = math.exp %874 : vector<2x32xf32>
    %cst_282 = arith.constant 1.000000e+00 : f32
    %876 = vector.broadcast %cst_282 : f32 to vector<2x32xf32>
    %877 = arith.addf %876, %875 : vector<2x32xf32>
    %878 = arith.divf %876, %877 : vector<2x32xf32>
    %879 = vector.extract_strided_slice %866 {offsets = [0, 64], sizes = [2, 32], strides = [1, 1]} : vector<2x128xf32> to vector<2x32xf32>
    %880 = math.tanh %879 : vector<2x32xf32>
    %881 = vector.extract_strided_slice %866 {offsets = [0, 96], sizes = [2, 32], strides = [1, 1]} : vector<2x128xf32> to vector<2x32xf32>
    %882 = arith.negf %881 : vector<2x32xf32>
    %883 = math.exp %882 : vector<2x32xf32>
    %cst_283 = arith.constant 1.000000e+00 : f32
    %884 = vector.broadcast %cst_283 : f32 to vector<2x32xf32>
    %885 = arith.addf %884, %883 : vector<2x32xf32>
    %886 = arith.divf %884, %885 : vector<2x32xf32>
    %887 = arith.mulf %878, %860 : vector<2x32xf32>
    %888 = arith.mulf %872, %880 : vector<2x32xf32>
    %889 = arith.addf %887, %888 : vector<2x32xf32>
    %890 = math.tanh %889 : vector<2x32xf32>
    %891 = arith.mulf %886, %890 : vector<2x32xf32>
    %c8_284 = arith.constant 8 : index
    %c0_285 = arith.constant 0 : index
    %892 = vector.load %arg23[%c8_284, %c0_285] : memref<16x32xf32, #tpu.memory_space<vmem>>, vector<2x32xf32>
    tpu.vector_store %arg23[%c8_284, %c0_285], %891 {strides = array<i32>} : memref<16x32xf32, #tpu.memory_space<vmem>>, vector<2x32xf32>,
    %c10_286 = arith.constant 10 : index
    %c0_287 = arith.constant 0 : index
    %893 = vector.load %arg22[%c10_286, %c0_287] : memref<16x128xf32, #tpu.memory_space<vmem>>, vector<2x128xf32>
    %cst_288 = arith.constant dense<0.000000e+00> : vector<2x128xf32>
    %894 = tpu.matmul %891, %745, %cst_288 {dimension_numbers = #tpu.dot_dimension_numbers<[1], [0], [0], [1], [0, 0, 1, 1], [], []>} : vector<2x32xf32>, vector<32x128xf32>, vector<2x128xf32> -> vector<2x128xf32>
    %895 = arith.addf %893, %894 : vector<2x128xf32>
    %896 = vector.extract_strided_slice %895 {offsets = [0, 0], sizes = [2, 32], strides = [1, 1]} : vector<2x128xf32> to vector<2x32xf32>
    %897 = arith.negf %896 : vector<2x32xf32>
    %898 = math.exp %897 : vector<2x32xf32>
    %cst_289 = arith.constant 1.000000e+00 : f32
    %899 = vector.broadcast %cst_289 : f32 to vector<2x32xf32>
    %900 = arith.addf %899, %898 : vector<2x32xf32>
    %901 = arith.divf %899, %900 : vector<2x32xf32>
    %902 = vector.extract_strided_slice %895 {offsets = [0, 32], sizes = [2, 32], strides = [1, 1]} : vector<2x128xf32> to vector<2x32xf32>
    %903 = arith.negf %902 : vector<2x32xf32>
    %904 = math.exp %903 : vector<2x32xf32>
    %cst_290 = arith.constant 1.000000e+00 : f32
    %905 = vector.broadcast %cst_290 : f32 to vector<2x32xf32>
    %906 = arith.addf %905, %904 : vector<2x32xf32>
    %907 = arith.divf %905, %906 : vector<2x32xf32>
    %908 = vector.extract_strided_slice %895 {offsets = [0, 64], sizes = [2, 32], strides = [1, 1]} : vector<2x128xf32> to vector<2x32xf32>
    %909 = math.tanh %908 : vector<2x32xf32>
    %910 = vector.extract_strided_slice %895 {offsets = [0, 96], sizes = [2, 32], strides = [1, 1]} : vector<2x128xf32> to vector<2x32xf32>
    %911 = arith.negf %910 : vector<2x32xf32>
    %912 = math.exp %911 : vector<2x32xf32>
    %cst_291 = arith.constant 1.000000e+00 : f32
    %913 = vector.broadcast %cst_291 : f32 to vector<2x32xf32>
    %914 = arith.addf %913, %912 : vector<2x32xf32>
    %915 = arith.divf %913, %914 : vector<2x32xf32>
    %916 = arith.mulf %907, %889 : vector<2x32xf32>
    %917 = arith.mulf %901, %909 : vector<2x32xf32>
    %918 = arith.addf %916, %917 : vector<2x32xf32>
    %919 = math.tanh %918 : vector<2x32xf32>
    %920 = arith.mulf %915, %919 : vector<2x32xf32>
    %c10_292 = arith.constant 10 : index
    %c0_293 = arith.constant 0 : index
    %921 = vector.load %arg23[%c10_292, %c0_293] : memref<16x32xf32, #tpu.memory_space<vmem>>, vector<2x32xf32>
    tpu.vector_store %arg23[%c10_292, %c0_293], %920 {strides = array<i32>} : memref<16x32xf32, #tpu.memory_space<vmem>>, vector<2x32xf32>,
    %c12_294 = arith.constant 12 : index
    %c0_295 = arith.constant 0 : index
    %922 = vector.load %arg22[%c12_294, %c0_295] : memref<16x128xf32, #tpu.memory_space<vmem>>, vector<2x128xf32>
    %cst_296 = arith.constant dense<0.000000e+00> : vector<2x128xf32>
    %923 = tpu.matmul %920, %745, %cst_296 {dimension_numbers = #tpu.dot_dimension_numbers<[1], [0], [0], [1], [0, 0, 1, 1], [], []>} : vector<2x32xf32>, vector<32x128xf32>, vector<2x128xf32> -> vector<2x128xf32>
    %924 = arith.addf %922, %923 : vector<2x128xf32>
    %925 = vector.extract_strided_slice %924 {offsets = [0, 0], sizes = [2, 32], strides = [1, 1]} : vector<2x128xf32> to vector<2x32xf32>
    %926 = arith.negf %925 : vector<2x32xf32>
    %927 = math.exp %926 : vector<2x32xf32>
    %cst_297 = arith.constant 1.000000e+00 : f32
    %928 = vector.broadcast %cst_297 : f32 to vector<2x32xf32>
    %929 = arith.addf %928, %927 : vector<2x32xf32>
    %930 = arith.divf %928, %929 : vector<2x32xf32>
    %931 = vector.extract_strided_slice %924 {offsets = [0, 32], sizes = [2, 32], strides = [1, 1]} : vector<2x128xf32> to vector<2x32xf32>
    %932 = arith.negf %931 : vector<2x32xf32>
    %933 = math.exp %932 : vector<2x32xf32>
    %cst_298 = arith.constant 1.000000e+00 : f32
    %934 = vector.broadcast %cst_298 : f32 to vector<2x32xf32>
    %935 = arith.addf %934, %933 : vector<2x32xf32>
    %936 = arith.divf %934, %935 : vector<2x32xf32>
    %937 = vector.extract_strided_slice %924 {offsets = [0, 64], sizes = [2, 32], strides = [1, 1]} : vector<2x128xf32> to vector<2x32xf32>
    %938 = math.tanh %937 : vector<2x32xf32>
    %939 = vector.extract_strided_slice %924 {offsets = [0, 96], sizes = [2, 32], strides = [1, 1]} : vector<2x128xf32> to vector<2x32xf32>
    %940 = arith.negf %939 : vector<2x32xf32>
    %941 = math.exp %940 : vector<2x32xf32>
    %cst_299 = arith.constant 1.000000e+00 : f32
    %942 = vector.broadcast %cst_299 : f32 to vector<2x32xf32>
    %943 = arith.addf %942, %941 : vector<2x32xf32>
    %944 = arith.divf %942, %943 : vector<2x32xf32>
    %945 = arith.mulf %936, %918 : vector<2x32xf32>
    %946 = arith.mulf %930, %938 : vector<2x32xf32>
    %947 = arith.addf %945, %946 : vector<2x32xf32>
    %948 = math.tanh %947 : vector<2x32xf32>
    %949 = arith.mulf %944, %948 : vector<2x32xf32>
    %c12_300 = arith.constant 12 : index
    %c0_301 = arith.constant 0 : index
    %950 = vector.load %arg23[%c12_300, %c0_301] : memref<16x32xf32, #tpu.memory_space<vmem>>, vector<2x32xf32>
    tpu.vector_store %arg23[%c12_300, %c0_301], %949 {strides = array<i32>} : memref<16x32xf32, #tpu.memory_space<vmem>>, vector<2x32xf32>,
    %c14_302 = arith.constant 14 : index
    %c0_303 = arith.constant 0 : index
    %951 = vector.load %arg22[%c14_302, %c0_303] : memref<16x128xf32, #tpu.memory_space<vmem>>, vector<2x128xf32>
    %cst_304 = arith.constant dense<0.000000e+00> : vector<2x128xf32>
    %952 = tpu.matmul %949, %745, %cst_304 {dimension_numbers = #tpu.dot_dimension_numbers<[1], [0], [0], [1], [0, 0, 1, 1], [], []>} : vector<2x32xf32>, vector<32x128xf32>, vector<2x128xf32> -> vector<2x128xf32>
    %953 = arith.addf %951, %952 : vector<2x128xf32>
    %954 = vector.extract_strided_slice %953 {offsets = [0, 0], sizes = [2, 32], strides = [1, 1]} : vector<2x128xf32> to vector<2x32xf32>
    %955 = arith.negf %954 : vector<2x32xf32>
    %956 = math.exp %955 : vector<2x32xf32>
    %cst_305 = arith.constant 1.000000e+00 : f32
    %957 = vector.broadcast %cst_305 : f32 to vector<2x32xf32>
    %958 = arith.addf %957, %956 : vector<2x32xf32>
    %959 = arith.divf %957, %958 : vector<2x32xf32>
    %960 = vector.extract_strided_slice %953 {offsets = [0, 32], sizes = [2, 32], strides = [1, 1]} : vector<2x128xf32> to vector<2x32xf32>
    %961 = arith.negf %960 : vector<2x32xf32>
    %962 = math.exp %961 : vector<2x32xf32>
    %cst_306 = arith.constant 1.000000e+00 : f32
    %963 = vector.broadcast %cst_306 : f32 to vector<2x32xf32>
    %964 = arith.addf %963, %962 : vector<2x32xf32>
    %965 = arith.divf %963, %964 : vector<2x32xf32>
    %966 = vector.extract_strided_slice %953 {offsets = [0, 64], sizes = [2, 32], strides = [1, 1]} : vector<2x128xf32> to vector<2x32xf32>
    %967 = math.tanh %966 : vector<2x32xf32>
    %968 = vector.extract_strided_slice %953 {offsets = [0, 96], sizes = [2, 32], strides = [1, 1]} : vector<2x128xf32> to vector<2x32xf32>
    %969 = arith.negf %968 : vector<2x32xf32>
    %970 = math.exp %969 : vector<2x32xf32>
    %cst_307 = arith.constant 1.000000e+00 : f32
    %971 = vector.broadcast %cst_307 : f32 to vector<2x32xf32>
    %972 = arith.addf %971, %970 : vector<2x32xf32>
    %973 = arith.divf %971, %972 : vector<2x32xf32>
    %974 = arith.mulf %965, %947 : vector<2x32xf32>
    %975 = arith.mulf %959, %967 : vector<2x32xf32>
    %976 = arith.addf %974, %975 : vector<2x32xf32>
    %977 = math.tanh %976 : vector<2x32xf32>
    %978 = arith.mulf %973, %977 : vector<2x32xf32>
    %c14_308 = arith.constant 14 : index
    %c0_309 = arith.constant 0 : index
    %979 = vector.load %arg23[%c14_308, %c0_309] : memref<16x32xf32, #tpu.memory_space<vmem>>, vector<2x32xf32>
    tpu.vector_store %arg23[%c14_308, %c0_309], %978 {strides = array<i32>} : memref<16x32xf32, #tpu.memory_space<vmem>>, vector<2x32xf32>,
    %c0_310 = arith.constant 0 : index
    %c0_311 = arith.constant 0 : index
    %980 = vector.load %arg23[%c0_310, %c0_311] : memref<16x32xf32, #tpu.memory_space<vmem>>, vector<16x32xf32>
    %c0_312 = arith.constant 0 : index
    %c0_313 = arith.constant 0 : index
    %981 = vector.load %arg17[%c0_312, %c0_313] : memref<32x32xf32, #tpu.memory_space<vmem>>, vector<32x32xf32>
    %cst_314 = arith.constant dense<0.000000e+00> : vector<16x32xf32>
    %982 = tpu.matmul %980, %981, %cst_314 {dimension_numbers = #tpu.dot_dimension_numbers<[1], [0], [0], [1], [0, 0, 1, 1], [], []>} : vector<16x32xf32>, vector<32x32xf32>, vector<16x32xf32> -> vector<16x32xf32>
    %c0_315 = arith.constant 0 : index
    %c0_316 = arith.constant 0 : index
    %983 = vector.load %arg18[%c0_315, %c0_316] : memref<1x32xf32, #tpu.memory_space<vmem>>, vector<1x32xf32>
    %984 = vector.broadcast %983 : vector<1x32xf32> to vector<16x32xf32>
    %985 = arith.addf %982, %984 : vector<16x32xf32>
    %cst_317 = arith.constant 0.000000e+00 : f32
    %986 = vector.broadcast %cst_317 : f32 to vector<16x32xf32>
    %987 = arith.maximumf %985, %986 : vector<16x32xf32>
    %c0_318 = arith.constant 0 : index
    %c0_319 = arith.constant 0 : index
    %988 = vector.load %arg19[%c0_318, %c0_319] : memref<32x16xf32, #tpu.memory_space<vmem>>, vector<32x16xf32>
    %cst_320 = arith.constant dense<0.000000e+00> : vector<16x16xf32>
    %989 = tpu.matmul %987, %988, %cst_320 {dimension_numbers = #tpu.dot_dimension_numbers<[1], [0], [0], [1], [0, 0, 1, 1], [], []>} : vector<16x32xf32>, vector<32x16xf32>, vector<16x16xf32> -> vector<16x16xf32>
    %c0_321 = arith.constant 0 : index
    %c0_322 = arith.constant 0 : index
    %990 = vector.load %arg20[%c0_321, %c0_322] : memref<1x16xf32, #tpu.memory_space<vmem>>, vector<1x16xf32>
    %991 = vector.broadcast %990 : vector<1x16xf32> to vector<16x16xf32>
    %992 = arith.addf %989, %991 : vector<16x16xf32>
    %c0_323 = arith.constant 0 : index
    %c0_324 = arith.constant 0 : index
    %993 = vector.load %arg21[%c0_323, %c0_324] : memref<16x16xf32, #tpu.memory_space<vmem>>, vector<16x16xf32>
    tpu.vector_store %arg21[%c0_323, %c0_324], %992 {strides = array<i32>} : memref<16x16xf32, #tpu.memory_space<vmem>>, vector<16x16xf32>,
    return
  }
}

</mosaic_0001>

<bundles_post_ra>
// kernel: lstmae_forward.1
= control target key start
LH: loop header
LB: loop body
LE: loop exit
PB: predicated region body
PF: predicated region fallthrough
CT: control target
= control target key end

     0   :  { %s6576_s0 = inlined_call_operand.vmem [shape: f32[16,16], index: 0, kind: input, shape index: {}]   ;;  %s6577_s1 = inlined_call_operand.hbm [shape: f32[16,32], index: 1, kind: input, shape index: {}]   ;;  %s6578_s2 = inlined_call_operand.vmem [shape: f32[1,32], index: 2, kind: input, shape index: {}]   ;;  %s6579_s3 = inlined_call_operand.vmem [shape: f32[32,32], index: 3, kind: input, shape index: {}]   ;;  %s6580_s4 = inlined_call_operand.hbm [shape: f32[1,32], index: 4, kind: input, shape index: {}]   ;;  %s6581_s5 = inlined_call_operand.vmem [shape: f32[32,128], index: 5, kind: input, shape index: {}]   ;;  %s6582_s6 = inlined_call_operand.vmem [shape: f32[32,128], index: 6, kind: input, shape index: {}]   ;;  %s6583_s7 = inlined_call_operand.hbm [shape: f32[1,128], index: 7, kind: input, shape index: {}]   ;;  %s6584_s8 = inlined_call_operand.vmem [shape: f32[32,128], index: 8, kind: input, shape index: {}]   ;;  %s6585_s9 = inlined_call_operand.hbm [shape: f32[32,128], index: 9, kind: input, shape index: {}]   ;;  %s6586_s10 = inlined_call_operand.vmem [shape: f32[1,128], index: 10, kind: input, shape index: {}]   ;;  %s6587_s11 = inlined_call_operand.hbm [shape: f32[32,128], index: 11, kind: input, shape index: {}]   ;;  %s6588_s12 = inlined_call_operand.hbm [shape: f32[32,128], index: 12, kind: input, shape index: {}]   ;;  %s6589_s13 = inlined_call_operand.vmem [shape: f32[1,128], index: 13, kind: input, shape index: {}]   ;;  %s6590_s14 = inlined_call_operand.hbm [shape: f32[32,128], index: 14, kind: input, shape index: {}]   ;;  %s6591_s15 = inlined_call_operand.hbm [shape: f32[32,128], index: 15, kind: input, shape index: {}]   ;;  %s6592_s16 = inlined_call_operand.vmem [shape: f32[1,128], index: 16, kind: input, shape index: {}]   ;;  %s6593_s17 = inlined_call_operand.hbm [shape: f32[32,32], index: 17, kind: input, shape index: {}]   ;;  %s6594_s18 = inlined_call_operand.hbm [shape: f32[1,32], index: 18, kind: input, shape index: {}]   ;;  %s6595_s19 = inlined_call_operand.vmem [shape: f32[32,16], index: 19, kind: input, shape index: {}]   ;;  %s6596_s20 = inlined_call_operand.hbm [shape: f32[1,16], index: 20, kind: input, shape index: {}]   ;;  %s6597_s21 = inlined_call_operand.vmem [shape: f32[16,16], index: 21, kind: output, shape index: {}]  }
   0x1   :  { %6603 = sst [smem:[#allocation27_spill]] %s6576_s0 }
   0x2   :  { %6604 = sst [smem:[#allocation28_spill]] %s6577_s1 }
   0x3   :  { %6605 = sst [smem:[#allocation29_spill]] %s6578_s2 }
   0x4   :  { %6606 = sst [smem:[#allocation30_spill]] %s6579_s3 }
   0x5   :  { %6607 = sst [smem:[#allocation31_spill]] %s6580_s4 }
   0x6   :  { %6608 = sst [smem:[#allocation32_spill]] %s6581_s5 }
   0x7   :  { %26 = vsyncpa [#allocation5], 0 }
   0x8   :  { %27 = vsyncpa [#allocation7], 0 }
   0x9   :  { %28 = vsyncpa [#allocation10], 0 }
   0xa   :  { %29 = vsyncpa [#allocation13], 0 }
   0xb   :  { %30 = vsyncpa [#allocation16], 0 }
   0xc   :  { %31 = vsyncpa [#allocation19], 0  ;;  %s5793_s2 = smov [#allocation6]   ;;  %s6609_s3 = sld [smem:[#allocation31_spill]] }
   0xd   :  { %s56_s25 = sshll.u32 %s5793_s2, 4  ;;  %s57_s25 = int_to_ptr.vmem [resolvable:$true] %s56_s25 }
  0x12   :  { %s5539_s28 = scalar_lea.hbm %s6609_s3, 16 }
  0x13   :  { %p5540_p0 = scmp.ne.s32.totalorder %s6609_s3, %s5539_s28  ;;  %p5543_p1 = scmp.lt.u32.totalorder %s5539_s28, %s6609_s3 }
  0x15   :  { %p5545_p2 = pnand %p5543_p1, %p5540_p0 }
  0x17   :  { %5548 = shalt.err (!%p5545_p2)
}
  0x18   :  { %s5549_s5 = scalar_lea.vmem %s57_s25, 16  ;;  %s5553_s22 = scalar_lea.vmem %s57_s25, 32 }
  0x19   :  { %p5550_p3 = scmp.ne.s32.totalorder %s57_s25, %s5549_s5  ;;  %p5554_p4 = scmp.lt.s32.totalorder %s57_s25, %s57_s25 }
  0x1a   :  { %p5555_p5 = scmp.lt.s32.totalorder %s5553_s22, %s5549_s5 }
  0x1c   :  { %p5556_p6 = por %p5555_p5, %p5554_p4 }
  0x1e   :  { %p5557_p7 = pnand %p5556_p6, %p5550_p3 }
  0x20   :  { %5560 = shalt.err (!%p5557_p7)
}
  0x21   :  { %59 = dma.hbm_to_vmem [thread:$0]  %s6609_s3, 16, %s57_s25, [#allocation7]  }
  0x22   :  { %s5794_s24 = smov [#allocation9]   ;;  %s5795_s26 = smov [#allocation12]  }
  0x23   :  { %s81_s2 = sshll.u32 %s5794_s24, 4  ;;  %s107_s27 = sshll.u32 %s5795_s26, 4  ;;  %s82_s2 = int_to_ptr.vmem [resolvable:$true] %s81_s2  ;;  %s108_s27 = int_to_ptr.vmem [resolvable:$true] %s107_s27 }
  0x24   :  { %s5561_s0 = scalar_lea.hbm %s6585_s9, 512 }
  0x25   :  { %p5562_p8 = scmp.ne.s32.totalorder %s6585_s9, %s5561_s0  ;;  %p5565_p9 = scmp.lt.u32.totalorder %s5561_s0, %s6585_s9 }
  0x27   :  { %p5567_p10 = pnand %p5565_p9, %p5562_p8 }
  0x29   :  { %5570 = shalt.err (!%p5567_p10)
}
  0x2a   :  { %s5571_s25 = scalar_lea.vmem %s82_s2, 512  ;;  %p5576_p12 = scmp.lt.s32.totalorder %s82_s2, %s82_s2 }
  0x2b   :  { %p5572_p11 = scmp.ne.s32.totalorder %s82_s2, %s5571_s25  ;;  %p5577_p13 = scmp.lt.s32.totalorder %s5571_s25, %s5571_s25 }
  0x2d   :  { %p5578_p0 = por %p5577_p13, %p5576_p12 }
  0x2f   :  { %p5579_p1 = pnand %p5578_p0, %p5572_p11 }
  0x31   :  { %5582 = shalt.err (!%p5579_p1)
}
  0x32   :  { %s5796_s3 = smov 128   ;;  %s5797_s23 = smov 8  }
  0x33   :  { %87 = dma.hbm_to_vmem [thread:$0]  %s6585_s9, 512, %s82_s2, [#allocation10], %s5796_s3, %s5796_s3, %s5797_s23  }
  0x34   :  { %s5583_s29 = scalar_lea.hbm %s6588_s12, 512 }
  0x35   :  { %p5584_p2 = scmp.ne.s32.totalorder %s6588_s12, %s5583_s29  ;;  %p5587_p3 = scmp.lt.u32.totalorder %s5583_s29, %s6588_s12 }
  0x37   :  { %p5589_p4 = pnand %p5587_p3, %p5584_p2 }
  0x39   :  { %5592 = shalt.err (!%p5589_p4)
}
  0x3a   :  { %s5593_s22 = scalar_lea.vmem %s108_s27, 512  ;;  %p5598_p6 = scmp.lt.s32.totalorder %s108_s27, %s108_s27 }
  0x3b   :  { %p5594_p5 = scmp.ne.s32.totalorder %s108_s27, %s5593_s22  ;;  %p5599_p7 = scmp.lt.s32.totalorder %s5593_s22, %s5593_s22 }
  0x3d   :  { %p5600_p8 = por %p5599_p7, %p5598_p6 }
  0x3f   :  { %p5601_p9 = pnand %p5600_p8, %p5594_p5 }
  0x41   :  { %5604 = shalt.err (!%p5601_p9)
}
  0x42   :  { %113 = dma.hbm_to_vmem [thread:$0]  %s6588_s12, 512, %s108_s27, [#allocation13], %s5796_s3, %s5796_s3, %s5797_s23  }
  0x43   :  { %s5798_s25 = smov [#allocation15]   ;;  %s5799_s24 = smov [#allocation18]  }
  0x44   :  { %s133_s1 = sshll.u32 %s5798_s25, 4  ;;  %s160_s26 = sshll.u32 %s5799_s24, 4  ;;  %s134_s1 = int_to_ptr.vmem [resolvable:$true] %s133_s1  ;;  %s161_s26 = int_to_ptr.vmem [resolvable:$true] %s160_s26 }
  0x45   :  { %s5605_s0 = scalar_lea.hbm %s6591_s15, 512 }
  0x46   :  { %p5606_p10 = scmp.ne.s32.totalorder %s6591_s15, %s5605_s0  ;;  %p5609_p11 = scmp.lt.u32.totalorder %s5605_s0, %s6591_s15 }
  0x48   :  { %p5611_p12 = pnand %p5609_p11, %p5606_p10 }
  0x4a   :  { %5614 = shalt.err (!%p5611_p12)
}
  0x4b   :  { %s5615_s12 = scalar_lea.vmem %s134_s1, 512  ;;  %p5620_p0 = scmp.lt.s32.totalorder %s134_s1, %s134_s1 }
  0x4c   :  { %p5616_p13 = scmp.ne.s32.totalorder %s134_s1, %s5615_s12  ;;  %p5621_p1 = scmp.lt.s32.totalorder %s5615_s12, %s5615_s12 }
  0x4e   :  { %p5622_p2 = por %p5621_p1, %p5620_p0 }
  0x50   :  { %p5623_p3 = pnand %p5622_p2, %p5616_p13 }
  0x52   :  { %5626 = shalt.err (!%p5623_p3)
}
  0x53   :  { %139 = dma.hbm_to_vmem [thread:$0]  %s6591_s15, 512, %s134_s1, [#allocation16], %s5796_s3, %s5796_s3, %s5797_s23  }
  0x54   :  { %s5627_s24 = scalar_lea.hbm %s6594_s18, 16 }
  0x55   :  { %p5628_p4 = scmp.ne.s32.totalorder %s6594_s18, %s5627_s24  ;;  %p5631_p5 = scmp.lt.u32.totalorder %s5627_s24, %s6594_s18 }
  0x57   :  { %p5633_p6 = pnand %p5631_p5, %p5628_p4 }
  0x59   :  { %5636 = shalt.err (!%p5633_p6)
}
  0x5a   :  { %s5637_s30 = scalar_lea.vmem %s161_s26, 16  ;;  %s5641_s5 = scalar_lea.vmem %s161_s26, 32 }
  0x5b   :  { %p5638_p7 = scmp.ne.s32.totalorder %s161_s26, %s5637_s30  ;;  %p5642_p8 = scmp.lt.s32.totalorder %s161_s26, %s161_s26 }
  0x5c   :  { %p5643_p9 = scmp.lt.s32.totalorder %s5641_s5, %s5637_s30 }
  0x5e   :  { %p5644_p10 = por %p5643_p9, %p5642_p8 }
  0x60   :  { %p5645_p11 = pnand %p5644_p10, %p5638_p7 }
  0x62   :  { %5648 = shalt.err (!%p5645_p11)
}
  0x63   :  { %163 = dma.hbm_to_vmem [thread:$0]  %s6594_s18, 16, %s161_s26, [#allocation19]  }
  0x64   :  { %s5800_s22 = smov [#allocation4]   ;;  %s5801_s27 = smov [#allocation8]  }
  0x65   :  { %s39_s12 = sshll.u32 %s5800_s22, 4  ;;  %s70_s9 = sshll.u32 %s5801_s27, 4  ;;  %s40_s12 = int_to_ptr.vmem [resolvable:$true] %s39_s12  ;;  %s71_s9 = int_to_ptr.vmem [resolvable:$true] %s70_s9 }
  0x66   :  { %s6610_s24 = sld [smem:[#allocation28_spill]] }
  0x6c   :  { %s5649_s28 = scalar_lea.hbm %s6610_s24, 256 }
  0x6d   :  { %p5650_p12 = scmp.ne.s32.totalorder %s6610_s24, %s5649_s28  ;;  %p5653_p13 = scmp.lt.u32.totalorder %s5649_s28, %s6610_s24 }
  0x6f   :  { %p5655_p0 = pnand %p5653_p13, %p5650_p12 }
  0x71   :  { %5658 = shalt.err (!%p5655_p0)
}
  0x72   :  { %s5659_s18 = scalar_lea.vmem %s40_s12, 256  ;;  %p5664_p2 = scmp.lt.s32.totalorder %s40_s12, %s40_s12 }
  0x73   :  { %p5660_p1 = scmp.ne.s32.totalorder %s40_s12, %s5659_s18  ;;  %p5665_p3 = scmp.lt.s32.totalorder %s5659_s18, %s5659_s18 }
  0x75   :  { %p5666_p4 = por %p5665_p3, %p5664_p2 }
  0x77   :  { %p5667_p5 = pnand %p5666_p4, %p5660_p1 }
  0x79   :  { %5670 = shalt.err (!%p5667_p5)
}
  0x7a   :  { %45 = dma.hbm_to_vmem [thread:$0]  %s6610_s24, 256, %s40_s12, [#allocation5], %s5796_s3, %s5796_s3, %s5797_s23  }
  0x7b   :  { %s5671_s22 = scalar_lea.hbm %s6583_s7, 16 }
  0x7c   :  { %p5672_p6 = scmp.ne.s32.totalorder %s6583_s7, %s5671_s22  ;;  %p5675_p7 = scmp.lt.u32.totalorder %s5671_s22, %s6583_s7 }
  0x7e   :  { %p5677_p8 = pnand %p5675_p7, %p5672_p6 }
  0x80   :  { %5680 = shalt.err (!%p5677_p8)
}
  0x81   :  { %s5681_s29 = scalar_lea.vmem %s71_s9, 16  ;;  %s5685_s0 = scalar_lea.vmem %s71_s9, 32 }
  0x82   :  { %p5682_p9 = scmp.ne.s32.totalorder %s71_s9, %s5681_s29  ;;  %p5686_p10 = scmp.lt.s32.totalorder %s71_s9, %s71_s9 }
  0x83   :  { %p5687_p11 = scmp.lt.s32.totalorder %s5685_s0, %s5681_s29 }
  0x85   :  { %p5688_p12 = por %p5687_p11, %p5686_p10 }
  0x87   :  { %p5689_p13 = pnand %p5688_p12, %p5682_p9 }
  0x89   :  { %5692 = shalt.err (!%p5689_p13)
}
  0x8a   :  { %73 = dma.hbm_to_vmem [thread:$0]  %s6583_s7, 16, %s71_s9, [#allocation7]  }
  0x8b   :  { %s5802_s4 = smov [#allocation11]   ;;  %s5803_s18 = smov [#allocation14]  }
  0x8c   :  { %s95_s30 = sshll.u32 %s5802_s4, 4  ;;  %s121_s26 = sshll.u32 %s5803_s18, 4  ;;  %s96_s30 = int_to_ptr.vmem [resolvable:$true] %s95_s30  ;;  %s122_s26 = int_to_ptr.vmem [resolvable:$true] %s121_s26 }
  0x8d   :  { %s5693_s1 = scalar_lea.hbm %s6587_s11, 512 }
  0x8e   :  { %p5694_p0 = scmp.ne.s32.totalorder %s6587_s11, %s5693_s1  ;;  %p5697_p1 = scmp.lt.u32.totalorder %s5693_s1, %s6587_s11 }
  0x90   :  { %p5699_p2 = pnand %p5697_p1, %p5694_p0 }
  0x92   :  { %5702 = shalt.err (!%p5699_p2)
}
  0x93   :  { %s5703_s7 = scalar_lea.vmem %s96_s30, 512  ;;  %p5708_p4 = scmp.lt.s32.totalorder %s96_s30, %s96_s30 }
  0x94   :  { %p5704_p3 = scmp.ne.s32.totalorder %s96_s30, %s5703_s7  ;;  %p5709_p5 = scmp.lt.s32.totalorder %s5703_s7, %s5703_s7 }
  0x96   :  { %p5710_p6 = por %p5709_p5, %p5708_p4 }
  0x98   :  { %p5711_p7 = pnand %p5710_p6, %p5704_p3 }
  0x9a   :  { %5714 = shalt.err (!%p5711_p7)
}
  0x9b   :  { %101 = dma.hbm_to_vmem [thread:$0]  %s6587_s11, 512, %s96_s30, [#allocation10], %s5796_s3, %s5796_s3, %s5797_s23  }
  0x9c   :  { %s5715_s12 = scalar_lea.hbm %s6590_s14, 512 }
  0x9d   :  { %p5716_p8 = scmp.ne.s32.totalorder %s6590_s14, %s5715_s12  ;;  %p5719_p9 = scmp.lt.u32.totalorder %s5715_s12, %s6590_s14 }
  0x9f   :  { %p5721_p10 = pnand %p5719_p9, %p5716_p8 }
  0xa1   :  { %5724 = shalt.err (!%p5721_p10)
}
  0xa2   :  { %s5725_s15 = scalar_lea.vmem %s122_s26, 512  ;;  %p5730_p12 = scmp.lt.s32.totalorder %s122_s26, %s122_s26 }
  0xa3   :  { %p5726_p11 = scmp.ne.s32.totalorder %s122_s26, %s5725_s15  ;;  %p5731_p13 = scmp.lt.s32.totalorder %s5725_s15, %s5725_s15 }
  0xa5   :  { %p5732_p0 = por %p5731_p13, %p5730_p12 }
  0xa7   :  { %p5733_p1 = pnand %p5732_p0, %p5726_p11 }
  0xa9   :  { %5736 = shalt.err (!%p5733_p1)
}
  0xaa   :  { %127 = dma.hbm_to_vmem [thread:$0]  %s6590_s14, 512, %s122_s26, [#allocation13], %s5796_s3, %s5796_s3, %s5797_s23  }
  0xab   :  { %s5804_s1 = smov [#allocation17]   ;;  %s5805_s27 = smov [#allocation20]  }
  0xac   :  { %s147_s22 = sshll.u32 %s5804_s1, 4  ;;  %s172_s2 = sshll.u32 %s5805_s27, 4  ;;  %s148_s22 = int_to_ptr.vmem [resolvable:$true] %s147_s22  ;;  %s173_s2 = int_to_ptr.vmem [resolvable:$true] %s172_s2 }
  0xad   :  { %s5737_s9 = scalar_lea.hbm %s6593_s17, 512 }
  0xae   :  { %p5738_p2 = scmp.ne.s32.totalorder %s6593_s17, %s5737_s9  ;;  %p5741_p3 = scmp.lt.u32.totalorder %s5737_s9, %s6593_s17 }
  0xb0   :  { %p5743_p4 = pnand %p5741_p3, %p5738_p2 }
  0xb2   :  { %5746 = shalt.err (!%p5743_p4)
}
  0xb3   :  { %s5747_s14 = scalar_lea.vmem %s148_s22, 512  ;;  %p5752_p6 = scmp.lt.s32.totalorder %s148_s22, %s148_s22 }
  0xb4   :  { %p5748_p5 = scmp.ne.s32.totalorder %s148_s22, %s5747_s14  ;;  %p5753_p7 = scmp.lt.s32.totalorder %s5747_s14, %s5747_s14 }
  0xb6   :  { %p5754_p8 = por %p5753_p7, %p5752_p6 }
  0xb8   :  { %p5755_p9 = pnand %p5754_p8, %p5748_p5 }
  0xba   :  { %5758 = shalt.err (!%p5755_p9)
}
  0xbb   :  { %153 = dma.hbm_to_vmem [thread:$0]  %s6593_s17, 512, %s148_s22, [#allocation16], %s5796_s3, %s5796_s3, %s5797_s23  }
  0xbc   :  { %s5759_s5 = scalar_lea.hbm %s6596_s20, 16 }
  0xbd   :  { %p5760_p10 = scmp.ne.s32.totalorder %s6596_s20, %s5759_s5  ;;  %p5763_p11 = scmp.lt.u32.totalorder %s5759_s5, %s6596_s20 }
  0xbf   :  { %p5765_p12 = pnand %p5763_p11, %p5760_p10 }
  0xc1   :  { %5768 = shalt.err (!%p5765_p12)
}
  0xc2   :  { %s5769_s27 = scalar_lea.vmem %s173_s2, 16  ;;  %s5773_s25 = scalar_lea.vmem %s173_s2, 32 }
  0xc3   :  { %p5770_p13 = scmp.ne.s32.totalorder %s173_s2, %s5769_s27  ;;  %p5774_p0 = scmp.lt.s32.totalorder %s173_s2, %s173_s2 }
  0xc4   :  { %p5775_p1 = scmp.lt.s32.totalorder %s5773_s25, %s5769_s27 }
  0xc6   :  { %p5776_p2 = por %p5775_p1, %p5774_p0 }
  0xc8   :  { %p5777_p3 = pnand %p5776_p2, %p5770_p13 }
  0xca   :  { %5780 = shalt.err (!%p5777_p3)
}
  0xcb   :  { %175 = dma.hbm_to_vmem [thread:$0]  %s6596_s20, 16, %s173_s2, [#allocation19]  }
  0xcc   :  { %5781 = dma.done.wait [#allocation5], 256  }
  0xcd   :  { %5782 = vsyncadd [#allocation5], 4294967040 }
  0xce   :  { %5783 = dma.done.wait [#allocation7], 32  }
  0xcf   :  { %5784 = vsyncadd [#allocation7], 4294967264 }
  0xd0   :  { %5785 = dma.done.wait [#allocation10], 1024  }
  0xd1   :  { %5786 = vsyncadd [#allocation10], 4294966272 }
  0xd2   :  { %5787 = dma.done.wait [#allocation13], 1024  }
  0xd3   :  { %5788 = vsyncadd [#allocation13], 4294966272 }
  0xd4   :  { %5789 = dma.done.wait [#allocation16], 1024  }
  0xd5   :  { %5790 = vsyncadd [#allocation16], 4294966272 }
  0xd6   :  { %5791 = dma.done.wait [#allocation19], 32  }
  0xd7   :  { %5792 = vsyncadd [#allocation19], 4294967264  ;;  %vm220_vm0 = vcmask 130048   ;;  %v211_v0 = vld [vmem:[#allocation4] sm:$0xff]  ;;  %v212_v1 = vld [vmem:[#allocation4 + $0x8] sm:$0xff]  ;;  %s6611_s7 = sld [smem:[#allocation27_spill]] }
  0xd8   :  { %v5013_v3 = vpack.c.bf16 %v212_v1, %v211_v0  ;;  %s6612_s9 = sld [smem:[#allocation30_spill]]  ;;  %s6613_s15 = sld [smem:[#allocation32_spill]]  ;;  %vm315_vm1 = vcmask 261120   ;;  %v491_v24 = vld [vmem:[%s6582_s6] sm:$0xff]  ;;  %v492_v25 = vld [vmem:[%s6582_s6 + $0x8] sm:$0xff]  ;;  %v493_v26 = vld [vmem:[%s6582_s6 + $0x10] sm:$0xff] }
  0xd9   :  { %s6614_s25 = sld [smem:[#allocation29_spill]]  ;;  %v5806_v27 = vmov 0.0|0.0   ;;  %v6121_v28 = vpack.c.bf16 %v492_v25, %v491_v24  ;;  %v494_v29 = vld [vmem:[%s6582_s6 + $0x18] sm:$0xff]  ;;  %vm5807_vm2 = vmmov 0   ;;  %v5808_v30 = vmov 0.0   ;;  %s5809_s6 = smov 64  }
  0xda   :  { %5014 = vmatprep.subr.bf16.mxu0 %v5013_v3  ;;  %v6130_v31 = vpack.c.bf16 %v494_v29, %v493_v26  ;;  %v4290_v32 = vld [vmem:[#allocation6] ss:$0 sm:$0xff]  ;;  %v4293_v39 = vld [vmem:[#allocation8] ss:$0 sm:$0xff]  ;;  %s5810_s14 = smov 32   ;;  %vm598_vm3 = vcmask 254976  }
  0xdb   :  { %5016 = vmatpush3.bf16.msra.mxu0 %v5013_v3 }
  0xdd   :  { %v209_v2 = vld [vmem:[%s6611_s7] sm:$0xff]  ;;  %v210_v7 = vld [vmem:[%s6611_s7 + $0x8] sm:$0xff] }
  0xde   :  { %4581 = vmatprep.mubr.msk.f32.mxu0 %vm220_vm0, %v209_v2  ;;  %v304_v4 = vld [vmem:[%s6612_s9] sm:$0xff]  ;;  %v305_v5 = vld [vmem:[%s6612_s9 + $0x8] sm:$0xff]  ;;  %v306_v8 = vld [vmem:[%s6612_s9 + $0x10] sm:$0xff] }
  0xdf   :  { %v5017_v6 = vpack.c.bf16 %v305_v5, %v304_v4  ;;  %4582 = vmatmul.mubr.msk.f32.vlgmr.msra.gmra.mrb[0].mxu0 %vm220_vm0, %v210_v7  ;;  %v307_v9 = vld [vmem:[%s6612_s9 + $0x18] sm:$0xff]  ;;  %v397_v11 = vld [vmem:[%s6613_s15] sm:$0xff]  ;;  %v398_v12 = vld [vmem:[%s6613_s15 + $0x8] sm:$0xff] }
  0xe0   :  { %v5021_v10 = vpack.c.bf16 %v307_v9, %v306_v8  ;;  %v5025_v13 = vpack.c.bf16 %v398_v12, %v397_v11  ;;  %v4287_v14 = vld [vmem:[%s6614_s25] ss:$0 sm:$0xff]  ;;  %v399_v21 = vld [vmem:[%s6613_s15 + $0x10] sm:$0xff]  ;;  %v400_v22 = vld [vmem:[%s6613_s15 + $0x18] sm:$0xff] }
  0xe1   :  { %5018 = vmatprep.subr.bf16.mxu1 %v5017_v6  ;;  %v5029_v23 = vpack.c.bf16 %v400_v22, %v399_v21 }
  0xe2   :  { %5020 = vmatpush3.bf16.msra.mxu1 %v5017_v6  ;;  %5026 = vmatprep.subr.bf16.mxu0 %v5025_v13 }
  0xe3   :  { %5022 = vmatprep.subr.bf16.mxu1 %v5021_v10  ;;  %5028 = vmatpush3.bf16.msra.mxu0 %v5025_v13 }
  0xe4   :  { %5030 = vmatprep.subr.bf16.mxu0 %v5029_v23 }
  0xe6   :  { %5024 = vmatpush3.bf16.msra.mxu1 %v5021_v10 }
  0xe7   :  { %5032 = vmatpush3.bf16.msra.mxu0 %v5029_v23  ;;  %5033 = vmatprep.subr.bf16.mxu1 %v5806_v27 }
  0xe8   :  { %5039 = vmatprep.subr.bf16.mxu0 %v5806_v27 }
 0x1b2   :  { %v4583_v15 = vpop.f32.mrb[0].mxu0 }
 0x1b3   :  { %v299_v16 = vadd.f32 %v4583_v15, %v4287_v14  ;;  %v293_v17 = vpop.f32.mrb[1].mxu0 }
 0x1b4   :  { %v294_v18 = vadd.f32 %v4287_v14, %v293_v17 }
 0x1b5   :  { %v303_v20 = vmax.f32 %v299_v16, 0.0 }
 0x1b6   :  { %v302_v19 = vmax.f32 %v294_v18, 0.0 }
 0x1b8   :  { %4592 = vmatprep.mubr.msk.f32.mxu1 %vm315_vm1, %v302_v19 }
 0x1b9   :  { %4593 = vmatmul.mubr.msk.f32.vlgmr.msra.gmra.mrb[0].mxu1 %vm315_vm1, %v303_v20 }
 0x1ba   :  { %4614 = vmatprep.mubr.msk.f32.mxu1 %vm5807_vm2, %v5808_v30  ;;  %5035 = vmatpush3.bf16.msra.mxu1 %v6121_v28 }
 0x1bb   :  { %5036 = vmatprep.subr.bf16.mxu1 %v5806_v27 }
 0x1be   :  { %5038 = vmatpush3.bf16.msra.mxu1 %v6130_v31 }
 0x1bf   :  { %5045 = vmatprep.subr.bf16.mxu1 %v5806_v27 }
 0x1c1   :  { %4615 = vmatmul.mubr.f32.vlgmr.msra.gmra.mrb[2].mxu1 %v5808_v30 }
 0x1c2   :  { %5047 = vmatpush3.bf16.msra.mxu1 %v6121_v28  ;;  %4636 = vmatprep.mubr.msk.f32.mxu1 %vm5807_vm2, %v5808_v30 }
 0x1c3   :  { %5048 = vmatprep.subr.bf16.mxu1 %v5806_v27 }
 0x1c6   :  { %5050 = vmatpush3.bf16.msra.mxu1 %v6130_v31 }
 0x1c7   :  { %5057 = vmatprep.subr.bf16.mxu1 %v5806_v27 }
 0x28c   :  { %v4594_v33 = vpop.f32.mrb[0].mxu1 }
 0x28d   :  { %v388_v34 = vpop.f32.mrb[1].mxu1  ;;  %v394_v36 = vadd.f32 %v4594_v33, %v4290_v32 }
 0x28e   :  { %v389_v35 = vadd.f32 %v4290_v32, %v388_v34 }
 0x290   :  { %4603 = vmatprep.mubr.msk.f32.mxu0 %vm315_vm1, %v389_v35 }
 0x291   :  { %4604 = vmatmul.mubr.msk.f32.vlgmr.msra.gmra.mrb[2].mxu0 %vm315_vm1, %v394_v36 }
 0x292   :  { %5041 = vmatpush3.bf16.msra.mxu0 %v6121_v28  ;;  %4625 = vmatprep.mubr.msk.f32.mxu0 %vm5807_vm2, %v5808_v30 }
 0x293   :  { %5042 = vmatprep.subr.bf16.mxu0 %v5806_v27 }
 0x294   :  { %v565_v37 = vpop.f32.mrb[2].mxu1 }
 0x295   :  { %v4616_v38 = vpop.f32.mrb[3].mxu1 }
 0x296   :  { %5044 = vmatpush3.bf16.msra.mxu0 %v6130_v31 }
 0x297   :  { %5051 = vmatprep.subr.bf16.mxu0 %v5806_v27 }
 0x364   :  { %v4605_v40 = vpop.f32.mrb[2].mxu0 }
 0x365   :  { %v486_v41 = vadd.f32 %v4605_v40, %v4293_v39  ;;  %v480_v42 = vpop.f32.mrb[3].mxu0 }
 0x366   :  { %v481_v43 = vadd.f32 %v4293_v39, %v480_v42 }
 0x367   :  { %490 = vst [vmem:[#allocation2 + $0x8] sm:$0xff] %v486_v41 }
 0x368   :  { %489 = vst [vmem:[#allocation2] sm:$0xff] %v481_v43 }
 0x36f   :  { %v495_v44 = vld [vmem:[#allocation2] sm:$0x3]  ;;  %v600_v60 = vld [vmem:[#allocation2 + $0x2] sm:$0x3]  ;;  %v703_v14 = vld [vmem:[#allocation2 + $0x4] sm:$0x3] }
 0x370   :  { %v569_v45 = vadd.f32 %v565_v37, %v495_v44  ;;  %v806_v36 = vld [vmem:[#allocation2 + $0x6] sm:$0x3] }
 0x372   :  { %5283 = vtanh.f32 %v569_v45  ;;  %v4296_v47 = vmul.f32 -1.442695, %v569_v45 }
 0x374   :  { %5285 = vpow2.f32 %v4296_v47 }
 0x37c   :  { %v5284_v46 = vpop.eup %5283 }
 0x37d   :  { %579 = vrot.lane.b32.xlu0 %v5284_v46, %s5809_s6 }
 0x37e   :  { %v5286_v48 = vpop.eup %5285 }
 0x37f   :  { %v573_v49 = vadd.f32 1.0, %v5286_v48 }
 0x381   :  { %5287 = vrcp.f32 %v573_v49 }
 0x38b   :  { %v5288_v50 = vpop.eup %5287 }
 0x38c   :  { %v577_v53 = vmul.f32 0.0, %v5288_v50 }
 0x3ef   :  { %v580_v51 = vpop.permute.xlu0 %579 }
 0x3f0   :  { %v582_v52 = vmul.f32 %v5288_v50, %v580_v51 }
 0x3f2   :  { %584 = vrot.lane.b32.xlu0 %v582_v52, %s5810_s14 }
 0x464   :  { %v585_v54 = vpop.permute.xlu0 %584 }
 0x465   :  { %v587_v55 = vadd.f32 %v585_v54, %v577_v53  ;;  %v909_v54 = vld [vmem:[#allocation2 + $0x8] sm:$0x3] }
 0x467   :  { %5289 = vtanh.f32 %v587_v55 }
 0x471   :  { %v5290_v56 = vpop.eup %5289 }
 0x472   :  { %590 = vrot.lane.b32.xlu1 %v5290_v56, %s5809_s6 }
 0x4e4   :  { %v591_v57 = vpop.permute.xlu1 %590 }
 0x4e5   :  { %v593_v58 = vmul.f32 %v5288_v50, %v591_v57 }
 0x4e7   :  { %595 = vrot.lane.b32.xlu1 %v593_v58, %s5810_s14 }
 0x559   :  { %v596_v59 = vpop.permute.xlu1 %595 }
 0x55a   :  { %599 = vst.msk [vmem:[#allocation3] sm:$0x3] %vm598_vm3, %v596_v59  ;;  %4626 = vmatmul.mubr.msk.f32.vlgmr.msra.gmra.mrb[4].mxu0 %vm315_vm1, %v596_v59 }
 0x55b   :  { %5053 = vmatpush3.bf16.msra.mxu0 %v6121_v28  ;;  %4647 = vmatprep.mubr.msk.f32.mxu0 %vm5807_vm2, %v5808_v30 }
 0x55c   :  { %5054 = vmatprep.subr.bf16.mxu0 %v5806_v27 }
 0x55f   :  { %5056 = vmatpush3.bf16.msra.mxu0 %v6130_v31 }
 0x560   :  { %5063 = vmatprep.subr.bf16.mxu0 %v5806_v27 }
 0x62d   :  { %v669_v61 = vpop.f32.mrb[4].mxu0 }
 0x62e   :  { %v673_v62 = vadd.f32 %v669_v61, %v600_v60  ;;  %v4627_v63 = vpop.f32.mrb[5].mxu0 }
 0x630   :  { %5291 = vtanh.f32 %v673_v62  ;;  %v4298_v1 = vmul.f32 -1.442695, %v673_v62 }
 0x632   :  { %5293 = vpow2.f32 %v4298_v1 }
 0x63a   :  { %v5292_v0 = vpop.eup %5291 }
 0x63b   :  { %683 = vrot.lane.b32.xlu0 %v5292_v0, %s5809_s6 }
 0x63c   :  { %v5294_v2 = vpop.eup %5293 }
 0x63d   :  { %v677_v3 = vadd.f32 1.0, %v5294_v2 }
 0x63f   :  { %5295 = vrcp.f32 %v677_v3 }
 0x649   :  { %v5296_v4 = vpop.eup %5295 }
 0x64a   :  { %v681_v7 = vmul.f32 %v5296_v4, %v587_v55 }
 0x6ad   :  { %v684_v5 = vpop.permute.xlu0 %683 }
 0x6ae   :  { %v686_v6 = vmul.f32 %v5296_v4, %v684_v5 }
 0x6b0   :  { %688 = vrot.lane.b32.xlu1 %v686_v6, %s5810_s14 }
 0x722   :  { %v689_v8 = vpop.permute.xlu1 %688 }
 0x723   :  { %v691_v9 = vadd.f32 %v689_v8, %v681_v7  ;;  %v1012_v8 = vld [vmem:[#allocation2 + $0xa] sm:$0x3] }
 0x725   :  { %5297 = vtanh.f32 %v691_v9 }
 0x72f   :  { %v5298_v10 = vpop.eup %5297 }
 0x730   :  { %694 = vrot.lane.b32.xlu0 %v5298_v10, %s5809_s6 }
 0x7a2   :  { %v695_v11 = vpop.permute.xlu0 %694 }
 0x7a3   :  { %v697_v12 = vmul.f32 %v5296_v4, %v695_v11 }
 0x7a5   :  { %699 = vrot.lane.b32.xlu1 %v697_v12, %s5810_s14 }
 0x817   :  { %v700_v13 = vpop.permute.xlu1 %699 }
 0x818   :  { %702 = vst.msk [vmem:[#allocation3 + $0x2] sm:$0x3] %vm598_vm3, %v700_v13  ;;  %4637 = vmatmul.mubr.msk.f32.vlgmr.msra.gmra.mrb[4].mxu1 %vm315_vm1, %v700_v13 }
 0x819   :  { %5059 = vmatpush3.bf16.msra.mxu1 %v6121_v28  ;;  %4658 = vmatprep.mubr.msk.f32.mxu1 %vm5807_vm2, %v5808_v30 }
 0x81a   :  { %5060 = vmatprep.subr.bf16.mxu1 %v5806_v27 }
 0x81d   :  { %5062 = vmatpush3.bf16.msra.mxu1 %v6130_v31 }
 0x81e   :  { %5069 = vmatprep.subr.bf16.mxu1 %v5806_v27 }
 0x8eb   :  { %v772_v15 = vpop.f32.mrb[4].mxu1 }
 0x8ec   :  { %v776_v16 = vadd.f32 %v772_v15, %v703_v14  ;;  %v4638_v17 = vpop.f32.mrb[5].mxu1 }
 0x8ee   :  { %5299 = vtanh.f32 %v776_v16  ;;  %v4300_v19 = vmul.f32 -1.442695, %v776_v16 }
 0x8f0   :  { %5301 = vpow2.f32 %v4300_v19 }
 0x8f8   :  { %v5300_v18 = vpop.eup %5299 }
 0x8f9   :  { %786 = vrot.lane.b32.xlu0 %v5300_v18, %s5809_s6 }
 0x8fa   :  { %v5302_v20 = vpop.eup %5301 }
 0x8fb   :  { %v780_v21 = vadd.f32 1.0, %v5302_v20 }
 0x8fd   :  { %5303 = vrcp.f32 %v780_v21 }
 0x907   :  { %v5304_v22 = vpop.eup %5303 }
 0x908   :  { %v784_v25 = vmul.f32 %v5304_v22, %v691_v9 }
 0x96b   :  { %v787_v23 = vpop.permute.xlu0 %786 }
 0x96c   :  { %v789_v24 = vmul.f32 %v5304_v22, %v787_v23 }
 0x96e   :  { %791 = vrot.lane.b32.xlu1 %v789_v24, %s5810_s14 }
 0x9e0   :  { %v792_v26 = vpop.permute.xlu1 %791 }
 0x9e1   :  { %v794_v29 = vadd.f32 %v792_v26, %v784_v25  ;;  %v1115_v25 = vld [vmem:[#allocation2 + $0xc] sm:$0x3] }
 0x9e3   :  { %5305 = vtanh.f32 %v794_v29 }
 0x9ed   :  { %v5306_v32 = vpop.eup %5305 }
 0x9ee   :  { %797 = vrot.lane.b32.xlu0 %v5306_v32, %s5809_s6 }
 0xa60   :  { %v798_v33 = vpop.permute.xlu0 %797 }
 0xa61   :  { %v800_v34 = vmul.f32 %v5304_v22, %v798_v33 }
 0xa63   :  { %802 = vrot.lane.b32.xlu1 %v800_v34, %s5810_s14 }
 0xad5   :  { %v803_v35 = vpop.permute.xlu1 %802 }
 0xad6   :  { %805 = vst.msk [vmem:[#allocation3 + $0x4] sm:$0x3] %vm598_vm3, %v803_v35  ;;  %4648 = vmatmul.mubr.msk.f32.vlgmr.msra.gmra.mrb[6].mxu0 %vm315_vm1, %v803_v35 }
 0xad7   :  { %5065 = vmatpush3.bf16.msra.mxu0 %v6121_v28  ;;  %4669 = vmatprep.mubr.msk.f32.mxu0 %vm5807_vm2, %v5808_v30 }
 0xad8   :  { %5066 = vmatprep.subr.bf16.mxu0 %v5806_v27 }
 0xadb   :  { %5068 = vmatpush3.bf16.msra.mxu0 %v6130_v31 }
 0xadc   :  { %5075 = vmatprep.subr.bf16.mxu0 %v5806_v27 }
 0xba9   :  { %v875_v37 = vpop.f32.mrb[6].mxu0 }
 0xbaa   :  { %v879_v38 = vadd.f32 %v875_v37, %v806_v36  ;;  %v4649_v39 = vpop.f32.mrb[7].mxu0 }
 0xbac   :  { %5307 = vtanh.f32 %v879_v38  ;;  %v4302_v41 = vmul.f32 -1.442695, %v879_v38 }
 0xbae   :  { %5309 = vpow2.f32 %v4302_v41 }
 0xbb6   :  { %v5308_v40 = vpop.eup %5307 }
 0xbb7   :  { %889 = vrot.lane.b32.xlu0 %v5308_v40, %s5809_s6 }
 0xbb8   :  { %v5310_v42 = vpop.eup %5309 }
 0xbb9   :  { %v883_v43 = vadd.f32 1.0, %v5310_v42 }
 0xbbb   :  { %5311 = vrcp.f32 %v883_v43 }
 0xbc5   :  { %v5312_v44 = vpop.eup %5311 }
 0xbc6   :  { %v887_v47 = vmul.f32 %v5312_v44, %v794_v29 }
 0xc29   :  { %v890_v45 = vpop.permute.xlu0 %889 }
 0xc2a   :  { %v892_v46 = vmul.f32 %v5312_v44, %v890_v45 }
 0xc2c   :  { %894 = vrot.lane.b32.xlu1 %v892_v46, %s5810_s14 }
 0xc9e   :  { %v895_v48 = vpop.permute.xlu1 %894 }
 0xc9f   :  { %v897_v49 = vadd.f32 %v895_v48, %v887_v47  ;;  %v1218_v47 = vld [vmem:[#allocation2 + $0xe] sm:$0x3] }
 0xca1   :  { %5313 = vtanh.f32 %v897_v49 }
 0xcab   :  { %v5314_v50 = vpop.eup %5313 }
 0xcac   :  { %900 = vrot.lane.b32.xlu0 %v5314_v50, %s5809_s6 }
 0xd1e   :  { %v901_v51 = vpop.permute.xlu0 %900 }
 0xd1f   :  { %v903_v52 = vmul.f32 %v5312_v44, %v901_v51 }
 0xd21   :  { %905 = vrot.lane.b32.xlu1 %v903_v52, %s5810_s14 }
 0xd93   :  { %v906_v53 = vpop.permute.xlu1 %905 }
 0xd94   :  { %908 = vst.msk [vmem:[#allocation3 + $0x6] sm:$0x3] %vm598_vm3, %v906_v53  ;;  %4659 = vmatmul.mubr.msk.f32.vlgmr.msra.gmra.mrb[6].mxu1 %vm315_vm1, %v906_v53 }
 0xd95   :  { %5071 = vmatpush3.bf16.msra.mxu1 %v6121_v28  ;;  %4680 = vmatprep.mubr.msk.f32.mxu1 %vm5807_vm2, %v5808_v30 }
 0xd96   :  { %5072 = vmatprep.subr.bf16.mxu1 %v5806_v27 }
 0xd99   :  { %5074 = vmatpush3.bf16.msra.mxu1 %v6130_v31 }
 0xd9b   :  { %v1321_v24 = vld [vmem:[#allocation3] sm:$0xff] }
 0xe67   :  { %v978_v55 = vpop.f32.mrb[6].mxu1 }
 0xe68   :  { %v982_v56 = vadd.f32 %v978_v55, %v909_v54  ;;  %v4660_v57 = vpop.f32.mrb[7].mxu1 }
 0xe6a   :  { %5315 = vtanh.f32 %v982_v56  ;;  %v4304_v59 = vmul.f32 -1.442695, %v982_v56 }
 0xe6c   :  { %5317 = vpow2.f32 %v4304_v59 }
 0xe74   :  { %v5316_v58 = vpop.eup %5315 }
 0xe75   :  { %992 = vrot.lane.b32.xlu0 %v5316_v58, %s5809_s6 }
 0xe76   :  { %v5318_v60 = vpop.eup %5317 }
 0xe77   :  { %v986_v61 = vadd.f32 1.0, %v5318_v60 }
 0xe79   :  { %5319 = vrcp.f32 %v986_v61 }
 0xe83   :  { %v5320_v62 = vpop.eup %5319 }
 0xe84   :  { %v990_v1 = vmul.f32 %v5320_v62, %v897_v49 }
 0xee7   :  { %v993_v63 = vpop.permute.xlu0 %992 }
 0xee8   :  { %v995_v0 = vmul.f32 %v5320_v62, %v993_v63  ;;  %v1324_v63 = vld [vmem:[%s6584_s8 + $0x8] sm:$0xff] }
 0xeea   :  { %997 = vrot.lane.b32.xlu1 %v995_v0, %s5810_s14 }
 0xf5c   :  { %v998_v2 = vpop.permute.xlu1 %997 }
 0xf5d   :  { %v1000_v3 = vadd.f32 %v998_v2, %v990_v1  ;;  %v1325_v1 = vld [vmem:[%s6584_s8 + $0x10] sm:$0xff]  ;;  %v1326_v2 = vld [vmem:[%s6584_s8 + $0x18] sm:$0xff] }
 0xf5f   :  { %5321 = vtanh.f32 %v1000_v3 }
 0xf69   :  { %v5322_v4 = vpop.eup %5321 }
 0xf6a   :  { %1003 = vrot.lane.b32.xlu0 %v5322_v4, %s5809_s6  ;;  %v1417_v4 = vld [vmem:[#allocation9] sm:$0xff] }
 0xfdc   :  { %v1004_v5 = vpop.permute.xlu0 %1003 }
 0xfdd   :  { %v1006_v6 = vmul.f32 %v5320_v62, %v1004_v5  ;;  %v1323_v62 = vld [vmem:[%s6584_s8] sm:$0xff] }
 0xfde   :  { %v5081_v0 = vpack.c.bf16 %v1324_v63, %v1323_v62  ;;  %v1418_v5 = vld [vmem:[#allocation9 + $0x8] sm:$0xff] }
 0xfdf   :  { %1008 = vrot.lane.b32.xlu1 %v1006_v6, %s5810_s14  ;;  %v1419_v6 = vld [vmem:[#allocation9 + $0x10] sm:$0xff] }
 0xfe0   :  { %5082 = vmatprep.subr.bf16.mxu1 %v5081_v0 }
0x1051   :  { %v1009_v7 = vpop.permute.xlu1 %1008 }
0x1052   :  { %1011 = vst.msk [vmem:[#allocation3 + $0x8] sm:$0x3] %vm598_vm3, %v1009_v7  ;;  %4670 = vmatmul.mubr.msk.f32.vlgmr.msra.gmra.mrb[8].mxu0 %vm315_vm1, %v1009_v7  ;;  %v6240_v7 = vpack.c.bf16 %v1418_v5, %v1417_v4 }
0x1053   :  { %5077 = vmatpush3.bf16.msra.mxu0 %v6121_v28  ;;  %4691 = vmatprep.mubr.msk.f32.mxu0 %vm5807_vm2, %v5808_v30 }
0x1054   :  { %5078 = vmatprep.subr.bf16.mxu0 %v5806_v27 }
0x1057   :  { %5080 = vmatpush3.bf16.msra.mxu0 %v6130_v31 }
0x1058   :  { %5089 = vmatprep.subr.bf16.mxu0 %v5806_v27 }
0x1125   :  { %v1081_v9 = vpop.f32.mrb[8].mxu0 }
0x1126   :  { %v1085_v10 = vadd.f32 %v1081_v9, %v1012_v8  ;;  %v4671_v11 = vpop.f32.mrb[9].mxu0  ;;  %v1420_v8 = vld [vmem:[#allocation9 + $0x18] sm:$0xff] }
0x1127   :  { %v6243_v11 = vpack.c.bf16 %v1420_v8, %v1419_v6 }
0x1128   :  { %5323 = vtanh.f32 %v1085_v10  ;;  %v4306_v13 = vmul.f32 -1.442695, %v1085_v10 }
0x112a   :  { %5325 = vpow2.f32 %v4306_v13 }
0x1132   :  { %v5324_v12 = vpop.eup %5323 }
0x1133   :  { %1095 = vrot.lane.b32.xlu0 %v5324_v12, %s5809_s6 }
0x1134   :  { %v5326_v28 = vpop.eup %5325 }
0x1135   :  { %v1089_v14 = vadd.f32 1.0, %v5326_v28 }
0x1137   :  { %5327 = vrcp.f32 %v1089_v14 }
0x1141   :  { %v5328_v15 = vpop.eup %5327 }
0x1142   :  { %v1093_v31 = vmul.f32 %v5328_v15, %v1000_v3  ;;  %v5085_v3 = vpack.c.bf16 %v1326_v2, %v1325_v1 }
0x11a5   :  { %v1096_v16 = vpop.permute.xlu0 %1095 }
0x11a6   :  { %v1098_v17 = vmul.f32 %v5328_v15, %v1096_v16 }
0x11a8   :  { %1100 = vrot.lane.b32.xlu1 %v1098_v17, %s5810_s14 }
0x121a   :  { %v1101_v18 = vpop.permute.xlu1 %1100 }
0x121b   :  { %v1103_v19 = vadd.f32 %v1101_v18, %v1093_v31 }
0x121d   :  { %5329 = vtanh.f32 %v1103_v19 }
0x1227   :  { %v5330_v20 = vpop.eup %5329 }
0x1228   :  { %1106 = vrot.lane.b32.xlu0 %v5330_v20, %s5809_s6 }
0x129a   :  { %v1107_v21 = vpop.permute.xlu0 %1106 }
0x129b   :  { %v1109_v22 = vmul.f32 %v5328_v15, %v1107_v21  ;;  %v4311_v15 = vld [vmem:[%s6586_s10] ss:$0 sm:$0xff] }
0x129d   :  { %1111 = vrot.lane.b32.xlu1 %v1109_v22, %s5810_s14 }
0x130f   :  { %v1112_v23 = vpop.permute.xlu1 %1111 }
0x1310   :  { %1114 = vst.msk [vmem:[#allocation3 + $0xa] sm:$0x3] %vm598_vm3, %v1112_v23  ;;  %4681 = vmatmul.mubr.msk.f32.vlgmr.msra.gmra.mrb[8].mxu1 %vm315_vm1, %v1112_v23 }
0x1311   :  { %4702 = vmatprep.mubr.msk.f32.mxu1 %vm315_vm1, %v1321_v24  ;;  %5084 = vmatpush3.bf16.msra.mxu1 %v5081_v0 }
0x1312   :  { %5086 = vmatprep.subr.bf16.mxu1 %v5085_v3 }
0x1315   :  { %5088 = vmatpush3.bf16.msra.mxu1 %v5085_v3 }
0x1316   :  { %5095 = vmatprep.subr.bf16.mxu1 %v5806_v27 }
0x13e3   :  { %v1184_v26 = vpop.f32.mrb[8].mxu1 }
0x13e4   :  { %v1188_v29 = vadd.f32 %v1184_v26, %v1115_v25  ;;  %v4682_v32 = vpop.f32.mrb[9].mxu1 }
0x13e6   :  { %5331 = vtanh.f32 %v1188_v29  ;;  %v4308_v34 = vmul.f32 -1.442695, %v1188_v29 }
0x13e8   :  { %5333 = vpow2.f32 %v4308_v34 }
0x13f0   :  { %v5332_v33 = vpop.eup %5331 }
0x13f1   :  { %1198 = vrot.lane.b32.xlu0 %v5332_v33, %s5809_s6 }
0x13f2   :  { %v5334_v35 = vpop.eup %5333 }
0x13f3   :  { %v1192_v36 = vadd.f32 1.0, %v5334_v35 }
0x13f5   :  { %5335 = vrcp.f32 %v1192_v36 }
0x13ff   :  { %v5336_v37 = vpop.eup %5335 }
0x1400   :  { %v1196_v40 = vmul.f32 %v5336_v37, %v1103_v19 }
0x1463   :  { %v1199_v38 = vpop.permute.xlu0 %1198 }
0x1464   :  { %v1201_v39 = vmul.f32 %v5336_v37, %v1199_v38 }
0x1466   :  { %1203 = vrot.lane.b32.xlu1 %v1201_v39, %s5810_s14 }
0x14d8   :  { %v1204_v41 = vpop.permute.xlu1 %1203 }
0x14d9   :  { %v1206_v42 = vadd.f32 %v1204_v41, %v1196_v40 }
0x14db   :  { %5337 = vtanh.f32 %v1206_v42 }
0x14e5   :  { %v5338_v43 = vpop.eup %5337 }
0x14e6   :  { %1209 = vrot.lane.b32.xlu0 %v5338_v43, %s5809_s6 }
0x1558   :  { %v1210_v44 = vpop.permute.xlu0 %1209 }
0x1559   :  { %v1212_v45 = vmul.f32 %v5336_v37, %v1210_v44 }
0x155b   :  { %1214 = vrot.lane.b32.xlu1 %v1212_v45, %s5810_s14 }
0x15cd   :  { %v1215_v46 = vpop.permute.xlu1 %1214 }
0x15ce   :  { %1217 = vst.msk [vmem:[#allocation3 + $0xc] sm:$0x3] %vm598_vm3, %v1215_v46  ;;  %4692 = vmatmul.mubr.msk.f32.vlgmr.msra.gmra.mrb[10].mxu0 %vm315_vm1, %v1215_v46 }
0x15cf   :  { %4713 = vmatprep.mubr.msk.f32.mxu0 %vm5807_vm2, %v5808_v30  ;;  %5091 = vmatpush3.bf16.msra.mxu0 %v6240_v7 }
0x15d0   :  { %5092 = vmatprep.subr.bf16.mxu0 %v5806_v27 }
0x15d3   :  { %5094 = vmatpush3.bf16.msra.mxu0 %v6243_v11 }
0x15d4   :  { %5101 = vmatprep.subr.bf16.mxu0 %v5806_v27 }
0x15d6   :  { %4714 = vmatmul.mubr.f32.vlgmr.msra.gmra.mrb[12].mxu0 %v5808_v30 }
0x15d7   :  { %5103 = vmatpush3.bf16.msra.mxu0 %v6240_v7  ;;  %4735 = vmatprep.mubr.msk.f32.mxu0 %vm5807_vm2, %v5808_v30 }
0x15d8   :  { %5104 = vmatprep.subr.bf16.mxu0 %v5806_v27 }
0x15db   :  { %5106 = vmatpush3.bf16.msra.mxu0 %v6243_v11 }
0x15dc   :  { %5113 = vmatprep.subr.bf16.mxu0 %v5806_v27 }
0x16a1   :  { %v1287_v48 = vpop.f32.mrb[10].mxu0 }
0x16a2   :  { %v1291_v49 = vadd.f32 %v1287_v48, %v1218_v47  ;;  %v4693_v50 = vpop.f32.mrb[11].mxu0 }
0x16a4   :  { %5339 = vtanh.f32 %v1291_v49  ;;  %v4310_v52 = vmul.f32 -1.442695, %v1291_v49 }
0x16a6   :  { %5341 = vpow2.f32 %v4310_v52 }
0x16a9   :  { %v1488_v28 = vpop.f32.mrb[12].mxu0 }
0x16aa   :  { %v4715_v14 = vpop.f32.mrb[13].mxu0 }
0x16ae   :  { %v5340_v51 = vpop.eup %5339 }
0x16af   :  { %1301 = vrot.lane.b32.xlu0 %v5340_v51, %s5809_s6 }
0x16b0   :  { %v5342_v53 = vpop.eup %5341 }
0x16b1   :  { %v1295_v54 = vadd.f32 1.0, %v5342_v53 }
0x16b3   :  { %5343 = vrcp.f32 %v1295_v54 }
0x16bd   :  { %v5344_v55 = vpop.eup %5343 }
0x16be   :  { %v1299_v58 = vmul.f32 %v5344_v55, %v1206_v42 }
0x1721   :  { %v1302_v56 = vpop.permute.xlu0 %1301 }
0x1722   :  { %v1304_v57 = vmul.f32 %v5344_v55, %v1302_v56 }
0x1724   :  { %1306 = vrot.lane.b32.xlu1 %v1304_v57, %s5810_s14 }
0x1796   :  { %v1307_v59 = vpop.permute.xlu1 %1306 }
0x1797   :  { %v1309_v60 = vadd.f32 %v1307_v59, %v1299_v58 }
0x1799   :  { %5345 = vtanh.f32 %v1309_v60 }
0x17a3   :  { %v5346_v61 = vpop.eup %5345 }
0x17a4   :  { %1312 = vrot.lane.b32.xlu0 %v5346_v61, %s5809_s6 }
0x1816   :  { %v1313_v9 = vpop.permute.xlu0 %1312 }
0x1817   :  { %v1315_v10 = vmul.f32 %v5344_v55, %v1313_v9 }
0x1819   :  { %1317 = vrot.lane.b32.xlu1 %v1315_v10, %s5810_s14 }
0x188b   :  { %v1318_v12 = vpop.permute.xlu1 %1317 }
0x188c   :  { %1320 = vst.msk [vmem:[#allocation3 + $0xe] sm:$0x3] %vm598_vm3, %v1318_v12 }
0x1893   :  { %v1322_v13 = vld [vmem:[#allocation3 + $0x8] sm:$0xff] }
0x1894   :  { %4703 = vmatmul.mubr.msk.f32.vlgmr.msra.gmra.mrb[10].mxu1 %vm315_vm1, %v1322_v13 }
0x1895   :  { %5097 = vmatpush3.bf16.msra.mxu1 %v6240_v7  ;;  %4724 = vmatprep.mubr.msk.f32.mxu1 %vm5807_vm2, %v5808_v30 }
0x1896   :  { %5098 = vmatprep.subr.bf16.mxu1 %v5806_v27 }
0x1899   :  { %5100 = vmatpush3.bf16.msra.mxu1 %v6243_v11 }
0x189a   :  { %5107 = vmatprep.subr.bf16.mxu1 %v5806_v27 }
0x1967   :  { %v4704_v16 = vpop.f32.mrb[10].mxu1 }
0x1968   :  { %v1412_v17 = vadd.f32 %v4704_v16, %v4311_v15  ;;  %v1406_v31 = vpop.f32.mrb[11].mxu1 }
0x1969   :  { %v1407_v18 = vadd.f32 %v4311_v15, %v1406_v31 }
0x196a   :  { %1416 = vst [vmem:[#allocation2 + $0x8] sm:$0xff] %v1412_v17 }
0x196b   :  { %1415 = vst [vmem:[#allocation2] sm:$0xff] %v1407_v18 }
0x1972   :  { %v1421_v19 = vld [vmem:[#allocation2] sm:$0x3]  ;;  %v1522_v39 = vld [vmem:[#allocation2 + $0x2] sm:$0x3]  ;;  %v1625_v57 = vld [vmem:[#allocation2 + $0x4] sm:$0x3] }
0x1973   :  { %v1492_v20 = vadd.f32 %v1488_v28, %v1421_v19  ;;  %v1728_v13 = vld [vmem:[#allocation2 + $0x6] sm:$0x3] }
0x1975   :  { %5347 = vtanh.f32 %v1492_v20  ;;  %v4314_v22 = vmul.f32 -1.442695, %v1492_v20 }
0x1977   :  { %5349 = vpow2.f32 %v4314_v22 }
0x197f   :  { %v5348_v21 = vpop.eup %5347 }
0x1980   :  { %1502 = vrot.lane.b32.xlu0 %v5348_v21, %s5809_s6 }
0x1981   :  { %v5350_v23 = vpop.eup %5349 }
0x1982   :  { %v1496_v24 = vadd.f32 1.0, %v5350_v23 }
0x1984   :  { %5351 = vrcp.f32 %v1496_v24 }
0x198e   :  { %v5352_v25 = vpop.eup %5351 }
0x198f   :  { %v1500_v32 = vmul.f32 0.0, %v5352_v25 }
0x19f2   :  { %v1503_v26 = vpop.permute.xlu0 %1502 }
0x19f3   :  { %v1505_v29 = vmul.f32 %v5352_v25, %v1503_v26 }
0x19f5   :  { %1507 = vrot.lane.b32.xlu1 %v1505_v29, %s5810_s14 }
0x1a67   :  { %v1508_v33 = vpop.permute.xlu1 %1507 }
0x1a68   :  { %v1510_v34 = vadd.f32 %v1508_v33, %v1500_v32  ;;  %v1831_v33 = vld [vmem:[#allocation2 + $0x8] sm:$0x3] }
0x1a6a   :  { %5353 = vtanh.f32 %v1510_v34 }
0x1a74   :  { %v5354_v35 = vpop.eup %5353 }
0x1a75   :  { %1513 = vrot.lane.b32.xlu0 %v5354_v35, %s5809_s6 }
0x1ae7   :  { %v1514_v36 = vpop.permute.xlu0 %1513 }
0x1ae8   :  { %v1516_v37 = vmul.f32 %v5352_v25, %v1514_v36 }
0x1aea   :  { %1518 = vrot.lane.b32.xlu1 %v1516_v37, %s5810_s14 }
0x1b5c   :  { %v1519_v38 = vpop.permute.xlu1 %1518 }
0x1b5d   :  { %1521 = vst.msk [vmem:[#allocation3] sm:$0x3] %vm598_vm3, %v1519_v38  ;;  %4725 = vmatmul.mubr.msk.f32.vlgmr.msra.gmra.mrb[12].mxu1 %vm315_vm1, %v1519_v38 }
0x1b5e   :  { %5109 = vmatpush3.bf16.msra.mxu1 %v6240_v7  ;;  %4746 = vmatprep.mubr.msk.f32.mxu1 %vm5807_vm2, %v5808_v30 }
0x1b5f   :  { %5110 = vmatprep.subr.bf16.mxu1 %v5806_v27 }
0x1b62   :  { %5112 = vmatpush3.bf16.msra.mxu1 %v6243_v11 }
0x1b63   :  { %5119 = vmatprep.subr.bf16.mxu1 %v5806_v27 }
0x1c30   :  { %v1591_v40 = vpop.f32.mrb[12].mxu1 }
0x1c31   :  { %v1595_v41 = vadd.f32 %v1591_v40, %v1522_v39  ;;  %v4726_v42 = vpop.f32.mrb[13].mxu1 }
0x1c33   :  { %5355 = vtanh.f32 %v1595_v41  ;;  %v4316_v44 = vmul.f32 -1.442695, %v1595_v41 }
0x1c35   :  { %5357 = vpow2.f32 %v4316_v44 }
0x1c3d   :  { %v5356_v43 = vpop.eup %5355 }
0x1c3e   :  { %1605 = vrot.lane.b32.xlu0 %v5356_v43, %s5809_s6 }
0x1c3f   :  { %v5358_v45 = vpop.eup %5357 }
0x1c40   :  { %v1599_v46 = vadd.f32 1.0, %v5358_v45 }
0x1c42   :  { %5359 = vrcp.f32 %v1599_v46 }
0x1c4c   :  { %v5360_v47 = vpop.eup %5359 }
0x1c4d   :  { %v1603_v50 = vmul.f32 %v5360_v47, %v1510_v34 }
0x1cb0   :  { %v1606_v48 = vpop.permute.xlu0 %1605 }
0x1cb1   :  { %v1608_v49 = vmul.f32 %v5360_v47, %v1606_v48 }
0x1cb3   :  { %1610 = vrot.lane.b32.xlu1 %v1608_v49, %s5810_s14 }
0x1d25   :  { %v1611_v51 = vpop.permute.xlu1 %1610 }
0x1d26   :  { %v1613_v52 = vadd.f32 %v1611_v51, %v1603_v50  ;;  %v1934_v51 = vld [vmem:[#allocation2 + $0xa] sm:$0x3] }
0x1d28   :  { %5361 = vtanh.f32 %v1613_v52 }
0x1d32   :  { %v5362_v53 = vpop.eup %5361 }
0x1d33   :  { %1616 = vrot.lane.b32.xlu0 %v5362_v53, %s5809_s6 }
0x1da5   :  { %v1617_v54 = vpop.permute.xlu0 %1616 }
0x1da6   :  { %v1619_v55 = vmul.f32 %v5360_v47, %v1617_v54 }
0x1da8   :  { %1621 = vrot.lane.b32.xlu1 %v1619_v55, %s5810_s14 }
0x1e1a   :  { %v1622_v56 = vpop.permute.xlu1 %1621 }
0x1e1b   :  { %1624 = vst.msk [vmem:[#allocation3 + $0x2] sm:$0x3] %vm598_vm3, %v1622_v56  ;;  %4736 = vmatmul.mubr.msk.f32.vlgmr.msra.gmra.mrb[14].mxu0 %vm315_vm1, %v1622_v56 }
0x1e1c   :  { %5115 = vmatpush3.bf16.msra.mxu0 %v6240_v7  ;;  %4757 = vmatprep.mubr.msk.f32.mxu0 %vm5807_vm2, %v5808_v30 }
0x1e1d   :  { %5116 = vmatprep.subr.bf16.mxu0 %v5806_v27 }
0x1e20   :  { %5118 = vmatpush3.bf16.msra.mxu0 %v6243_v11 }
0x1e21   :  { %5125 = vmatprep.subr.bf16.mxu0 %v5806_v27 }
0x1eee   :  { %v1694_v58 = vpop.f32.mrb[14].mxu0 }
0x1eef   :  { %v1698_v59 = vadd.f32 %v1694_v58, %v1625_v57  ;;  %v4737_v60 = vpop.f32.mrb[15].mxu0 }
0x1ef1   :  { %5363 = vtanh.f32 %v1698_v59  ;;  %v4318_v62 = vmul.f32 -1.442695, %v1698_v59 }
0x1ef3   :  { %5365 = vpow2.f32 %v4318_v62 }
0x1efb   :  { %v5364_v61 = vpop.eup %5363 }
0x1efc   :  { %1708 = vrot.lane.b32.xlu0 %v5364_v61, %s5809_s6 }
0x1efd   :  { %v5366_v63 = vpop.eup %5365 }
0x1efe   :  { %v1702_v0 = vadd.f32 1.0, %v5366_v63 }
0x1f00   :  { %5367 = vrcp.f32 %v1702_v0 }
0x1f0a   :  { %v5368_v1 = vpop.eup %5367 }
0x1f0b   :  { %v1706_v4 = vmul.f32 %v5368_v1, %v1613_v52 }
0x1f6e   :  { %v1709_v2 = vpop.permute.xlu0 %1708 }
0x1f6f   :  { %v1711_v3 = vmul.f32 %v5368_v1, %v1709_v2 }
0x1f71   :  { %1713 = vrot.lane.b32.xlu1 %v1711_v3, %s5810_s14 }
0x1fe3   :  { %v1714_v5 = vpop.permute.xlu1 %1713 }
0x1fe4   :  { %v1716_v6 = vadd.f32 %v1714_v5, %v1706_v4  ;;  %v2037_v4 = vld [vmem:[#allocation2 + $0xc] sm:$0x3] }
0x1fe6   :  { %5369 = vtanh.f32 %v1716_v6 }
0x1ff0   :  { %v5370_v8 = vpop.eup %5369 }
0x1ff1   :  { %1719 = vrot.lane.b32.xlu0 %v5370_v8, %s5809_s6 }
0x2063   :  { %v1720_v9 = vpop.permute.xlu0 %1719 }
0x2064   :  { %v1722_v10 = vmul.f32 %v5368_v1, %v1720_v9 }
0x2066   :  { %1724 = vrot.lane.b32.xlu1 %v1722_v10, %s5810_s14 }
0x20d8   :  { %v1725_v12 = vpop.permute.xlu1 %1724 }
0x20d9   :  { %1727 = vst.msk [vmem:[#allocation3 + $0x4] sm:$0x3] %vm598_vm3, %v1725_v12  ;;  %4747 = vmatmul.mubr.msk.f32.vlgmr.msra.gmra.mrb[14].mxu1 %vm315_vm1, %v1725_v12 }
0x20da   :  { %5121 = vmatpush3.bf16.msra.mxu1 %v6240_v7  ;;  %4768 = vmatprep.mubr.msk.f32.mxu1 %vm5807_vm2, %v5808_v30 }
0x20db   :  { %5122 = vmatprep.subr.bf16.mxu1 %v5806_v27 }
0x20de   :  { %5124 = vmatpush3.bf16.msra.mxu1 %v6243_v11 }
0x20df   :  { %5131 = vmatprep.subr.bf16.mxu1 %v5806_v27 }
0x21ac   :  { %v1797_v28 = vpop.f32.mrb[14].mxu1 }
0x21ad   :  { %v1801_v14 = vadd.f32 %v1797_v28, %v1728_v13  ;;  %v4748_v15 = vpop.f32.mrb[15].mxu1 }
0x21af   :  { %5371 = vtanh.f32 %v1801_v14  ;;  %v4320_v17 = vmul.f32 -1.442695, %v1801_v14 }
0x21b1   :  { %5373 = vpow2.f32 %v4320_v17 }
0x21b9   :  { %v5372_v16 = vpop.eup %5371 }
0x21ba   :  { %1811 = vrot.lane.b32.xlu0 %v5372_v16, %s5809_s6 }
0x21bb   :  { %v5374_v31 = vpop.eup %5373 }
0x21bc   :  { %v1805_v18 = vadd.f32 1.0, %v5374_v31 }
0x21be   :  { %5375 = vrcp.f32 %v1805_v18 }
0x21c8   :  { %v5376_v19 = vpop.eup %5375 }
0x21c9   :  { %v1809_v22 = vmul.f32 %v5376_v19, %v1716_v6 }
0x222c   :  { %v1812_v20 = vpop.permute.xlu0 %1811 }
0x222d   :  { %v1814_v21 = vmul.f32 %v5376_v19, %v1812_v20 }
0x222f   :  { %1816 = vrot.lane.b32.xlu1 %v1814_v21, %s5810_s14 }
0x22a1   :  { %v1817_v23 = vpop.permute.xlu1 %1816 }
0x22a2   :  { %v1819_v24 = vadd.f32 %v1817_v23, %v1809_v22  ;;  %v2140_v22 = vld [vmem:[#allocation2 + $0xe] sm:$0x3] }
0x22a4   :  { %5377 = vtanh.f32 %v1819_v24 }
0x22ae   :  { %v5378_v25 = vpop.eup %5377 }
0x22af   :  { %1822 = vrot.lane.b32.xlu0 %v5378_v25, %s5809_s6 }
0x2321   :  { %v1823_v26 = vpop.permute.xlu0 %1822 }
0x2322   :  { %v1825_v29 = vmul.f32 %v5376_v19, %v1823_v26 }
0x2324   :  { %1827 = vrot.lane.b32.xlu1 %v1825_v29, %s5810_s14 }
0x2396   :  { %v1828_v32 = vpop.permute.xlu1 %1827 }
0x2397   :  { %1830 = vst.msk [vmem:[#allocation3 + $0x6] sm:$0x3] %vm598_vm3, %v1828_v32  ;;  %4758 = vmatmul.mubr.msk.f32.vlgmr.msra.gmra.mrb[16].mxu0 %vm315_vm1, %v1828_v32 }
0x2398   :  { %5127 = vmatpush3.bf16.msra.mxu0 %v6240_v7  ;;  %4779 = vmatprep.mubr.msk.f32.mxu0 %vm5807_vm2, %v5808_v30 }
0x2399   :  { %5128 = vmatprep.subr.bf16.mxu0 %v5806_v27 }
0x239c   :  { %5130 = vmatpush3.bf16.msra.mxu0 %v6243_v11 }
0x239e   :  { %v2243_v3 = vld [vmem:[#allocation3] sm:$0xff] }
0x246a   :  { %v1900_v34 = vpop.f32.mrb[16].mxu0 }
0x246b   :  { %v1904_v35 = vadd.f32 %v1900_v34, %v1831_v33  ;;  %v4759_v36 = vpop.f32.mrb[17].mxu0 }
0x246d   :  { %5379 = vtanh.f32 %v1904_v35  ;;  %v4322_v38 = vmul.f32 -1.442695, %v1904_v35 }
0x246f   :  { %5381 = vpow2.f32 %v4322_v38 }
0x2477   :  { %v5380_v37 = vpop.eup %5379 }
0x2478   :  { %1914 = vrot.lane.b32.xlu0 %v5380_v37, %s5809_s6 }
0x2479   :  { %v5382_v39 = vpop.eup %5381 }
0x247a   :  { %v1908_v40 = vadd.f32 1.0, %v5382_v39 }
0x247c   :  { %5383 = vrcp.f32 %v1908_v40 }
0x2486   :  { %v5384_v41 = vpop.eup %5383 }
0x2487   :  { %v1912_v44 = vmul.f32 %v5384_v41, %v1819_v24 }
0x24ea   :  { %v1915_v42 = vpop.permute.xlu0 %1914 }
0x24eb   :  { %v1917_v43 = vmul.f32 %v5384_v41, %v1915_v42  ;;  %v2246_v42 = vld [vmem:[#allocation11 + $0x8] sm:$0xff] }
0x24ed   :  { %1919 = vrot.lane.b32.xlu1 %v1917_v43, %s5810_s14 }
0x255f   :  { %v1920_v45 = vpop.permute.xlu1 %1919 }
0x2560   :  { %v1922_v46 = vadd.f32 %v1920_v45, %v1912_v44  ;;  %v2247_v44 = vld [vmem:[#allocation11 + $0x10] sm:$0xff]  ;;  %v2248_v45 = vld [vmem:[#allocation11 + $0x18] sm:$0xff] }
0x2562   :  { %5385 = vtanh.f32 %v1922_v46 }
0x256c   :  { %v5386_v47 = vpop.eup %5385 }
0x256d   :  { %1925 = vrot.lane.b32.xlu0 %v5386_v47, %s5809_s6  ;;  %v2339_v47 = vld [vmem:[#allocation12] sm:$0xff] }
0x25df   :  { %v1926_v48 = vpop.permute.xlu0 %1925 }
0x25e0   :  { %v1928_v49 = vmul.f32 %v5384_v41, %v1926_v48  ;;  %v2245_v41 = vld [vmem:[#allocation11] sm:$0xff]  ;;  %v2340_v48 = vld [vmem:[#allocation12 + $0x8] sm:$0xff] }
0x25e1   :  { %v5137_v43 = vpack.c.bf16 %v2246_v42, %v2245_v41 }
0x25e2   :  { %1930 = vrot.lane.b32.xlu1 %v1928_v49, %s5810_s14  ;;  %v2341_v49 = vld [vmem:[#allocation12 + $0x10] sm:$0xff] }
0x25e3   :  { %5138 = vmatprep.subr.bf16.mxu0 %v5137_v43 }
0x2654   :  { %v1931_v50 = vpop.permute.xlu1 %1930 }
0x2655   :  { %1933 = vst.msk [vmem:[#allocation3 + $0x8] sm:$0x3] %vm598_vm3, %v1931_v50  ;;  %4769 = vmatmul.mubr.msk.f32.vlgmr.msra.gmra.mrb[16].mxu1 %vm315_vm1, %v1931_v50  ;;  %v6345_v50 = vpack.c.bf16 %v2340_v48, %v2339_v47 }
0x2656   :  { %5133 = vmatpush3.bf16.msra.mxu1 %v6240_v7  ;;  %4790 = vmatprep.mubr.msk.f32.mxu1 %vm5807_vm2, %v5808_v30 }
0x2657   :  { %5134 = vmatprep.subr.bf16.mxu1 %v5806_v27 }
0x265a   :  { %5136 = vmatpush3.bf16.msra.mxu1 %v6243_v11 }
0x265b   :  { %5145 = vmatprep.subr.bf16.mxu1 %v5806_v27 }
0x2728   :  { %v2003_v52 = vpop.f32.mrb[16].mxu1 }
0x2729   :  { %v2007_v53 = vadd.f32 %v2003_v52, %v1934_v51  ;;  %v4770_v54 = vpop.f32.mrb[17].mxu1  ;;  %v2342_v51 = vld [vmem:[#allocation12 + $0x18] sm:$0xff] }
0x272a   :  { %v6348_v54 = vpack.c.bf16 %v2342_v51, %v2341_v49 }
0x272b   :  { %5387 = vtanh.f32 %v2007_v53  ;;  %v4324_v56 = vmul.f32 -1.442695, %v2007_v53 }
0x272d   :  { %5389 = vpow2.f32 %v4324_v56 }
0x2735   :  { %v5388_v55 = vpop.eup %5387 }
0x2736   :  { %2017 = vrot.lane.b32.xlu0 %v5388_v55, %s5809_s6 }
0x2737   :  { %v5390_v7 = vpop.eup %5389 }
0x2738   :  { %v2011_v57 = vadd.f32 1.0, %v5390_v7 }
0x273a   :  { %5391 = vrcp.f32 %v2011_v57 }
0x2744   :  { %v5392_v58 = vpop.eup %5391 }
0x2745   :  { %v2015_v11 = vmul.f32 %v5392_v58, %v1922_v46  ;;  %v5141_v46 = vpack.c.bf16 %v2248_v45, %v2247_v44 }
0x27a8   :  { %v2018_v59 = vpop.permute.xlu0 %2017 }
0x27a9   :  { %v2020_v60 = vmul.f32 %v5392_v58, %v2018_v59 }
0x27ab   :  { %2022 = vrot.lane.b32.xlu1 %v2020_v60, %s5810_s14 }
0x281d   :  { %v2023_v61 = vpop.permute.xlu1 %2022 }
0x281e   :  { %v2025_v62 = vadd.f32 %v2023_v61, %v2015_v11 }
0x2820   :  { %5393 = vtanh.f32 %v2025_v62 }
0x282a   :  { %v5394_v63 = vpop.eup %5393 }
0x282b   :  { %2028 = vrot.lane.b32.xlu0 %v5394_v63, %s5809_s6 }
0x289d   :  { %v2029_v0 = vpop.permute.xlu0 %2028 }
0x289e   :  { %v2031_v1 = vmul.f32 %v5392_v58, %v2029_v0  ;;  %v4329_v58 = vld [vmem:[%s6589_s13] ss:$0 sm:$0xff] }
0x28a0   :  { %2033 = vrot.lane.b32.xlu1 %v2031_v1, %s5810_s14 }
0x2912   :  { %v2034_v2 = vpop.permute.xlu1 %2033 }
0x2913   :  { %2036 = vst.msk [vmem:[#allocation3 + $0xa] sm:$0x3] %vm598_vm3, %v2034_v2  ;;  %4780 = vmatmul.mubr.msk.f32.vlgmr.msra.gmra.mrb[18].mxu0 %vm315_vm1, %v2034_v2 }
0x2914   :  { %4801 = vmatprep.mubr.msk.f32.mxu0 %vm315_vm1, %v2243_v3  ;;  %5140 = vmatpush3.bf16.msra.mxu0 %v5137_v43 }
0x2915   :  { %5142 = vmatprep.subr.bf16.mxu0 %v5141_v46 }
0x2918   :  { %5144 = vmatpush3.bf16.msra.mxu0 %v5141_v46 }
0x2919   :  { %5151 = vmatprep.subr.bf16.mxu0 %v5806_v27 }
0x29e6   :  { %v2106_v5 = vpop.f32.mrb[18].mxu0 }
0x29e7   :  { %v2110_v6 = vadd.f32 %v2106_v5, %v2037_v4  ;;  %v4781_v8 = vpop.f32.mrb[19].mxu0 }
0x29e9   :  { %5395 = vtanh.f32 %v2110_v6  ;;  %v4326_v10 = vmul.f32 -1.442695, %v2110_v6 }
0x29eb   :  { %5397 = vpow2.f32 %v4326_v10 }
0x29f3   :  { %v5396_v9 = vpop.eup %5395 }
0x29f4   :  { %2120 = vrot.lane.b32.xlu0 %v5396_v9, %s5809_s6 }
0x29f5   :  { %v5398_v12 = vpop.eup %5397 }
0x29f6   :  { %v2114_v13 = vadd.f32 1.0, %v5398_v12 }
0x29f8   :  { %5399 = vrcp.f32 %v2114_v13 }
0x2a02   :  { %v5400_v28 = vpop.eup %5399 }
0x2a03   :  { %v2118_v16 = vmul.f32 %v5400_v28, %v2025_v62 }
0x2a66   :  { %v2121_v14 = vpop.permute.xlu0 %2120 }
0x2a67   :  { %v2123_v15 = vmul.f32 %v5400_v28, %v2121_v14 }
0x2a69   :  { %2125 = vrot.lane.b32.xlu1 %v2123_v15, %s5810_s14 }
0x2adb   :  { %v2126_v17 = vpop.permute.xlu1 %2125 }
0x2adc   :  { %v2128_v31 = vadd.f32 %v2126_v17, %v2118_v16 }
0x2ade   :  { %5401 = vtanh.f32 %v2128_v31 }
0x2ae8   :  { %v5402_v18 = vpop.eup %5401 }
0x2ae9   :  { %2131 = vrot.lane.b32.xlu0 %v5402_v18, %s5809_s6 }
0x2b5b   :  { %v2132_v19 = vpop.permute.xlu0 %2131 }
0x2b5c   :  { %v2134_v20 = vmul.f32 %v5400_v28, %v2132_v19 }
0x2b5e   :  { %2136 = vrot.lane.b32.xlu1 %v2134_v20, %s5810_s14 }
0x2bd0   :  { %v2137_v21 = vpop.permute.xlu1 %2136 }
0x2bd1   :  { %2139 = vst.msk [vmem:[#allocation3 + $0xc] sm:$0x3] %vm598_vm3, %v2137_v21  ;;  %4791 = vmatmul.mubr.msk.f32.vlgmr.msra.gmra.mrb[18].mxu1 %vm315_vm1, %v2137_v21 }
0x2bd2   :  { %4812 = vmatprep.mubr.msk.f32.mxu1 %vm5807_vm2, %v5808_v30  ;;  %5147 = vmatpush3.bf16.msra.mxu1 %v6345_v50 }
0x2bd3   :  { %5148 = vmatprep.subr.bf16.mxu1 %v5806_v27 }
0x2bd6   :  { %5150 = vmatpush3.bf16.msra.mxu1 %v6348_v54 }
0x2bd7   :  { %5157 = vmatprep.subr.bf16.mxu1 %v5806_v27 }
0x2bd9   :  { %4813 = vmatmul.mubr.f32.vlgmr.msra.gmra.mrb[20].mxu1 %v5808_v30 }
0x2bda   :  { %5159 = vmatpush3.bf16.msra.mxu1 %v6345_v50  ;;  %4834 = vmatprep.mubr.msk.f32.mxu1 %vm5807_vm2, %v5808_v30 }
0x2bdb   :  { %5160 = vmatprep.subr.bf16.mxu1 %v5806_v27 }
0x2bde   :  { %5162 = vmatpush3.bf16.msra.mxu1 %v6348_v54 }
0x2bdf   :  { %5169 = vmatprep.subr.bf16.mxu1 %v5806_v27 }
0x2ca4   :  { %v2209_v23 = vpop.f32.mrb[18].mxu1 }
0x2ca5   :  { %v2213_v24 = vadd.f32 %v2209_v23, %v2140_v22  ;;  %v4792_v25 = vpop.f32.mrb[19].mxu1 }
0x2ca7   :  { %5403 = vtanh.f32 %v2213_v24  ;;  %v4328_v29 = vmul.f32 -1.442695, %v2213_v24 }
0x2ca9   :  { %5405 = vpow2.f32 %v4328_v29 }
0x2cac   :  { %v2410_v7 = vpop.f32.mrb[20].mxu1 }
0x2cad   :  { %v4814_v57 = vpop.f32.mrb[21].mxu1 }
0x2cb1   :  { %v5404_v26 = vpop.eup %5403 }
0x2cb2   :  { %2223 = vrot.lane.b32.xlu0 %v5404_v26, %s5809_s6 }
0x2cb3   :  { %v5406_v32 = vpop.eup %5405 }
0x2cb4   :  { %v2217_v33 = vadd.f32 1.0, %v5406_v32 }
0x2cb6   :  { %5407 = vrcp.f32 %v2217_v33 }
0x2cc0   :  { %v5408_v34 = vpop.eup %5407 }
0x2cc1   :  { %v2221_v37 = vmul.f32 %v5408_v34, %v2128_v31 }
0x2d24   :  { %v2224_v35 = vpop.permute.xlu0 %2223 }
0x2d25   :  { %v2226_v36 = vmul.f32 %v5408_v34, %v2224_v35 }
0x2d27   :  { %2228 = vrot.lane.b32.xlu1 %v2226_v36, %s5810_s14 }
0x2d99   :  { %v2229_v38 = vpop.permute.xlu1 %2228 }
0x2d9a   :  { %v2231_v39 = vadd.f32 %v2229_v38, %v2221_v37 }
0x2d9c   :  { %5409 = vtanh.f32 %v2231_v39 }
0x2da6   :  { %v5410_v40 = vpop.eup %5409 }
0x2da7   :  { %2234 = vrot.lane.b32.xlu0 %v5410_v40, %s5809_s6 }
0x2e19   :  { %v2235_v52 = vpop.permute.xlu0 %2234 }
0x2e1a   :  { %v2237_v53 = vmul.f32 %v5408_v34, %v2235_v52 }
0x2e1c   :  { %2239 = vrot.lane.b32.xlu1 %v2237_v53, %s5810_s14 }
0x2e8e   :  { %v2240_v55 = vpop.permute.xlu1 %2239 }
0x2e8f   :  { %2242 = vst.msk [vmem:[#allocation3 + $0xe] sm:$0x3] %vm598_vm3, %v2240_v55 }
0x2e96   :  { %v2244_v56 = vld [vmem:[#allocation3 + $0x8] sm:$0xff] }
0x2e97   :  { %4802 = vmatmul.mubr.msk.f32.vlgmr.msra.gmra.mrb[20].mxu0 %vm315_vm1, %v2244_v56 }
0x2e98   :  { %5153 = vmatpush3.bf16.msra.mxu0 %v6345_v50  ;;  %4823 = vmatprep.mubr.msk.f32.mxu0 %vm5807_vm2, %v5808_v30 }
0x2e99   :  { %5154 = vmatprep.subr.bf16.mxu0 %v5806_v27 }
0x2e9c   :  { %5156 = vmatpush3.bf16.msra.mxu0 %v6348_v54 }
0x2e9d   :  { %5163 = vmatprep.subr.bf16.mxu0 %v5806_v27 }
0x2f6a   :  { %v4803_v59 = vpop.f32.mrb[20].mxu0 }
0x2f6b   :  { %v2334_v60 = vadd.f32 %v4803_v59, %v4329_v58  ;;  %v2328_v11 = vpop.f32.mrb[21].mxu0 }
0x2f6c   :  { %v2329_v61 = vadd.f32 %v4329_v58, %v2328_v11 }
0x2f6d   :  { %2338 = vst [vmem:[#allocation2 + $0x8] sm:$0xff] %v2334_v60 }
0x2f6e   :  { %2337 = vst [vmem:[#allocation2] sm:$0xff] %v2329_v61 }
0x2f75   :  { %v2343_v62 = vld [vmem:[#allocation2] sm:$0x3]  ;;  %v2444_v15 = vld [vmem:[#allocation2 + $0x2] sm:$0x3]  ;;  %v2547_v36 = vld [vmem:[#allocation2 + $0x4] sm:$0x3] }
0x2f76   :  { %v2414_v63 = vadd.f32 %v2410_v7, %v2343_v62  ;;  %v2650_v56 = vld [vmem:[#allocation2 + $0x6] sm:$0x3] }
0x2f78   :  { %5411 = vtanh.f32 %v2414_v63  ;;  %v4332_v1 = vmul.f32 -1.442695, %v2414_v63 }
0x2f7a   :  { %5413 = vpow2.f32 %v4332_v1 }
0x2f82   :  { %v5412_v0 = vpop.eup %5411 }
0x2f83   :  { %2424 = vrot.lane.b32.xlu0 %v5412_v0, %s5809_s6 }
0x2f84   :  { %v5414_v2 = vpop.eup %5413 }
0x2f85   :  { %v2418_v3 = vadd.f32 1.0, %v5414_v2 }
0x2f87   :  { %5415 = vrcp.f32 %v2418_v3 }
0x2f91   :  { %v5416_v4 = vpop.eup %5415 }
0x2f92   :  { %v2422_v8 = vmul.f32 0.0, %v5416_v4 }
0x2ff5   :  { %v2425_v5 = vpop.permute.xlu0 %2424 }
0x2ff6   :  { %v2427_v6 = vmul.f32 %v5416_v4, %v2425_v5 }
0x2ff8   :  { %2429 = vrot.lane.b32.xlu1 %v2427_v6, %s5810_s14 }
0x306a   :  { %v2430_v9 = vpop.permute.xlu1 %2429 }
0x306b   :  { %v2432_v10 = vadd.f32 %v2430_v9, %v2422_v8  ;;  %v2753_v9 = vld [vmem:[#allocation2 + $0x8] sm:$0x3] }
0x306d   :  { %5417 = vtanh.f32 %v2432_v10 }
0x3077   :  { %v5418_v12 = vpop.eup %5417 }
0x3078   :  { %2435 = vrot.lane.b32.xlu0 %v5418_v12, %s5809_s6 }
0x30ea   :  { %v2436_v13 = vpop.permute.xlu0 %2435 }
0x30eb   :  { %v2438_v28 = vmul.f32 %v5416_v4, %v2436_v13 }
0x30ed   :  { %2440 = vrot.lane.b32.xlu1 %v2438_v28, %s5810_s14 }
0x315f   :  { %v2441_v14 = vpop.permute.xlu1 %2440 }
0x3160   :  { %2443 = vst.msk [vmem:[#allocation3] sm:$0x3] %vm598_vm3, %v2441_v14  ;;  %4824 = vmatmul.mubr.msk.f32.vlgmr.msra.gmra.mrb[22].mxu0 %vm315_vm1, %v2441_v14 }
0x3161   :  { %5165 = vmatpush3.bf16.msra.mxu0 %v6345_v50  ;;  %4845 = vmatprep.mubr.msk.f32.mxu0 %vm5807_vm2, %v5808_v30 }
0x3162   :  { %5166 = vmatprep.subr.bf16.mxu0 %v5806_v27 }
0x3165   :  { %5168 = vmatpush3.bf16.msra.mxu0 %v6348_v54 }
0x3166   :  { %5175 = vmatprep.subr.bf16.mxu0 %v5806_v27 }
0x3233   :  { %v2513_v16 = vpop.f32.mrb[22].mxu0 }
0x3234   :  { %v2517_v17 = vadd.f32 %v2513_v16, %v2444_v15  ;;  %v4825_v31 = vpop.f32.mrb[23].mxu0 }
0x3236   :  { %5419 = vtanh.f32 %v2517_v17  ;;  %v4334_v19 = vmul.f32 -1.442695, %v2517_v17 }
0x3238   :  { %5421 = vpow2.f32 %v4334_v19 }
0x3240   :  { %v5420_v18 = vpop.eup %5419 }
0x3241   :  { %2527 = vrot.lane.b32.xlu0 %v5420_v18, %s5809_s6 }
0x3242   :  { %v5422_v20 = vpop.eup %5421 }
0x3243   :  { %v2521_v21 = vadd.f32 1.0, %v5422_v20 }
0x3245   :  { %5423 = vrcp.f32 %v2521_v21 }
0x324f   :  { %v5424_v22 = vpop.eup %5423 }
0x3250   :  { %v2525_v25 = vmul.f32 %v5424_v22, %v2432_v10 }
0x32b3   :  { %v2528_v23 = vpop.permute.xlu0 %2527 }
0x32b4   :  { %v2530_v24 = vmul.f32 %v5424_v22, %v2528_v23 }
0x32b6   :  { %2532 = vrot.lane.b32.xlu1 %v2530_v24, %s5810_s14 }
0x3328   :  { %v2533_v26 = vpop.permute.xlu1 %2532 }
0x3329   :  { %v2535_v29 = vadd.f32 %v2533_v26, %v2525_v25  ;;  %v2856_v26 = vld [vmem:[#allocation2 + $0xa] sm:$0x3] }
0x332b   :  { %5425 = vtanh.f32 %v2535_v29 }
0x3335   :  { %v5426_v32 = vpop.eup %5425 }
0x3336   :  { %2538 = vrot.lane.b32.xlu0 %v5426_v32, %s5809_s6 }
0x33a8   :  { %v2539_v33 = vpop.permute.xlu0 %2538 }
0x33a9   :  { %v2541_v34 = vmul.f32 %v5424_v22, %v2539_v33 }
0x33ab   :  { %2543 = vrot.lane.b32.xlu1 %v2541_v34, %s5810_s14 }
0x341d   :  { %v2544_v35 = vpop.permute.xlu1 %2543 }
0x341e   :  { %2546 = vst.msk [vmem:[#allocation3 + $0x2] sm:$0x3] %vm598_vm3, %v2544_v35  ;;  %4835 = vmatmul.mubr.msk.f32.vlgmr.msra.gmra.mrb[22].mxu1 %vm315_vm1, %v2544_v35 }
0x341f   :  { %5171 = vmatpush3.bf16.msra.mxu1 %v6345_v50  ;;  %4856 = vmatprep.mubr.msk.f32.mxu1 %vm5807_vm2, %v5808_v30 }
0x3420   :  { %5172 = vmatprep.subr.bf16.mxu1 %v5806_v27 }
0x3423   :  { %5174 = vmatpush3.bf16.msra.mxu1 %v6348_v54 }
0x3424   :  { %5181 = vmatprep.subr.bf16.mxu1 %v5806_v27 }
0x34f1   :  { %v2616_v37 = vpop.f32.mrb[22].mxu1 }
0x34f2   :  { %v2620_v38 = vadd.f32 %v2616_v37, %v2547_v36  ;;  %v4836_v39 = vpop.f32.mrb[23].mxu1 }
0x34f4   :  { %5427 = vtanh.f32 %v2620_v38  ;;  %v4336_v41 = vmul.f32 -1.442695, %v2620_v38 }
0x34f6   :  { %5429 = vpow2.f32 %v4336_v41 }
0x34fe   :  { %v5428_v40 = vpop.eup %5427 }
0x34ff   :  { %2630 = vrot.lane.b32.xlu0 %v5428_v40, %s5809_s6 }
0x3500   :  { %v5430_v42 = vpop.eup %5429 }
0x3501   :  { %v2624_v43 = vadd.f32 1.0, %v5430_v42 }
0x3503   :  { %5431 = vrcp.f32 %v2624_v43 }
0x350d   :  { %v5432_v44 = vpop.eup %5431 }
0x350e   :  { %v2628_v47 = vmul.f32 %v5432_v44, %v2535_v29 }
0x3571   :  { %v2631_v45 = vpop.permute.xlu0 %2630 }
0x3572   :  { %v2633_v46 = vmul.f32 %v5432_v44, %v2631_v45 }
0x3574   :  { %2635 = vrot.lane.b32.xlu1 %v2633_v46, %s5810_s14 }
0x35e6   :  { %v2636_v48 = vpop.permute.xlu1 %2635 }
0x35e7   :  { %v2638_v49 = vadd.f32 %v2636_v48, %v2628_v47  ;;  %v2959_v47 = vld [vmem:[#allocation2 + $0xc] sm:$0x3] }
0x35e9   :  { %5433 = vtanh.f32 %v2638_v49 }
0x35f3   :  { %v5434_v51 = vpop.eup %5433 }
0x35f4   :  { %2641 = vrot.lane.b32.xlu0 %v5434_v51, %s5809_s6 }
0x3666   :  { %v2642_v52 = vpop.permute.xlu0 %2641 }
0x3667   :  { %v2644_v53 = vmul.f32 %v5432_v44, %v2642_v52 }
0x3669   :  { %2646 = vrot.lane.b32.xlu1 %v2644_v53, %s5810_s14 }
0x36db   :  { %v2647_v55 = vpop.permute.xlu1 %2646 }
0x36dc   :  { %2649 = vst.msk [vmem:[#allocation3 + $0x4] sm:$0x3] %vm598_vm3, %v2647_v55  ;;  %4846 = vmatmul.mubr.msk.f32.vlgmr.msra.gmra.mrb[24].mxu0 %vm315_vm1, %v2647_v55 }
0x36dd   :  { %5177 = vmatpush3.bf16.msra.mxu0 %v6345_v50  ;;  %4867 = vmatprep.mubr.msk.f32.mxu0 %vm5807_vm2, %v5808_v30 }
0x36de   :  { %5178 = vmatprep.subr.bf16.mxu0 %v5806_v27 }
0x36e1   :  { %5180 = vmatpush3.bf16.msra.mxu0 %v6348_v54 }
0x36e2   :  { %5187 = vmatprep.subr.bf16.mxu0 %v5806_v27 }
0x37af   :  { %v2719_v7 = vpop.f32.mrb[24].mxu0 }
0x37b0   :  { %v2723_v57 = vadd.f32 %v2719_v7, %v2650_v56  ;;  %v4847_v58 = vpop.f32.mrb[25].mxu0 }
0x37b2   :  { %5435 = vtanh.f32 %v2723_v57  ;;  %v4338_v60 = vmul.f32 -1.442695, %v2723_v57 }
0x37b4   :  { %5437 = vpow2.f32 %v4338_v60 }
0x37bc   :  { %v5436_v59 = vpop.eup %5435 }
0x37bd   :  { %2733 = vrot.lane.b32.xlu0 %v5436_v59, %s5809_s6 }
0x37be   :  { %v5438_v11 = vpop.eup %5437 }
0x37bf   :  { %v2727_v61 = vadd.f32 1.0, %v5438_v11 }
0x37c1   :  { %5439 = vrcp.f32 %v2727_v61 }
0x37cb   :  { %v5440_v62 = vpop.eup %5439 }
0x37cc   :  { %v2731_v1 = vmul.f32 %v5440_v62, %v2638_v49 }
0x382f   :  { %v2734_v63 = vpop.permute.xlu0 %2733 }
0x3830   :  { %v2736_v0 = vmul.f32 %v5440_v62, %v2734_v63 }
0x3832   :  { %2738 = vrot.lane.b32.xlu1 %v2736_v0, %s5810_s14 }
0x38a4   :  { %v2739_v2 = vpop.permute.xlu1 %2738 }
0x38a5   :  { %v2741_v3 = vadd.f32 %v2739_v2, %v2731_v1  ;;  %v3062_v1 = vld [vmem:[#allocation2 + $0xe] sm:$0x3] }
0x38a7   :  { %5441 = vtanh.f32 %v2741_v3 }
0x38b1   :  { %v5442_v4 = vpop.eup %5441 }
0x38b2   :  { %2744 = vrot.lane.b32.xlu0 %v5442_v4, %s5809_s6 }
0x3924   :  { %v2745_v5 = vpop.permute.xlu0 %2744 }
0x3925   :  { %v2747_v6 = vmul.f32 %v5440_v62, %v2745_v5 }
0x3927   :  { %2749 = vrot.lane.b32.xlu1 %v2747_v6, %s5810_s14 }
0x3999   :  { %v2750_v8 = vpop.permute.xlu1 %2749 }
0x399a   :  { %2752 = vst.msk [vmem:[#allocation3 + $0x6] sm:$0x3] %vm598_vm3, %v2750_v8  ;;  %4857 = vmatmul.mubr.msk.f32.vlgmr.msra.gmra.mrb[24].mxu1 %vm315_vm1, %v2750_v8 }
0x399b   :  { %5183 = vmatpush3.bf16.msra.mxu1 %v6345_v50  ;;  %4878 = vmatprep.mubr.msk.f32.mxu1 %vm5807_vm2, %v5808_v30 }
0x399c   :  { %5184 = vmatprep.subr.bf16.mxu1 %v5806_v27 }
0x399f   :  { %5186 = vmatpush3.bf16.msra.mxu1 %v6348_v54 }
0x39a1   :  { %v3165_v46 = vld [vmem:[#allocation3] sm:$0xff] }
0x3a6d   :  { %v2822_v10 = vpop.f32.mrb[24].mxu1 }
0x3a6e   :  { %v2826_v12 = vadd.f32 %v2822_v10, %v2753_v9  ;;  %v4858_v13 = vpop.f32.mrb[25].mxu1 }
0x3a70   :  { %5443 = vtanh.f32 %v2826_v12  ;;  %v4340_v14 = vmul.f32 -1.442695, %v2826_v12 }
0x3a72   :  { %5445 = vpow2.f32 %v4340_v14 }
0x3a7a   :  { %v5444_v28 = vpop.eup %5443 }
0x3a7b   :  { %2836 = vrot.lane.b32.xlu0 %v5444_v28, %s5809_s6 }
0x3a7c   :  { %v5446_v15 = vpop.eup %5445 }
0x3a7d   :  { %v2830_v16 = vadd.f32 1.0, %v5446_v15 }
0x3a7f   :  { %5447 = vrcp.f32 %v2830_v16 }
0x3a89   :  { %v5448_v17 = vpop.eup %5447 }
0x3a8a   :  { %v2834_v19 = vmul.f32 %v5448_v17, %v2741_v3 }
0x3aed   :  { %v2837_v31 = vpop.permute.xlu0 %2836 }
0x3aee   :  { %v2839_v18 = vmul.f32 %v5448_v17, %v2837_v31  ;;  %v3168_v31 = vld [vmem:[#allocation14 + $0x8] sm:$0xff] }
0x3af0   :  { %2841 = vrot.lane.b32.xlu1 %v2839_v18, %s5810_s14 }
0x3b62   :  { %v2842_v20 = vpop.permute.xlu1 %2841 }
0x3b63   :  { %v2844_v21 = vadd.f32 %v2842_v20, %v2834_v19  ;;  %v3169_v19 = vld [vmem:[#allocation14 + $0x10] sm:$0xff]  ;;  %v3170_v20 = vld [vmem:[#allocation14 + $0x18] sm:$0xff] }
0x3b65   :  { %5449 = vtanh.f32 %v2844_v21 }
0x3b6f   :  { %v5450_v22 = vpop.eup %5449 }
0x3b70   :  { %2847 = vrot.lane.b32.xlu0 %v5450_v22, %s5809_s6  ;;  %v3261_v22 = vld [vmem:[#allocation15] sm:$0xff] }
0x3be2   :  { %v2848_v23 = vpop.permute.xlu0 %2847 }
0x3be3   :  { %v2850_v24 = vmul.f32 %v5448_v17, %v2848_v23  ;;  %v3167_v17 = vld [vmem:[#allocation14] sm:$0xff]  ;;  %v3262_v23 = vld [vmem:[#allocation15 + $0x8] sm:$0xff] }
0x3be4   :  { %v5193_v18 = vpack.c.bf16 %v3168_v31, %v3167_v17 }
0x3be5   :  { %2852 = vrot.lane.b32.xlu1 %v2850_v24, %s5810_s14  ;;  %v3263_v24 = vld [vmem:[#allocation15 + $0x10] sm:$0xff] }
0x3be6   :  { %5194 = vmatprep.subr.bf16.mxu1 %v5193_v18 }
0x3c57   :  { %v2853_v25 = vpop.permute.xlu1 %2852 }
0x3c58   :  { %2855 = vst.msk [vmem:[#allocation3 + $0x8] sm:$0x3] %vm598_vm3, %v2853_v25  ;;  %4868 = vmatmul.mubr.msk.f32.vlgmr.msra.gmra.mrb[26].mxu0 %vm315_vm1, %v2853_v25  ;;  %v6450_v25 = vpack.c.bf16 %v3262_v23, %v3261_v22 }
0x3c59   :  { %5189 = vmatpush3.bf16.msra.mxu0 %v6345_v50  ;;  %4889 = vmatprep.mubr.msk.f32.mxu0 %vm5807_vm2, %v5808_v30 }
0x3c5a   :  { %5190 = vmatprep.subr.bf16.mxu0 %v5806_v27 }
0x3c5d   :  { %5192 = vmatpush3.bf16.msra.mxu0 %v6348_v54 }
0x3c5e   :  { %5201 = vmatprep.subr.bf16.mxu0 %v5806_v27 }
0x3d2b   :  { %v2925_v29 = vpop.f32.mrb[26].mxu0 }
0x3d2c   :  { %v2929_v32 = vadd.f32 %v2925_v29, %v2856_v26  ;;  %v4869_v33 = vpop.f32.mrb[27].mxu0  ;;  %v3264_v26 = vld [vmem:[#allocation15 + $0x18] sm:$0xff] }
0x3d2d   :  { %v6453_v33 = vpack.c.bf16 %v3264_v26, %v3263_v24 }
0x3d2e   :  { %5451 = vtanh.f32 %v2929_v32  ;;  %v4342_v35 = vmul.f32 -1.442695, %v2929_v32 }
0x3d30   :  { %5453 = vpow2.f32 %v4342_v35 }
0x3d38   :  { %v5452_v34 = vpop.eup %5451 }
0x3d39   :  { %2939 = vrot.lane.b32.xlu0 %v5452_v34, %s5809_s6 }
0x3d3a   :  { %v5454_v50 = vpop.eup %5453 }
0x3d3b   :  { %v2933_v36 = vadd.f32 1.0, %v5454_v50 }
0x3d3d   :  { %5455 = vrcp.f32 %v2933_v36 }
0x3d47   :  { %v5456_v37 = vpop.eup %5455 }
0x3d48   :  { %v2937_v54 = vmul.f32 %v5456_v37, %v2844_v21  ;;  %v5197_v21 = vpack.c.bf16 %v3170_v20, %v3169_v19 }
0x3dab   :  { %v2940_v38 = vpop.permute.xlu0 %2939 }
0x3dac   :  { %v2942_v39 = vmul.f32 %v5456_v37, %v2940_v38 }
0x3dae   :  { %2944 = vrot.lane.b32.xlu1 %v2942_v39, %s5810_s14 }
0x3e20   :  { %v2945_v40 = vpop.permute.xlu1 %2944 }
0x3e21   :  { %v2947_v41 = vadd.f32 %v2945_v40, %v2937_v54 }
0x3e23   :  { %5457 = vtanh.f32 %v2947_v41 }
0x3e2d   :  { %v5458_v42 = vpop.eup %5457 }
0x3e2e   :  { %2950 = vrot.lane.b32.xlu0 %v5458_v42, %s5809_s6 }
0x3ea0   :  { %v2951_v43 = vpop.permute.xlu0 %2950 }
0x3ea1   :  { %v2953_v44 = vmul.f32 %v5456_v37, %v2951_v43  ;;  %v4347_v37 = vld [vmem:[%s6592_s16] ss:$0 sm:$0xff] }
0x3ea3   :  { %2955 = vrot.lane.b32.xlu1 %v2953_v44, %s5810_s14 }
0x3f15   :  { %v2956_v45 = vpop.permute.xlu1 %2955 }
0x3f16   :  { %2958 = vst.msk [vmem:[#allocation3 + $0xa] sm:$0x3] %vm598_vm3, %v2956_v45  ;;  %4879 = vmatmul.mubr.msk.f32.vlgmr.msra.gmra.mrb[26].mxu1 %vm315_vm1, %v2956_v45 }
0x3f17   :  { %4900 = vmatprep.mubr.msk.f32.mxu1 %vm315_vm1, %v3165_v46  ;;  %5196 = vmatpush3.bf16.msra.mxu1 %v5193_v18 }
0x3f18   :  { %5198 = vmatprep.subr.bf16.mxu1 %v5197_v21 }
0x3f1b   :  { %5200 = vmatpush3.bf16.msra.mxu1 %v5197_v21 }
0x3f1c   :  { %5207 = vmatprep.subr.bf16.mxu1 %v5806_v27 }
0x3fe9   :  { %v3028_v48 = vpop.f32.mrb[26].mxu1 }
0x3fea   :  { %v3032_v49 = vadd.f32 %v3028_v48, %v2959_v47  ;;  %v4880_v51 = vpop.f32.mrb[27].mxu1 }
0x3fec   :  { %5459 = vtanh.f32 %v3032_v49  ;;  %v4344_v53 = vmul.f32 -1.442695, %v3032_v49 }
0x3fee   :  { %5461 = vpow2.f32 %v4344_v53 }
0x3ff6   :  { %v5460_v52 = vpop.eup %5459 }
0x3ff7   :  { %3042 = vrot.lane.b32.xlu0 %v5460_v52, %s5809_s6 }
0x3ff8   :  { %v5462_v55 = vpop.eup %5461 }
0x3ff9   :  { %v3036_v56 = vadd.f32 1.0, %v5462_v55 }
0x3ffb   :  { %5463 = vrcp.f32 %v3036_v56 }
0x4005   :  { %v5464_v7 = vpop.eup %5463 }
0x4006   :  { %v3040_v59 = vmul.f32 %v5464_v7, %v2947_v41 }
0x4069   :  { %v3043_v57 = vpop.permute.xlu0 %3042 }
0x406a   :  { %v3045_v58 = vmul.f32 %v5464_v7, %v3043_v57 }
0x406c   :  { %3047 = vrot.lane.b32.xlu1 %v3045_v58, %s5810_s14 }
0x40de   :  { %v3048_v60 = vpop.permute.xlu1 %3047 }
0x40df   :  { %v3050_v11 = vadd.f32 %v3048_v60, %v3040_v59 }
0x40e1   :  { %5465 = vtanh.f32 %v3050_v11 }
0x40eb   :  { %v5466_v61 = vpop.eup %5465 }
0x40ec   :  { %3053 = vrot.lane.b32.xlu0 %v5466_v61, %s5809_s6 }
0x415e   :  { %v3054_v62 = vpop.permute.xlu0 %3053 }
0x415f   :  { %v3056_v63 = vmul.f32 %v5464_v7, %v3054_v62 }
0x4161   :  { %3058 = vrot.lane.b32.xlu1 %v3056_v63, %s5810_s14 }
0x41d3   :  { %v3059_v0 = vpop.permute.xlu1 %3058 }
0x41d4   :  { %3061 = vst.msk [vmem:[#allocation3 + $0xc] sm:$0x3] %vm598_vm3, %v3059_v0  ;;  %4890 = vmatmul.mubr.msk.f32.vlgmr.msra.gmra.mrb[28].mxu0 %vm315_vm1, %v3059_v0 }
0x41d5   :  { %4911 = vmatprep.mubr.msk.f32.mxu0 %vm5807_vm2, %v5808_v30  ;;  %5203 = vmatpush3.bf16.msra.mxu0 %v6450_v25 }
0x41d6   :  { %5204 = vmatprep.subr.bf16.mxu0 %v5806_v27 }
0x41d9   :  { %5206 = vmatpush3.bf16.msra.mxu0 %v6453_v33 }
0x41da   :  { %5213 = vmatprep.subr.bf16.mxu0 %v5806_v27 }
0x41dc   :  { %4912 = vmatmul.mubr.f32.vlgmr.msra.gmra.mrb[30].mxu0 %v5808_v30 }
0x41dd   :  { %5215 = vmatpush3.bf16.msra.mxu0 %v6450_v25  ;;  %4933 = vmatprep.mubr.msk.f32.mxu0 %vm5807_vm2, %v5808_v30 }
0x41de   :  { %5216 = vmatprep.subr.bf16.mxu0 %v5806_v27 }
0x41e1   :  { %5218 = vmatpush3.bf16.msra.mxu0 %v6453_v33 }
0x41e2   :  { %5225 = vmatprep.subr.bf16.mxu0 %v5806_v27 }
0x42a7   :  { %v3131_v2 = vpop.f32.mrb[28].mxu0 }
0x42a8   :  { %v3135_v3 = vadd.f32 %v3131_v2, %v3062_v1  ;;  %v4891_v4 = vpop.f32.mrb[29].mxu0 }
0x42aa   :  { %5467 = vtanh.f32 %v3135_v3  ;;  %v4346_v6 = vmul.f32 -1.442695, %v3135_v3 }
0x42ac   :  { %5469 = vpow2.f32 %v4346_v6 }
0x42af   :  { %v3332_v50 = vpop.f32.mrb[30].mxu0 }
0x42b0   :  { %v4913_v36 = vpop.f32.mrb[31].mxu0 }
0x42b4   :  { %v5468_v5 = vpop.eup %5467 }
0x42b5   :  { %3145 = vrot.lane.b32.xlu0 %v5468_v5, %s5809_s6 }
0x42b6   :  { %v5470_v8 = vpop.eup %5469 }
0x42b7   :  { %v3139_v9 = vadd.f32 1.0, %v5470_v8 }
0x42b9   :  { %5471 = vrcp.f32 %v3139_v9 }
0x42c3   :  { %v5472_v10 = vpop.eup %5471 }
0x42c4   :  { %v3143_v28 = vmul.f32 %v5472_v10, %v3050_v11 }
0x4327   :  { %v3146_v12 = vpop.permute.xlu0 %3145 }
0x4328   :  { %v3148_v13 = vmul.f32 %v5472_v10, %v3146_v12 }
0x432a   :  { %3150 = vrot.lane.b32.xlu1 %v3148_v13, %s5810_s14 }
0x439c   :  { %v3151_v14 = vpop.permute.xlu1 %3150 }
0x439d   :  { %v3153_v15 = vadd.f32 %v3151_v14, %v3143_v28 }
0x439f   :  { %5473 = vtanh.f32 %v3153_v15 }
0x43a9   :  { %v5474_v16 = vpop.eup %5473 }
0x43aa   :  { %3156 = vrot.lane.b32.xlu0 %v5474_v16, %s5809_s6 }
0x441c   :  { %v3157_v29 = vpop.permute.xlu0 %3156 }
0x441d   :  { %v3159_v32 = vmul.f32 %v5472_v10, %v3157_v29 }
0x441f   :  { %3161 = vrot.lane.b32.xlu1 %v3159_v32, %s5810_s14 }
0x4491   :  { %v3162_v34 = vpop.permute.xlu1 %3161 }
0x4492   :  { %3164 = vst.msk [vmem:[#allocation3 + $0xe] sm:$0x3] %vm598_vm3, %v3162_v34 }
0x4499   :  { %v3166_v35 = vld [vmem:[#allocation3 + $0x8] sm:$0xff] }
0x449a   :  { %4901 = vmatmul.mubr.msk.f32.vlgmr.msra.gmra.mrb[28].mxu1 %vm315_vm1, %v3166_v35 }
0x449b   :  { %5209 = vmatpush3.bf16.msra.mxu1 %v6450_v25  ;;  %4922 = vmatprep.mubr.msk.f32.mxu1 %vm5807_vm2, %v5808_v30 }
0x449c   :  { %5210 = vmatprep.subr.bf16.mxu1 %v5806_v27 }
0x449f   :  { %5212 = vmatpush3.bf16.msra.mxu1 %v6453_v33 }
0x44a0   :  { %5219 = vmatprep.subr.bf16.mxu1 %v5806_v27 }
0x456d   :  { %v4902_v38 = vpop.f32.mrb[28].mxu1 }
0x456e   :  { %v3256_v39 = vadd.f32 %v4902_v38, %v4347_v37  ;;  %v3250_v54 = vpop.f32.mrb[29].mxu1 }
0x456f   :  { %v3251_v40 = vadd.f32 %v4347_v37, %v3250_v54 }
0x4570   :  { %3260 = vst [vmem:[#allocation2 + $0x8] sm:$0xff] %v3256_v39 }
0x4571   :  { %3259 = vst [vmem:[#allocation2] sm:$0xff] %v3251_v40 }
0x4578   :  { %v3265_v41 = vld [vmem:[#allocation2] sm:$0x3]  ;;  %v3366_v58 = vld [vmem:[#allocation2 + $0x2] sm:$0x3]  ;;  %v3469_v13 = vld [vmem:[#allocation2 + $0x4] sm:$0x3] }
0x4579   :  { %v3336_v42 = vadd.f32 %v3332_v50, %v3265_v41  ;;  %v3572_v35 = vld [vmem:[#allocation2 + $0x6] sm:$0x3] }
0x457b   :  { %5475 = vtanh.f32 %v3336_v42  ;;  %v4350_v44 = vmul.f32 -1.442695, %v3336_v42 }
0x457d   :  { %5477 = vpow2.f32 %v4350_v44 }
0x4585   :  { %v5476_v43 = vpop.eup %5475 }
0x4586   :  { %3346 = vrot.lane.b32.xlu0 %v5476_v43, %s5809_s6 }
0x4587   :  { %v5478_v45 = vpop.eup %5477 }
0x4588   :  { %v3340_v46 = vadd.f32 1.0, %v5478_v45 }
0x458a   :  { %5479 = vrcp.f32 %v3340_v46 }
0x4594   :  { %v5480_v47 = vpop.eup %5479 }
0x4595   :  { %v3344_v51 = vmul.f32 0.0, %v5480_v47 }
0x45f8   :  { %v3347_v48 = vpop.permute.xlu0 %3346 }
0x45f9   :  { %v3349_v49 = vmul.f32 %v5480_v47, %v3347_v48 }
0x45fb   :  { %3351 = vrot.lane.b32.xlu1 %v3349_v49, %s5810_s14 }
0x466d   :  { %v3352_v52 = vpop.permute.xlu1 %3351 }
0x466e   :  { %v3354_v53 = vadd.f32 %v3352_v52, %v3344_v51  ;;  %v3675_v52 = vld [vmem:[#allocation2 + $0x8] sm:$0x3] }
0x4670   :  { %5481 = vtanh.f32 %v3354_v53 }
0x467a   :  { %v5482_v55 = vpop.eup %5481 }
0x467b   :  { %3357 = vrot.lane.b32.xlu0 %v5482_v55, %s5809_s6 }
0x46ed   :  { %v3358_v56 = vpop.permute.xlu0 %3357 }
0x46ee   :  { %v3360_v7 = vmul.f32 %v5480_v47, %v3358_v56 }
0x46f0   :  { %3362 = vrot.lane.b32.xlu1 %v3360_v7, %s5810_s14 }
0x4762   :  { %v3363_v57 = vpop.permute.xlu1 %3362 }
0x4763   :  { %3365 = vst.msk [vmem:[#allocation3] sm:$0x3] %vm598_vm3, %v3363_v57  ;;  %4923 = vmatmul.mubr.msk.f32.vlgmr.msra.gmra.mrb[30].mxu1 %vm315_vm1, %v3363_v57 }
0x4764   :  { %5221 = vmatpush3.bf16.msra.mxu1 %v6450_v25  ;;  %4944 = vmatprep.mubr.msk.f32.mxu1 %vm5807_vm2, %v5808_v30 }
0x4765   :  { %5222 = vmatprep.subr.bf16.mxu1 %v5806_v27 }
0x4768   :  { %5224 = vmatpush3.bf16.msra.mxu1 %v6453_v33 }
0x4769   :  { %5231 = vmatprep.subr.bf16.mxu1 %v5806_v27 }
0x4836   :  { %v3435_v59 = vpop.f32.mrb[30].mxu1 }
0x4837   :  { %v3439_v60 = vadd.f32 %v3435_v59, %v3366_v58  ;;  %v4924_v11 = vpop.f32.mrb[31].mxu1 }
0x4839   :  { %5483 = vtanh.f32 %v3439_v60  ;;  %v4352_v62 = vmul.f32 -1.442695, %v3439_v60 }
0x483b   :  { %5485 = vpow2.f32 %v4352_v62 }
0x4843   :  { %v5484_v61 = vpop.eup %5483 }
0x4844   :  { %3449 = vrot.lane.b32.xlu0 %v5484_v61, %s5809_s6 }
0x4845   :  { %v5486_v63 = vpop.eup %5485 }
0x4846   :  { %v3443_v0 = vadd.f32 1.0, %v5486_v63 }
0x4848   :  { %5487 = vrcp.f32 %v3443_v0 }
0x4852   :  { %v5488_v1 = vpop.eup %5487 }
0x4853   :  { %v3447_v4 = vmul.f32 %v5488_v1, %v3354_v53 }
0x48b6   :  { %v3450_v2 = vpop.permute.xlu0 %3449 }
0x48b7   :  { %v3452_v3 = vmul.f32 %v5488_v1, %v3450_v2 }
0x48b9   :  { %3454 = vrot.lane.b32.xlu1 %v3452_v3, %s5810_s14 }
0x492b   :  { %v3455_v5 = vpop.permute.xlu1 %3454 }
0x492c   :  { %v3457_v6 = vadd.f32 %v3455_v5, %v3447_v4  ;;  %v3778_v5 = vld [vmem:[#allocation2 + $0xa] sm:$0x3] }
0x492e   :  { %5489 = vtanh.f32 %v3457_v6 }
0x4938   :  { %v5490_v8 = vpop.eup %5489 }
0x4939   :  { %3460 = vrot.lane.b32.xlu0 %v5490_v8, %s5809_s6 }
0x49ab   :  { %v3461_v9 = vpop.permute.xlu0 %3460 }
0x49ac   :  { %v3463_v10 = vmul.f32 %v5488_v1, %v3461_v9 }
0x49ae   :  { %3465 = vrot.lane.b32.xlu1 %v3463_v10, %s5810_s14 }
0x4a20   :  { %v3466_v12 = vpop.permute.xlu1 %3465 }
0x4a21   :  { %3468 = vst.msk [vmem:[#allocation3 + $0x2] sm:$0x3] %vm598_vm3, %v3466_v12  ;;  %4934 = vmatmul.mubr.msk.f32.vlgmr.msra.gmra.mrb[32].mxu0 %vm315_vm1, %v3466_v12 }
0x4a22   :  { %5227 = vmatpush3.bf16.msra.mxu0 %v6450_v25  ;;  %4955 = vmatprep.mubr.msk.f32.mxu0 %vm5807_vm2, %v5808_v30 }
0x4a23   :  { %5228 = vmatprep.subr.bf16.mxu0 %v5806_v27 }
0x4a26   :  { %5230 = vmatpush3.bf16.msra.mxu0 %v6453_v33 }
0x4a27   :  { %5237 = vmatprep.subr.bf16.mxu0 %v5806_v27 }
0x4af4   :  { %v3538_v28 = vpop.f32.mrb[32].mxu0 }
0x4af5   :  { %v3542_v14 = vadd.f32 %v3538_v28, %v3469_v13  ;;  %v4935_v15 = vpop.f32.mrb[33].mxu0 }
0x4af7   :  { %5491 = vtanh.f32 %v3542_v14  ;;  %v4354_v17 = vmul.f32 -1.442695, %v3542_v14 }
0x4af9   :  { %5493 = vpow2.f32 %v4354_v17 }
0x4b01   :  { %v5492_v16 = vpop.eup %5491 }
0x4b02   :  { %3552 = vrot.lane.b32.xlu0 %v5492_v16, %s5809_s6 }
0x4b03   :  { %v5494_v31 = vpop.eup %5493 }
0x4b04   :  { %v3546_v18 = vadd.f32 1.0, %v5494_v31 }
0x4b06   :  { %5495 = vrcp.f32 %v3546_v18 }
0x4b10   :  { %v5496_v19 = vpop.eup %5495 }
0x4b11   :  { %v3550_v22 = vmul.f32 %v5496_v19, %v3457_v6 }
0x4b74   :  { %v3553_v20 = vpop.permute.xlu0 %3552 }
0x4b75   :  { %v3555_v21 = vmul.f32 %v5496_v19, %v3553_v20  ;;  %v3881_v20 = vld [vmem:[#allocation2 + $0xc] sm:$0x3] }
0x4b77   :  { %3557 = vrot.lane.b32.xlu1 %v3555_v21, %s5810_s14 }
0x4be9   :  { %v3558_v23 = vpop.permute.xlu1 %3557 }
0x4bea   :  { %v3560_v24 = vadd.f32 %v3558_v23, %v3550_v22 }
0x4bec   :  { %5497 = vtanh.f32 %v3560_v24 }
0x4bf6   :  { %v5498_v26 = vpop.eup %5497 }
0x4bf7   :  { %3563 = vrot.lane.b32.xlu0 %v5498_v26, %s5809_s6 }
0x4c69   :  { %v3564_v29 = vpop.permute.xlu0 %3563 }
0x4c6a   :  { %v3566_v32 = vmul.f32 %v5496_v19, %v3564_v29 }
0x4c6c   :  { %3568 = vrot.lane.b32.xlu1 %v3566_v32, %s5810_s14 }
0x4cde   :  { %v3569_v34 = vpop.permute.xlu1 %3568 }
0x4cdf   :  { %3571 = vst.msk [vmem:[#allocation3 + $0x4] sm:$0x3] %vm598_vm3, %v3569_v34  ;;  %4945 = vmatmul.mubr.msk.f32.vlgmr.msra.gmra.mrb[32].mxu1 %vm315_vm1, %v3569_v34 }
0x4ce0   :  { %5233 = vmatpush3.bf16.msra.mxu1 %v6450_v25  ;;  %4966 = vmatprep.mubr.msk.f32.mxu1 %vm5807_vm2, %v5808_v30 }
0x4ce1   :  { %5234 = vmatprep.subr.bf16.mxu1 %v5806_v27 }
0x4ce4   :  { %5236 = vmatpush3.bf16.msra.mxu1 %v6453_v33 }
0x4ce5   :  { %5243 = vmatprep.subr.bf16.mxu1 %v5806_v27 }
0x4db2   :  { %v3641_v50 = vpop.f32.mrb[32].mxu1 }
0x4db3   :  { %v3645_v36 = vadd.f32 %v3641_v50, %v3572_v35  ;;  %v4946_v37 = vpop.f32.mrb[33].mxu1 }
0x4db5   :  { %5499 = vtanh.f32 %v3645_v36  ;;  %v4356_v39 = vmul.f32 -1.442695, %v3645_v36 }
0x4db7   :  { %5501 = vpow2.f32 %v4356_v39 }
0x4dbf   :  { %v5500_v38 = vpop.eup %5499 }
0x4dc0   :  { %3655 = vrot.lane.b32.xlu0 %v5500_v38, %s5809_s6 }
0x4dc1   :  { %v5502_v54 = vpop.eup %5501 }
0x4dc2   :  { %v3649_v40 = vadd.f32 1.0, %v5502_v54 }
0x4dc4   :  { %5503 = vrcp.f32 %v3649_v40 }
0x4dce   :  { %v5504_v41 = vpop.eup %5503 }
0x4dcf   :  { %v3653_v44 = vmul.f32 %v5504_v41, %v3560_v24 }
0x4e32   :  { %v3656_v42 = vpop.permute.xlu0 %3655 }
0x4e33   :  { %v3658_v43 = vmul.f32 %v5504_v41, %v3656_v42  ;;  %v3984_v42 = vld [vmem:[#allocation2 + $0xe] sm:$0x3] }
0x4e35   :  { %3660 = vrot.lane.b32.xlu1 %v3658_v43, %s5810_s14 }
0x4ea7   :  { %v3661_v45 = vpop.permute.xlu1 %3660 }
0x4ea8   :  { %v3663_v46 = vadd.f32 %v3661_v45, %v3653_v44 }
0x4eaa   :  { %5505 = vtanh.f32 %v3663_v46 }
0x4eb4   :  { %v5506_v47 = vpop.eup %5505 }
0x4eb5   :  { %3666 = vrot.lane.b32.xlu0 %v5506_v47, %s5809_s6 }
0x4f27   :  { %v3667_v48 = vpop.permute.xlu0 %3666 }
0x4f28   :  { %v3669_v49 = vmul.f32 %v5504_v41, %v3667_v48 }
0x4f2a   :  { %3671 = vrot.lane.b32.xlu1 %v3669_v49, %s5810_s14 }
0x4f9c   :  { %v3672_v51 = vpop.permute.xlu1 %3671 }
0x4f9d   :  { %3674 = vst.msk [vmem:[#allocation3 + $0x6] sm:$0x3] %vm598_vm3, %v3672_v51  ;;  %4956 = vmatmul.mubr.msk.f32.vlgmr.msra.gmra.mrb[34].mxu0 %vm315_vm1, %v3672_v51 }
0x4f9e   :  { %5239 = vmatpush3.bf16.msra.mxu0 %v6450_v25  ;;  %4977 = vmatprep.mubr.msk.f32.mxu0 %vm5807_vm2, %v5808_v30 }
0x4f9f   :  { %5240 = vmatprep.subr.bf16.mxu0 %v5806_v27 }
0x4fa2   :  { %5242 = vmatpush3.bf16.msra.mxu0 %v6453_v33 }
0x4fa4   :  { %v4087_v19 = vld [vmem:[#allocation3] sm:$0xff] }
0x5070   :  { %v3744_v53 = vpop.f32.mrb[34].mxu0 }
0x5071   :  { %v3748_v55 = vadd.f32 %v3744_v53, %v3675_v52  ;;  %v4957_v56 = vpop.f32.mrb[35].mxu0 }
0x5073   :  { %5507 = vtanh.f32 %v3748_v55  ;;  %v4358_v57 = vmul.f32 -1.442695, %v3748_v55 }
0x5075   :  { %5509 = vpow2.f32 %v4358_v57 }
0x507d   :  { %v5508_v7 = vpop.eup %5507 }
0x507e   :  { %3758 = vrot.lane.b32.xlu0 %v5508_v7, %s5809_s6 }
0x507f   :  { %v5510_v58 = vpop.eup %5509 }
0x5080   :  { %v3752_v59 = vadd.f32 1.0, %v5510_v58  ;;  %v4089_v58 = vld [vmem:[#allocation17] sm:$0xff] }
0x5082   :  { %5511 = vrcp.f32 %v3752_v59  ;;  %v4090_v59 = vld [vmem:[#allocation17 + $0x8] sm:$0xff] }
0x508c   :  { %v5512_v60 = vpop.eup %5511 }
0x508d   :  { %v3756_v62 = vmul.f32 %v5512_v60, %v3663_v46 }
0x50f0   :  { %v3759_v11 = vpop.permute.xlu0 %3758 }
0x50f1   :  { %v3761_v61 = vmul.f32 %v5512_v60, %v3759_v11  ;;  %v4091_v11 = vld [vmem:[#allocation17 + $0x10] sm:$0xff] }
0x50f3   :  { %3763 = vrot.lane.b32.xlu1 %v3761_v61, %s5810_s14  ;;  %v4092_v61 = vld [vmem:[#allocation17 + $0x18] sm:$0xff] }
0x5165   :  { %v3764_v63 = vpop.permute.xlu1 %3763 }
0x5166   :  { %v3766_v0 = vadd.f32 %v3764_v63, %v3756_v62  ;;  %v5253_v62 = vpack.c.bf16 %v4092_v61, %v4091_v11  ;;  %v4183_v63 = vld [vmem:[%s6595_s19] sm:$0xff] }
0x5168   :  { %5513 = vtanh.f32 %v3766_v0 }
0x5172   :  { %v5514_v1 = vpop.eup %5513 }
0x5173   :  { %3769 = vrot.lane.b32.xlu0 %v5514_v1, %s5809_s6 }
0x51e5   :  { %v3770_v2 = vpop.permute.xlu0 %3769 }
0x51e6   :  { %v3772_v3 = vmul.f32 %v5512_v60, %v3770_v2  ;;  %v5249_v60 = vpack.c.bf16 %v4090_v59, %v4089_v58 }
0x51e8   :  { %3774 = vrot.lane.b32.xlu1 %v3772_v3, %s5810_s14  ;;  %5250 = vmatprep.subr.bf16.mxu0 %v5249_v60 }
0x525a   :  { %v3775_v4 = vpop.permute.xlu1 %3774 }
0x525b   :  { %3777 = vst.msk [vmem:[#allocation3 + $0x8] sm:$0x3] %vm598_vm3, %v3775_v4  ;;  %4967 = vmatmul.mubr.msk.f32.vlgmr.msra.gmra.mrb[34].mxu1 %vm315_vm1, %v3775_v4 }
0x525c   :  { %5245 = vmatpush3.bf16.msra.mxu1 %v6450_v25  ;;  %4988 = vmatprep.mubr.msk.f32.mxu1 %vm5807_vm2, %v5808_v30 }
0x525d   :  { %5246 = vmatprep.subr.bf16.mxu1 %v5806_v27 }
0x5260   :  { %5248 = vmatpush3.bf16.msra.mxu1 %v6453_v33 }
0x532e   :  { %v3847_v6 = vpop.f32.mrb[34].mxu1 }
0x532f   :  { %v3851_v8 = vadd.f32 %v3847_v6, %v3778_v5  ;;  %v4968_v9 = vpop.f32.mrb[35].mxu1  ;;  %v4185_v6 = vld [vmem:[%s6595_s19 + $0x10] sm:$0xff] }
0x5331   :  { %5515 = vtanh.f32 %v3851_v8  ;;  %v4360_v12 = vmul.f32 -1.442695, %v3851_v8  ;;  %v4186_v8 = vld [vmem:[%s6595_s19 + $0x18] sm:$0xff] }
0x5332   :  { %v5261_v9 = vpack.c.bf16 %v4186_v8, %v4185_v6 }
0x5333   :  { %5517 = vpow2.f32 %v4360_v12 }
0x533b   :  { %v5516_v10 = vpop.eup %5515 }
0x533c   :  { %3861 = vrot.lane.b32.xlu0 %v5516_v10, %s5809_s6  ;;  %v4365_v10 = vld [vmem:[#allocation18] ss:$0 sm:$0xff] }
0x533d   :  { %v5518_v13 = vpop.eup %5517 }
0x533e   :  { %v3855_v28 = vadd.f32 1.0, %v5518_v13 }
0x5340   :  { %5519 = vrcp.f32 %v3855_v28 }
0x534a   :  { %v5520_v25 = vpop.eup %5519 }
0x534b   :  { %v3859_v27 = vmul.f32 %v5520_v25, %v3766_v0  ;;  %v4184_v0 = vld [vmem:[%s6595_s19 + $0x8] sm:$0xff] }
0x534c   :  { %v5257_v1 = vpack.c.bf16 %v4184_v0, %v4183_v63 }
0x534e   :  { %5258 = vmatprep.subr.bf16.mxu1 %v5257_v1 }
0x53ae   :  { %v3862_v14 = vpop.permute.xlu0 %3861 }
0x53af   :  { %v3864_v30 = vmul.f32 %v5520_v25, %v3862_v14 }
0x53b1   :  { %3866 = vrot.lane.b32.xlu1 %v3864_v30, %s5810_s14 }
0x5423   :  { %v3867_v33 = vpop.permute.xlu1 %3866 }
0x5424   :  { %v3869_v15 = vadd.f32 %v3867_v33, %v3859_v27  ;;  %v4368_v27 = vld [vmem:[#allocation20] ss:$0 sm:$0xff] }
0x5426   :  { %5521 = vtanh.f32 %v3869_v15 }
0x5430   :  { %v5522_v16 = vpop.eup %5521 }
0x5431   :  { %3872 = vrot.lane.b32.xlu0 %v5522_v16, %s5809_s6 }
0x54a3   :  { %v3873_v17 = vpop.permute.xlu0 %3872 }
0x54a4   :  { %v3875_v31 = vmul.f32 %v5520_v25, %v3873_v17 }
0x54a6   :  { %3877 = vrot.lane.b32.xlu1 %v3875_v31, %s5810_s14 }
0x5518   :  { %v3878_v18 = vpop.permute.xlu1 %3877 }
0x5519   :  { %3880 = vst.msk [vmem:[#allocation3 + $0xa] sm:$0x3] %vm598_vm3, %v3878_v18  ;;  %4978 = vmatmul.mubr.msk.f32.vlgmr.msra.gmra.mrb[36].mxu0 %vm315_vm1, %v3878_v18 }
0x551a   :  { %4999 = vmatprep.mubr.msk.f32.mxu0 %vm315_vm1, %v4087_v19  ;;  %5252 = vmatpush3.bf16.msra.mxu0 %v5249_v60 }
0x551b   :  { %5254 = vmatprep.subr.bf16.mxu0 %v5253_v62 }
0x551e   :  { %5256 = vmatpush3.bf16.msra.mxu0 %v5253_v62 }
0x55ec   :  { %v3950_v21 = vpop.f32.mrb[36].mxu0 }
0x55ed   :  { %v3954_v22 = vadd.f32 %v3950_v21, %v3881_v20  ;;  %v4979_v23 = vpop.f32.mrb[37].mxu0 }
0x55ef   :  { %5523 = vtanh.f32 %v3954_v22  ;;  %v4362_v26 = vmul.f32 -1.442695, %v3954_v22 }
0x55f1   :  { %5525 = vpow2.f32 %v4362_v26 }
0x55f9   :  { %v5524_v24 = vpop.eup %5523 }
0x55fa   :  { %3964 = vrot.lane.b32.xlu0 %v5524_v24, %s5809_s6 }
0x55fb   :  { %v5526_v29 = vpop.eup %5525 }
0x55fc   :  { %v3958_v32 = vadd.f32 1.0, %v5526_v29 }
0x55fe   :  { %5527 = vrcp.f32 %v3958_v32 }
0x5608   :  { %v5528_v34 = vpop.eup %5527 }
0x5609   :  { %v3962_v36 = vmul.f32 %v5528_v34, %v3869_v15 }
0x566c   :  { %v3965_v35 = vpop.permute.xlu0 %3964 }
0x566d   :  { %v3967_v50 = vmul.f32 %v5528_v34, %v3965_v35 }
0x566f   :  { %3969 = vrot.lane.b32.xlu1 %v3967_v50, %s5810_s14 }
0x56e1   :  { %v3970_v37 = vpop.permute.xlu1 %3969 }
0x56e2   :  { %v3972_v38 = vadd.f32 %v3970_v37, %v3962_v36 }
0x56e4   :  { %5529 = vtanh.f32 %v3972_v38 }
0x56ee   :  { %v5530_v39 = vpop.eup %5529 }
0x56ef   :  { %3975 = vrot.lane.b32.xlu0 %v5530_v39, %s5809_s6 }
0x5761   :  { %v3976_v54 = vpop.permute.xlu0 %3975 }
0x5762   :  { %v3978_v40 = vmul.f32 %v5528_v34, %v3976_v54 }
0x5764   :  { %3980 = vrot.lane.b32.xlu1 %v3978_v40, %s5810_s14 }
0x57d6   :  { %v3981_v41 = vpop.permute.xlu1 %3980 }
0x57d7   :  { %3983 = vst.msk [vmem:[#allocation3 + $0xc] sm:$0x3] %vm598_vm3, %v3981_v41  ;;  %4989 = vmatmul.mubr.msk.f32.vlgmr.msra.gmra.mrb[36].mxu1 %vm315_vm1, %v3981_v41 }
0x57d8   :  { %5260 = vmatpush3.bf16.msra.mxu1 %v5257_v1 }
0x57d9   :  { %5262 = vmatprep.subr.bf16.mxu1 %v5261_v9 }
0x57dc   :  { %5264 = vmatpush3.bf16.msra.mxu1 %v5261_v9 }
0x58aa   :  { %v4053_v43 = vpop.f32.mrb[36].mxu1 }
0x58ab   :  { %v4057_v44 = vadd.f32 %v4053_v43, %v3984_v42  ;;  %v4990_v45 = vpop.f32.mrb[37].mxu1 }
0x58ad   :  { %5531 = vtanh.f32 %v4057_v44  ;;  %v4364_v47 = vmul.f32 -1.442695, %v4057_v44 }
0x58af   :  { %5533 = vpow2.f32 %v4364_v47 }
0x58b7   :  { %v5532_v46 = vpop.eup %5531 }
0x58b8   :  { %4067 = vrot.lane.b32.xlu0 %v5532_v46, %s5809_s6 }
0x58b9   :  { %v5534_v48 = vpop.eup %5533 }
0x58ba   :  { %v4061_v49 = vadd.f32 1.0, %v5534_v48 }
0x58bc   :  { %5535 = vrcp.f32 %v4061_v49 }
0x58c6   :  { %v5536_v51 = vpop.eup %5535 }
0x58c7   :  { %v4065_v55 = vmul.f32 %v5536_v51, %v3972_v38 }
0x592a   :  { %v4068_v52 = vpop.permute.xlu0 %4067 }
0x592b   :  { %v4070_v53 = vmul.f32 %v5536_v51, %v4068_v52 }
0x592d   :  { %4072 = vrot.lane.b32.xlu1 %v4070_v53, %s5810_s14 }
0x599f   :  { %v4073_v56 = vpop.permute.xlu1 %4072 }
0x59a0   :  { %v4075_v7 = vadd.f32 %v4073_v56, %v4065_v55 }
0x59a2   :  { %5537 = vtanh.f32 %v4075_v7 }
0x59ac   :  { %v5538_v57 = vpop.eup %5537 }
0x59ad   :  { %4078 = vrot.lane.b32.xlu0 %v5538_v57, %s5809_s6 }
0x5a1f   :  { %v4079_v2 = vpop.permute.xlu0 %4078 }
0x5a20   :  { %v4081_v3 = vmul.f32 %v5536_v51, %v4079_v2 }
0x5a22   :  { %4083 = vrot.lane.b32.xlu1 %v4081_v3, %s5810_s14 }
0x5a94   :  { %v4084_v4 = vpop.permute.xlu1 %4083 }
0x5a95   :  { %4086 = vst.msk [vmem:[#allocation3 + $0xe] sm:$0x3] %vm598_vm3, %v4084_v4 }
0x5a9c   :  { %v4088_v5 = vld [vmem:[#allocation3 + $0x8] sm:$0xff] }
0x5a9d   :  { %5000 = vmatmul.mubr.msk.f32.vlgmr.msra.gmra.mrb[38].mxu0 %vm315_vm1, %v4088_v5 }
0x5b70   :  { %v5001_v12 = vpop.f32.mrb[38].mxu0 }
0x5b71   :  { %v4178_v13 = vadd.f32 %v5001_v12, %v4365_v10  ;;  %v4172_v28 = vpop.f32.mrb[39].mxu0 }
0x5b72   :  { %v4173_v25 = vadd.f32 %v4365_v10, %v4172_v28 }
0x5b73   :  { %v4182_v30 = vmax.f32 %v4178_v13, 0.0 }
0x5b74   :  { %v4181_v14 = vmax.f32 %v4173_v25, 0.0 }
0x5b76   :  { %5010 = vmatprep.mubr.msk.f32.mxu1 %vm315_vm1, %v4181_v14 }
0x5b77   :  { %5011 = vmatmul.mubr.msk.f32.vlgmr.msra.gmra.mrb[38].mxu1 %vm315_vm1, %v4182_v30 }
0x5c4a   :  { %v5012_v33 = vpop.f32.mrb[38].mxu1 }
0x5c4b   :  { %v4272_v15 = vadd.f32 %v5012_v33, %v4368_v27  ;;  %v4266_v16 = vpop.f32.mrb[39].mxu1 }
0x5c4c   :  { %v4267_v17 = vadd.f32 %v4368_v27, %v4266_v16 }
0x5c4d   :  { %4276 = vst.msk [vmem:[%s6597_s21 + $0x8] sm:$0xff] %vm220_vm0, %v4272_v15 }
0x5c4e   :  { %4275 = vst.msk [vmem:[%s6597_s21] sm:$0xff] %vm220_vm0, %v4267_v17 }
0x5c4f   :  { %4281 = vsyncpa [#allocation5], 1 }
0x5c50   :  { %4282 = vsyncpa [#allocation7], 1 }
0x5c51   :  { %4283 = vsyncpa [#allocation10], 1 }
0x5c52   :  { %4284 = vsyncpa [#allocation13], 1 }
0x5c53   :  { %4285 = vsyncpa [#allocation16], 1 }
0x5c54   :  { %4286 = vsyncpa [#allocation19], 1 }

</bundles_post_ra>
